<compile_context>
chip_gen: v7x
topology: tpu7x:2x2x1
jax: 0.10.0
libtpu: 0.0.40
codegen_flags: <defaults>
</compile_context>

<pallas_src>
import functools

import jax
import jax.numpy as jnp
import numpy as np
from jax.experimental import pallas as pl
from jax.experimental.pallas import tpu as pltpu


def _round_up(x, m):
    return (x + m - 1) // m * m


def _vmem_limit_bytes():
    """Scoped-VMEM limit ~3/4 of physical: 48 MiB on v7x (64 MiB), 96 MiB on
    v5e/v6e (128 MiB).  Falls back to 48 MiB if the query is unavailable."""
    try:
        cap = int(pltpu.get_tpu_info().vmem_capacity_bytes)
    except Exception:
        cap = 64 * 1024 * 1024
    return max(32 * 1024 * 1024, min(cap * 3 // 4, 100 * 1024 * 1024))


def _max_tc_for_vmem(bb, d_in, h_dim, gp, budget, hard_cap=32):
    """Largest time chunk whose double-buffered streams + resident weights fit
    comfortably inside the scoped-VMEM budget (keeps pipelining alive)."""
    resident = 2 * ((d_in + h_dim) * gp * 2 + gp * 4)   # bf16 W_ih^T/W_hh^T + f32 bias (x2 buffers)
    fixed = 2 * bb * h_dim * 4 + 6 * bb * gp * 4        # f32 h/c scratch + in-flight gate temporaries
    per_t = 2 * bb * (d_in + h_dim) * 2                 # dbl-buffered bf16 input + output per timestep
    avail = int(budget * 0.6) - resident - fixed
    if avail < per_t:
        return 1
    return int(max(1, min(hard_cap, avail // per_t)))


def _pick_tc(T, max_tc):
    """Pick the time chunk minimizing (#grid steps, padded length).

    Never falls back to tc=1 for awkward T: the sequence is front-padded to a
    multiple of tc and padded steps are masked exactly inside the kernel."""
    best_key, best_tc, best_tp = None, 1, T
    for tc in range(1, min(T, max_tc) + 1):
        n = -(-T // tc)          # number of grid steps along time
        tp = n * tc              # padded sequence length
        key = (n, tp)
        if best_key is None or key < best_key:
            best_key, best_tc, best_tp = key, tc, tp
    return best_tc, best_tp


# ----------------------------- Pallas kernel ------------------------------ #
def _lstm_layer_kernel(x_ref, wih_ref, whh_ref, b_ref, out_ref, h_scr, c_scr, *,
                       tc, h_dim, pad_t, last_only):
    """One fused LSTM layer over a chunk of `tc` timesteps.

    x_ref   : (tc, bb, d_in)  bf16  layer-input chunk (time-major)
    wih_ref : (d_in, Gp)      bf16  input->gates weights (transposed, resident)
    whh_ref : (h_dim, Gp)     bf16  hidden->gates weights (transposed, resident)
    b_ref   : (1, Gp)         f32   b_ih + b_hh, packed gate order [i, f, o, g]
    out_ref : (tc, bb, h_dim) bf16  per-timestep hidden states      (seq mode)
              (1,  bb, h_dim) f32   final hidden state only         (last_only)
    h_scr   : (bb, h_dim) f32 VMEM  hidden state carried across time chunks
    c_scr   : (bb, h_dim) f32 VMEM  cell   state carried across time chunks

    Grid = (batch_blocks [parallel], time_chunks [arbitrary, sequential]).
    """
    chunk = pl.program_id(1)

    @pl.when(chunk == 0)
    def _():
        h_scr[...] = jnp.zeros_like(h_scr)
        c_scr[...] = jnp.zeros_like(c_scr)

    w_ih = wih_ref[...]          # (d_in, Gp) bf16, resident
    w_hh = whh_ref[...]          # (H, Gp)    bf16, resident
    bias = b_ref[...]            # (1, Gp)    f32

    bb = h_scr.shape[0]
    gp = w_hh.shape[1]
    H = h_dim

    # Gate nonlinearities in ONE EUP tanh pass per step: packed order is
    # [i, f, o, g], so lanes [0, 3H) are sigmoids (= 0.5*tanh(0.5x)+0.5) and
    # lanes [3H, 4H) are tanh.  The lane mask is hoisted out of the time loop.
    lane = jax.lax.broadcasted_iota(jnp.int32, (bb, gp), 1)
    is_sig = lane < 3 * H

    # h/c live in vregs across the chunk; VMEM scratch is touched once/chunk.
    h = h_scr[...]
    c = c_scr[...]
    for t in range(tc):          # fully unrolled (tc is a compile-time constant)
        # Fused input projection (no f32 gates_x HBM round trip).  The x dot is
        # independent of the recurrence, so the scheduler can issue it ahead of
        # the serial h @ W_hh^T dependency chain.
        gates = (jnp.dot(x_ref[t], w_ih, preferred_element_type=jnp.float32)
                 + jnp.dot(h.astype(jnp.bfloat16), w_hh,
                           preferred_element_type=jnp.float32)
                 + bias)
        tt = jnp.tanh(jnp.where(is_sig, 0.5 * gates, gates))
        act = jnp.where(is_sig, 0.5 * tt + 0.5, tt)
        i_g = act[:, 0 * H:1 * H]
        f_g = act[:, 1 * H:2 * H]
        o_g = act[:, 2 * H:3 * H]
        g_g = act[:, 3 * H:4 * H]
        c_new = f_g * c + i_g * g_g
        h_new = o_g * jnp.tanh(c_new)
        if t < pad_t:
            # Front-padded timestep: only chunk 0 contains padded steps.  The
            # bias makes the gates nonzero even for zero inputs, so h/c must be
            # explicitly frozen (at exactly 0) to keep the padding exact.
            keep = chunk > 0
            c = jnp.where(keep, c_new, c)
            h = jnp.where(keep, h_new, h)
        else:
            c = c_new
            h = h_new
        if not last_only:
            # Per-timestep store: low vreg pressure, same store volume.
            out_ref[t] = h.astype(out_ref.dtype)

    h_scr[...] = h
    c_scr[...] = c

    if last_only:
        # Resident output block (constant time index); the value written at the
        # final chunk is what lands in HBM.
        out_ref[0] = h.astype(out_ref.dtype)


def _lstm_layer_pallas(x_seq, w_ih_t, w_hh_t, bias, *, h_dim, last_only, tc,
                       pad_t, bb, vmem_limit):
    """Run one fused LSTM layer over the whole (padded) sequence.

    x_seq : (Tp, Bp, d_in) bf16   layer input (time-major, front time padding)
    returns (Tp, Bp, H) bf16 hidden states   (last_only=False)
         or (1,  Bp, H) f32  final hidden    (last_only=True)
    """
    Tp, Bp, d_in = x_seq.shape
    Gp = w_hh_t.shape[1]
    H = h_dim
    n_chunks = Tp // tc
    n_bb = Bp // bb

    if last_only:
        out_shape = jax.ShapeDtypeStruct((1, Bp, H), jnp.float32)
        out_spec = pl.BlockSpec((1, bb, H), lambda b, t: (0, b, 0))
    else:
        out_shape = jax.ShapeDtypeStruct((Tp, Bp, H), jnp.bfloat16)
        out_spec = pl.BlockSpec((tc, bb, H), lambda b, t: (t, b, 0))

    kernel = functools.partial(_lstm_layer_kernel, tc=tc, h_dim=H,
                               pad_t=pad_t, last_only=last_only)

    # Constant-index-map weight/bias blocks are only DMA'd once by the
    # pipeliner; at large H one could set pipeline_mode=pl.Buffered(1) on them
    # to also halve their resident VMEM (v7x budget) -- omitted for safety.
    return pl.pallas_call(
        kernel,
        out_shape=out_shape,
        grid_spec=pltpu.PrefetchScalarGridSpec(
            num_scalar_prefetch=0,
            grid=(n_bb, n_chunks),
            in_specs=[
                # bf16 activation chunk streamed over time
                pl.BlockSpec((tc, bb, d_in), lambda b, t: (t, b, 0)),
                # resident bf16 W_ih^T, W_hh^T and f32 bias
                pl.BlockSpec((d_in, Gp), lambda b, t: (0, 0)),
                pl.BlockSpec((H, Gp), lambda b, t: (0, 0)),
                pl.BlockSpec((1, Gp), lambda b, t: (0, 0)),
            ],
            out_specs=out_spec,
            scratch_shapes=[
                pltpu.VMEM((bb, H), jnp.float32),   # h carry
                pltpu.VMEM((bb, H), jnp.float32),   # c carry
            ],
        ),
        compiler_params=pltpu.CompilerParams(
            # batch blocks are independent (megacore on v7x); time carries state
            dimension_semantics=("parallel", "arbitrary"),
            vmem_limit_bytes=vmem_limit,
        ),
    )(x_seq, w_ih_t, w_hh_t, bias)


# ------------------------------ Parameters --------------------------------- #
def init_lstm_params(key, n_features, n_hidden, n_layers):
    """PyTorch-style init, PyTorch layouts: (w_ih, w_hh, b_ih, b_hh) per layer."""
    k = 1.0 / np.sqrt(n_hidden)
    params = []
    for layer in range(n_layers):
        d_in = n_features if layer == 0 else n_hidden
        key, k1, k2, k3, k4 = jax.random.split(key, 5)
        w_ih = jax.random.uniform(k1, (4 * n_hidden, d_in), jnp.float32, -k, k)
        w_hh = jax.random.uniform(k2, (4 * n_hidden, n_hidden), jnp.float32, -k, k)
        b_ih = jax.random.uniform(k3, (4 * n_hidden,), jnp.float32, -k, k)
        b_hh = jax.random.uniform(k4, (4 * n_hidden,), jnp.float32, -k, k)
        params.append((w_ih, w_hh, b_ih, b_hh))
    return params


def pack_params(params):
    """Pad / transpose / reorder PyTorch LSTM params into the kernel layout.

    Gates are packed contiguously at stride H in the order [i, f, o, g]
    (PyTorch stores [i, f, g, o]); only the combined 4H gate axis is padded to
    a multiple of 128 lanes, so H << 128 no longer inflates the recurrent
    matmul.  All padded weight/bias entries are zero and h0/c0 are zero, so the
    padded gate tail can never contaminate real lanes.  NOTE: this exactness
    relies on zero padding + zero initial state -- do not later add nonzero
    h0/c0 or a forget-gate bias init in the padded tail.
    """
    packed = []
    src_order = (0, 1, 3, 2)      # packed [i, f, o, g]  <-  torch [i, f, g, o]
    for layer, (w_ih, w_hh, b_ih, b_hh) in enumerate(params):
        H = w_hh.shape[1]
        d_in = w_ih.shape[1]
        Gp = _round_up(4 * H, 128)
        # layer-0 features padded to a sublane multiple; later layers consume
        # the previous layer's H-wide activations unpadded.
        d_in_p = _round_up(d_in, 8) if layer == 0 else d_in

        def reorder(w_t, rows_p):
            out = jnp.zeros((rows_p, Gp), jnp.float32)
            for p, s in enumerate(src_order):
                out = out.at[:w_t.shape[0], p * H:(p + 1) * H].set(
                    w_t[:, s * H:(s + 1) * H])
            return out

        w_ih_t = reorder(w_ih.T, d_in_p)      # (d_in_p, Gp)
        w_hh_t = reorder(w_hh.T, H)           # (H, Gp)

        b = b_ih + b_hh
        bias = jnp.zeros((1, Gp), jnp.float32)
        for p, s in enumerate(src_order):
            bias = bias.at[0, p * H:(p + 1) * H].set(b[s * H:(s + 1) * H])

        # bf16 matmul operands; all accumulation stays in f32 inside the kernel.
        packed.append((w_ih_t.astype(jnp.bfloat16),
                       w_hh_t.astype(jnp.bfloat16),
                       bias))
    return packed


# ------------------------------ Model forward ------------------------------ #
@functools.partial(jax.jit, static_argnames=("n_hidden",))
def build_lstm_forward(x_btf, packed_params, *, n_hidden):
    """Equivalent of build_lstm.forward: last-timestep hidden of the last layer.
    (The nn.Linear in __init__ is unused by forward and therefore omitted.)"""
    B, T, F = x_btf.shape
    H = n_hidden
    Gp = _round_up(4 * H, 128)
    Fp = _round_up(F, 8)

    # Batch padding: 16 rows so bf16 tiles are fully packed (v5e vst-friendly);
    # cap the per-block batch at 256 so realistic batches fill the MXU M dim
    # and the leading "parallel" grid axis shards across v7x's 2 TensorCores.
    if B <= 256:
        Bp = _round_up(B, 16)
        bb = Bp
    else:
        Bp = _round_up(B, 256)
        bb = 256
    # TODO(synk): for tiny batches on v7x a core_map layer-wavefront (layer l at
    # time t on TC0 while layer l+1 at t-1 runs on TC1) would engage the second
    # TensorCore; not implemented here.

    vmem_limit = _vmem_limit_bytes()
    max_tc = _max_tc_for_vmem(bb, max(Fp, H), H, Gp, vmem_limit)
    tc, Tp = _pick_tc(T, max_tc)
    pad_t = Tp - T

    # Time-major; front-pad time (masked exactly in-kernel), pad batch rows and
    # layer-0 features with zeros; bf16 activations halve DMA bytes + 2x MXU.
    x = jnp.transpose(x_btf, (1, 0, 2))
    x = jnp.pad(x, ((pad_t, 0), (0, Bp - B), (0, Fp - F)))
    h_seq = x.astype(jnp.bfloat16)

    n_layers = len(packed_params)
    out = None
    for layer, (w_ih_t, w_hh_t, bias) in enumerate(packed_params):
        last = layer == n_layers - 1
        out = _lstm_layer_pallas(h_seq, w_ih_t, w_hh_t, bias, h_dim=H,
                                 last_only=last, tc=tc, pad_t=pad_t, bb=bb,
                                 vmem_limit=vmem_limit)
        if not last:
            h_seq = out            # (Tp, Bp, H) bf16 inter-layer activations
    # (1, Bp, H) f32 final hidden -> (B, n_hidden)
    return out[0, :B, :]


# ------------------------------ Pure-JAX ref ------------------------------- #
def build_lstm_ref(x_btf, params):
    inp = jnp.transpose(x_btf, (1, 0, 2)).astype(jnp.float32)
    for (w_ih, w_hh, b_ih, b_hh) in params:
        H = w_hh.shape[1]
        w_ih_t, w_hh_t = w_ih.T, w_hh.T
        bias = (b_ih + b_hh)[None, :]

        def step(carry, x_t, w_ih_t=w_ih_t, w_hh_t=w_hh_t, bias=bias, H=H):
            h, c = carry
            gates = x_t @ w_ih_t + h @ w_hh_t + bias
            i_g = jax.nn.sigmoid(gates[:, 0 * H:1 * H])
            f_g = jax.nn.sigmoid(gates[:, 1 * H:2 * H])
            g_g = jnp.tanh(gates[:, 2 * H:3 * H])
            o_g = jax.nn.sigmoid(gates[:, 3 * H:4 * H])
            c_new = f_g * c + i_g * g_g
            h_new = o_g * jnp.tanh(c_new)
            return (h_new, c_new), h_new

        B = inp.shape[1]
        init = (jnp.zeros((B, H), jnp.float32), jnp.zeros((B, H), jnp.float32))
        _, inp = jax.lax.scan(step, init, inp)
    return inp[-1]


# ---------------------------------- main ----------------------------------- #
if __name__ == "__main__":
    n_features, n_hidden, n_layers = 4, 32, 2
    batch, seq = 2, 8

    key = jax.random.PRNGKey(0)
    key, kx, kp = jax.random.split(key, 3)

    x = jax.random.normal(kx, (batch, seq, n_features), jnp.float32)
    params = init_lstm_params(kp, n_features, n_hidden, n_layers)
    packed = pack_params(params)

    out = build_lstm_forward(x, packed, n_hidden=n_hidden)
    out = jax.block_until_ready(out)
    assert out.shape == (batch, n_hidden)

    ref = build_lstm_ref(x, params)
    # bf16 matmul operands / bf16 inter-layer activations (f32 accumulation)
    # -> looser tolerance than a pure-f32 comparison.
    np.testing.assert_allclose(np.asarray(out), np.asarray(ref),
                               rtol=3e-2, atol=3e-2)

    print("KERNEL_OK")
</pallas_src>

<mosaic_0001>
module attributes {stable_mosaic.version = 11 : i64} {
  func.func @_lstm_layer_kernel(%arg0: i32, %arg1: i32, %arg2: memref<8x16x8xbf16, #tpu.memory_space<vmem>>, %arg3: memref<8x128xbf16, #tpu.memory_space<vmem>>, %arg4: memref<32x128xbf16, #tpu.memory_space<vmem>>, %arg5: memref<1x128xf32, #tpu.memory_space<vmem>>, %arg6: memref<8x16x32xbf16, #tpu.memory_space<vmem>>, %arg7: memref<16x32xf32, #tpu.memory_space<vmem>>, %arg8: memref<16x32xf32, #tpu.memory_space<vmem>>) attributes {dimension_semantics = [#tpu.dimension_semantics<parallel>, #tpu.dimension_semantics<arbitrary>], iteration_bounds = array<i64: 1, 1>, scalar_prefetch = 0 : i64, scratch_operands = 2 : i64, tpu.core_type = #tpu.core_type<tc>, window_params = [{transform_indices = @transform_0, window_bounds = array<i64: 8, 16, 8>}, {pipeline_mode = #tpu.pipeline_mode<synchronous>, transform_indices = @transform_1, window_bounds = array<i64: 8, 128>}, {pipeline_mode = #tpu.pipeline_mode<synchronous>, transform_indices = @transform_2, window_bounds = array<i64: 32, 128>}, {pipeline_mode = #tpu.pipeline_mode<synchronous>, transform_indices = @transform_3, window_bounds = array<i64: 1, 128>}, {transform_indices = @transform_4, window_bounds = array<i64: 8, 16, 32>}]} {
    %c0_i32 = arith.constant 0 : i32
    %0 = arith.cmpi eq, %arg1, %c0_i32 : i32
    %1 = arith.extui %0 : i1 to i32
    %c0_i32_0 = arith.constant 0 : i32
    %2 = arith.cmpi ne, %1, %c0_i32_0 : i32
    scf.if %2 {
      %cst_94 = arith.constant 0.000000e+00 : f32
      %253 = vector.broadcast %cst_94 : f32 to vector<16x32xf32>
      %c0_95 = arith.constant 0 : index
      %c0_96 = arith.constant 0 : index
      %254 = vector.load %arg7[%c0_95, %c0_96] : memref<16x32xf32, #tpu.memory_space<vmem>>, vector<16x32xf32>
      tpu.vector_store %arg7[%c0_95, %c0_96], %253 {strides = array<i32>} : memref<16x32xf32, #tpu.memory_space<vmem>>, vector<16x32xf32>,
      %cst_97 = arith.constant 0.000000e+00 : f32
      %255 = vector.broadcast %cst_97 : f32 to vector<16x32xf32>
      %c0_98 = arith.constant 0 : index
      %c0_99 = arith.constant 0 : index
      %256 = vector.load %arg8[%c0_98, %c0_99] : memref<16x32xf32, #tpu.memory_space<vmem>>, vector<16x32xf32>
      tpu.vector_store %arg8[%c0_98, %c0_99], %255 {strides = array<i32>} : memref<16x32xf32, #tpu.memory_space<vmem>>, vector<16x32xf32>,
    } else {
    }
    %c0 = arith.constant 0 : index
    %c0_1 = arith.constant 0 : index
    %3 = vector.load %arg3[%c0, %c0_1] : memref<8x128xbf16, #tpu.memory_space<vmem>>, vector<8x128xbf16>
    %c0_2 = arith.constant 0 : index
    %c0_3 = arith.constant 0 : index
    %4 = vector.load %arg4[%c0_2, %c0_3] : memref<32x128xbf16, #tpu.memory_space<vmem>>, vector<32x128xbf16>
    %c0_4 = arith.constant 0 : index
    %c0_5 = arith.constant 0 : index
    %5 = vector.load %arg5[%c0_4, %c0_5] : memref<1x128xf32, #tpu.memory_space<vmem>>, vector<1x128xf32>
    %6 = tpu.iota {dimensions = array<i32: 1>} : vector<16x128xi32>
    %c96_i32 = arith.constant 96 : i32
    %7 = vector.broadcast %c96_i32 : i32 to vector<16x128xi32>
    %8 = arith.cmpi slt, %6, %7 : vector<16x128xi32>
    %c0_6 = arith.constant 0 : index
    %c0_7 = arith.constant 0 : index
    %9 = vector.load %arg7[%c0_6, %c0_7] : memref<16x32xf32, #tpu.memory_space<vmem>>, vector<16x32xf32>
    %c0_8 = arith.constant 0 : index
    %c0_9 = arith.constant 0 : index
    %10 = vector.load %arg8[%c0_8, %c0_9] : memref<16x32xf32, #tpu.memory_space<vmem>>, vector<16x32xf32>
    %c0_10 = arith.constant 0 : index
    %c0_11 = arith.constant 0 : index
    %c0_12 = arith.constant 0 : index
    %11 = vector.load %arg2[%c0_10, %c0_11, %c0_12] : memref<8x16x8xbf16, #tpu.memory_space<vmem>>, vector<1x16x8xbf16>
    %12 = vector.shape_cast %11 : vector<1x16x8xbf16> to vector<16x8xbf16>
    %cst = arith.constant dense<0.000000e+00> : vector<16x128xf32>
    %13 = tpu.matmul %12, %3, %cst {dimension_numbers = #tpu.dot_dimension_numbers<[1], [0], [0], [1], [0, 0, 1, 1], [], []>} : vector<16x8xbf16>, vector<8x128xbf16>, vector<16x128xf32> -> vector<16x128xf32>
    %14 = arith.truncf %9 : vector<16x32xf32> to vector<16x32xbf16>
    %cst_13 = arith.constant dense<0.000000e+00> : vector<16x128xf32>
    %15 = tpu.matmul %14, %4, %cst_13 {dimension_numbers = #tpu.dot_dimension_numbers<[1], [0], [0], [1], [0, 0, 1, 1], [], []>} : vector<16x32xbf16>, vector<32x128xbf16>, vector<16x128xf32> -> vector<16x128xf32>
    %16 = arith.addf %13, %15 : vector<16x128xf32>
    %17 = vector.broadcast %5 : vector<1x128xf32> to vector<16x128xf32>
    %18 = arith.addf %16, %17 : vector<16x128xf32>
    %cst_14 = arith.constant 5.000000e-01 : f32
    %19 = vector.broadcast %cst_14 : f32 to vector<16x128xf32>
    %20 = arith.mulf %19, %18 : vector<16x128xf32>
    %21 = arith.select %8, %20, %18 : vector<16x128xi1>, vector<16x128xf32>
    %22 = math.tanh %21 : vector<16x128xf32>
    %cst_15 = arith.constant 5.000000e-01 : f32
    %23 = vector.broadcast %cst_15 : f32 to vector<16x128xf32>
    %24 = arith.mulf %23, %22 : vector<16x128xf32>
    %cst_16 = arith.constant 5.000000e-01 : f32
    %25 = vector.broadcast %cst_16 : f32 to vector<16x128xf32>
    %26 = arith.addf %24, %25 : vector<16x128xf32>
    %27 = arith.select %8, %26, %22 : vector<16x128xi1>, vector<16x128xf32>
    %28 = vector.extract_strided_slice %27 {offsets = [0, 0], sizes = [16, 32], strides = [1, 1]} : vector<16x128xf32> to vector<16x32xf32>
    %29 = vector.extract_strided_slice %27 {offsets = [0, 32], sizes = [16, 32], strides = [1, 1]} : vector<16x128xf32> to vector<16x32xf32>
    %30 = vector.extract_strided_slice %27 {offsets = [0, 64], sizes = [16, 32], strides = [1, 1]} : vector<16x128xf32> to vector<16x32xf32>
    %31 = vector.extract_strided_slice %27 {offsets = [0, 96], sizes = [16, 32], strides = [1, 1]} : vector<16x128xf32> to vector<16x32xf32>
    %32 = arith.mulf %29, %10 : vector<16x32xf32>
    %33 = arith.mulf %28, %31 : vector<16x32xf32>
    %34 = arith.addf %32, %33 : vector<16x32xf32>
    %35 = math.tanh %34 : vector<16x32xf32>
    %36 = arith.mulf %30, %35 : vector<16x32xf32>
    %37 = arith.truncf %36 : vector<16x32xf32> to vector<16x32xbf16>
    %c0_17 = arith.constant 0 : index
    %c0_18 = arith.constant 0 : index
    %c0_19 = arith.constant 0 : index
    %38 = vector.load %arg6[%c0_17, %c0_18, %c0_19] : memref<8x16x32xbf16, #tpu.memory_space<vmem>>, vector<1x16x32xbf16>
    %39 = vector.shape_cast %38 : vector<1x16x32xbf16> to vector<16x32xbf16>
    %40 = vector.shape_cast %37 : vector<16x32xbf16> to vector<1x16x32xbf16>
    tpu.vector_store %arg6[%c0_17, %c0_18, %c0_19], %40 {strides = array<i32>} : memref<8x16x32xbf16, #tpu.memory_space<vmem>>, vector<1x16x32xbf16>,
    %c1 = arith.constant 1 : index
    %c0_20 = arith.constant 0 : index
    %c0_21 = arith.constant 0 : index
    %41 = vector.load %arg2[%c1, %c0_20, %c0_21] : memref<8x16x8xbf16, #tpu.memory_space<vmem>>, vector<1x16x8xbf16>
    %42 = vector.shape_cast %41 : vector<1x16x8xbf16> to vector<16x8xbf16>
    %cst_22 = arith.constant dense<0.000000e+00> : vector<16x128xf32>
    %43 = tpu.matmul %42, %3, %cst_22 {dimension_numbers = #tpu.dot_dimension_numbers<[1], [0], [0], [1], [0, 0, 1, 1], [], []>} : vector<16x8xbf16>, vector<8x128xbf16>, vector<16x128xf32> -> vector<16x128xf32>
    %44 = arith.truncf %36 : vector<16x32xf32> to vector<16x32xbf16>
    %cst_23 = arith.constant dense<0.000000e+00> : vector<16x128xf32>
    %45 = tpu.matmul %44, %4, %cst_23 {dimension_numbers = #tpu.dot_dimension_numbers<[1], [0], [0], [1], [0, 0, 1, 1], [], []>} : vector<16x32xbf16>, vector<32x128xbf16>, vector<16x128xf32> -> vector<16x128xf32>
    %46 = arith.addf %43, %45 : vector<16x128xf32>
    %47 = vector.broadcast %5 : vector<1x128xf32> to vector<16x128xf32>
    %48 = arith.addf %46, %47 : vector<16x128xf32>
    %cst_24 = arith.constant 5.000000e-01 : f32
    %49 = vector.broadcast %cst_24 : f32 to vector<16x128xf32>
    %50 = arith.mulf %49, %48 : vector<16x128xf32>
    %51 = arith.select %8, %50, %48 : vector<16x128xi1>, vector<16x128xf32>
    %52 = math.tanh %51 : vector<16x128xf32>
    %cst_25 = arith.constant 5.000000e-01 : f32
    %53 = vector.broadcast %cst_25 : f32 to vector<16x128xf32>
    %54 = arith.mulf %53, %52 : vector<16x128xf32>
    %cst_26 = arith.constant 5.000000e-01 : f32
    %55 = vector.broadcast %cst_26 : f32 to vector<16x128xf32>
    %56 = arith.addf %54, %55 : vector<16x128xf32>
    %57 = arith.select %8, %56, %52 : vector<16x128xi1>, vector<16x128xf32>
    %58 = vector.extract_strided_slice %57 {offsets = [0, 0], sizes = [16, 32], strides = [1, 1]} : vector<16x128xf32> to vector<16x32xf32>
    %59 = vector.extract_strided_slice %57 {offsets = [0, 32], sizes = [16, 32], strides = [1, 1]} : vector<16x128xf32> to vector<16x32xf32>
    %60 = vector.extract_strided_slice %57 {offsets = [0, 64], sizes = [16, 32], strides = [1, 1]} : vector<16x128xf32> to vector<16x32xf32>
    %61 = vector.extract_strided_slice %57 {offsets = [0, 96], sizes = [16, 32], strides = [1, 1]} : vector<16x128xf32> to vector<16x32xf32>
    %62 = arith.mulf %59, %34 : vector<16x32xf32>
    %63 = arith.mulf %58, %61 : vector<16x32xf32>
    %64 = arith.addf %62, %63 : vector<16x32xf32>
    %65 = math.tanh %64 : vector<16x32xf32>
    %66 = arith.mulf %60, %65 : vector<16x32xf32>
    %67 = arith.truncf %66 : vector<16x32xf32> to vector<16x32xbf16>
    %c1_27 = arith.constant 1 : index
    %c0_28 = arith.constant 0 : index
    %c0_29 = arith.constant 0 : index
    %68 = vector.load %arg6[%c1_27, %c0_28, %c0_29] : memref<8x16x32xbf16, #tpu.memory_space<vmem>>, vector<1x16x32xbf16>
    %69 = vector.shape_cast %68 : vector<1x16x32xbf16> to vector<16x32xbf16>
    %70 = vector.shape_cast %67 : vector<16x32xbf16> to vector<1x16x32xbf16>
    tpu.vector_store %arg6[%c1_27, %c0_28, %c0_29], %70 {strides = array<i32>} : memref<8x16x32xbf16, #tpu.memory_space<vmem>>, vector<1x16x32xbf16>,
    %c2 = arith.constant 2 : index
    %c0_30 = arith.constant 0 : index
    %c0_31 = arith.constant 0 : index
    %71 = vector.load %arg2[%c2, %c0_30, %c0_31] : memref<8x16x8xbf16, #tpu.memory_space<vmem>>, vector<1x16x8xbf16>
    %72 = vector.shape_cast %71 : vector<1x16x8xbf16> to vector<16x8xbf16>
    %cst_32 = arith.constant dense<0.000000e+00> : vector<16x128xf32>
    %73 = tpu.matmul %72, %3, %cst_32 {dimension_numbers = #tpu.dot_dimension_numbers<[1], [0], [0], [1], [0, 0, 1, 1], [], []>} : vector<16x8xbf16>, vector<8x128xbf16>, vector<16x128xf32> -> vector<16x128xf32>
    %74 = arith.truncf %66 : vector<16x32xf32> to vector<16x32xbf16>
    %cst_33 = arith.constant dense<0.000000e+00> : vector<16x128xf32>
    %75 = tpu.matmul %74, %4, %cst_33 {dimension_numbers = #tpu.dot_dimension_numbers<[1], [0], [0], [1], [0, 0, 1, 1], [], []>} : vector<16x32xbf16>, vector<32x128xbf16>, vector<16x128xf32> -> vector<16x128xf32>
    %76 = arith.addf %73, %75 : vector<16x128xf32>
    %77 = vector.broadcast %5 : vector<1x128xf32> to vector<16x128xf32>
    %78 = arith.addf %76, %77 : vector<16x128xf32>
    %cst_34 = arith.constant 5.000000e-01 : f32
    %79 = vector.broadcast %cst_34 : f32 to vector<16x128xf32>
    %80 = arith.mulf %79, %78 : vector<16x128xf32>
    %81 = arith.select %8, %80, %78 : vector<16x128xi1>, vector<16x128xf32>
    %82 = math.tanh %81 : vector<16x128xf32>
    %cst_35 = arith.constant 5.000000e-01 : f32
    %83 = vector.broadcast %cst_35 : f32 to vector<16x128xf32>
    %84 = arith.mulf %83, %82 : vector<16x128xf32>
    %cst_36 = arith.constant 5.000000e-01 : f32
    %85 = vector.broadcast %cst_36 : f32 to vector<16x128xf32>
    %86 = arith.addf %84, %85 : vector<16x128xf32>
    %87 = arith.select %8, %86, %82 : vector<16x128xi1>, vector<16x128xf32>
    %88 = vector.extract_strided_slice %87 {offsets = [0, 0], sizes = [16, 32], strides = [1, 1]} : vector<16x128xf32> to vector<16x32xf32>
    %89 = vector.extract_strided_slice %87 {offsets = [0, 32], sizes = [16, 32], strides = [1, 1]} : vector<16x128xf32> to vector<16x32xf32>
    %90 = vector.extract_strided_slice %87 {offsets = [0, 64], sizes = [16, 32], strides = [1, 1]} : vector<16x128xf32> to vector<16x32xf32>
    %91 = vector.extract_strided_slice %87 {offsets = [0, 96], sizes = [16, 32], strides = [1, 1]} : vector<16x128xf32> to vector<16x32xf32>
    %92 = arith.mulf %89, %64 : vector<16x32xf32>
    %93 = arith.mulf %88, %91 : vector<16x32xf32>
    %94 = arith.addf %92, %93 : vector<16x32xf32>
    %95 = math.tanh %94 : vector<16x32xf32>
    %96 = arith.mulf %90, %95 : vector<16x32xf32>
    %97 = arith.truncf %96 : vector<16x32xf32> to vector<16x32xbf16>
    %c2_37 = arith.constant 2 : index
    %c0_38 = arith.constant 0 : index
    %c0_39 = arith.constant 0 : index
    %98 = vector.load %arg6[%c2_37, %c0_38, %c0_39] : memref<8x16x32xbf16, #tpu.memory_space<vmem>>, vector<1x16x32xbf16>
    %99 = vector.shape_cast %98 : vector<1x16x32xbf16> to vector<16x32xbf16>
    %100 = vector.shape_cast %97 : vector<16x32xbf16> to vector<1x16x32xbf16>
    tpu.vector_store %arg6[%c2_37, %c0_38, %c0_39], %100 {strides = array<i32>} : memref<8x16x32xbf16, #tpu.memory_space<vmem>>, vector<1x16x32xbf16>,
    %c3 = arith.constant 3 : index
    %c0_40 = arith.constant 0 : index
    %c0_41 = arith.constant 0 : index
    %101 = vector.load %arg2[%c3, %c0_40, %c0_41] : memref<8x16x8xbf16, #tpu.memory_space<vmem>>, vector<1x16x8xbf16>
    %102 = vector.shape_cast %101 : vector<1x16x8xbf16> to vector<16x8xbf16>
    %cst_42 = arith.constant dense<0.000000e+00> : vector<16x128xf32>
    %103 = tpu.matmul %102, %3, %cst_42 {dimension_numbers = #tpu.dot_dimension_numbers<[1], [0], [0], [1], [0, 0, 1, 1], [], []>} : vector<16x8xbf16>, vector<8x128xbf16>, vector<16x128xf32> -> vector<16x128xf32>
    %104 = arith.truncf %96 : vector<16x32xf32> to vector<16x32xbf16>
    %cst_43 = arith.constant dense<0.000000e+00> : vector<16x128xf32>
    %105 = tpu.matmul %104, %4, %cst_43 {dimension_numbers = #tpu.dot_dimension_numbers<[1], [0], [0], [1], [0, 0, 1, 1], [], []>} : vector<16x32xbf16>, vector<32x128xbf16>, vector<16x128xf32> -> vector<16x128xf32>
    %106 = arith.addf %103, %105 : vector<16x128xf32>
    %107 = vector.broadcast %5 : vector<1x128xf32> to vector<16x128xf32>
    %108 = arith.addf %106, %107 : vector<16x128xf32>
    %cst_44 = arith.constant 5.000000e-01 : f32
    %109 = vector.broadcast %cst_44 : f32 to vector<16x128xf32>
    %110 = arith.mulf %109, %108 : vector<16x128xf32>
    %111 = arith.select %8, %110, %108 : vector<16x128xi1>, vector<16x128xf32>
    %112 = math.tanh %111 : vector<16x128xf32>
    %cst_45 = arith.constant 5.000000e-01 : f32
    %113 = vector.broadcast %cst_45 : f32 to vector<16x128xf32>
    %114 = arith.mulf %113, %112 : vector<16x128xf32>
    %cst_46 = arith.constant 5.000000e-01 : f32
    %115 = vector.broadcast %cst_46 : f32 to vector<16x128xf32>
    %116 = arith.addf %114, %115 : vector<16x128xf32>
    %117 = arith.select %8, %116, %112 : vector<16x128xi1>, vector<16x128xf32>
    %118 = vector.extract_strided_slice %117 {offsets = [0, 0], sizes = [16, 32], strides = [1, 1]} : vector<16x128xf32> to vector<16x32xf32>
    %119 = vector.extract_strided_slice %117 {offsets = [0, 32], sizes = [16, 32], strides = [1, 1]} : vector<16x128xf32> to vector<16x32xf32>
    %120 = vector.extract_strided_slice %117 {offsets = [0, 64], sizes = [16, 32], strides = [1, 1]} : vector<16x128xf32> to vector<16x32xf32>
    %121 = vector.extract_strided_slice %117 {offsets = [0, 96], sizes = [16, 32], strides = [1, 1]} : vector<16x128xf32> to vector<16x32xf32>
    %122 = arith.mulf %119, %94 : vector<16x32xf32>
    %123 = arith.mulf %118, %121 : vector<16x32xf32>
    %124 = arith.addf %122, %123 : vector<16x32xf32>
    %125 = math.tanh %124 : vector<16x32xf32>
    %126 = arith.mulf %120, %125 : vector<16x32xf32>
    %127 = arith.truncf %126 : vector<16x32xf32> to vector<16x32xbf16>
    %c3_47 = arith.constant 3 : index
    %c0_48 = arith.constant 0 : index
    %c0_49 = arith.constant 0 : index
    %128 = vector.load %arg6[%c3_47, %c0_48, %c0_49] : memref<8x16x32xbf16, #tpu.memory_space<vmem>>, vector<1x16x32xbf16>
    %129 = vector.shape_cast %128 : vector<1x16x32xbf16> to vector<16x32xbf16>
    %130 = vector.shape_cast %127 : vector<16x32xbf16> to vector<1x16x32xbf16>
    tpu.vector_store %arg6[%c3_47, %c0_48, %c0_49], %130 {strides = array<i32>} : memref<8x16x32xbf16, #tpu.memory_space<vmem>>, vector<1x16x32xbf16>,
    %c4 = arith.constant 4 : index
    %c0_50 = arith.constant 0 : index
    %c0_51 = arith.constant 0 : index
    %131 = vector.load %arg2[%c4, %c0_50, %c0_51] : memref<8x16x8xbf16, #tpu.memory_space<vmem>>, vector<1x16x8xbf16>
    %132 = vector.shape_cast %131 : vector<1x16x8xbf16> to vector<16x8xbf16>
    %cst_52 = arith.constant dense<0.000000e+00> : vector<16x128xf32>
    %133 = tpu.matmul %132, %3, %cst_52 {dimension_numbers = #tpu.dot_dimension_numbers<[1], [0], [0], [1], [0, 0, 1, 1], [], []>} : vector<16x8xbf16>, vector<8x128xbf16>, vector<16x128xf32> -> vector<16x128xf32>
    %134 = arith.truncf %126 : vector<16x32xf32> to vector<16x32xbf16>
    %cst_53 = arith.constant dense<0.000000e+00> : vector<16x128xf32>
    %135 = tpu.matmul %134, %4, %cst_53 {dimension_numbers = #tpu.dot_dimension_numbers<[1], [0], [0], [1], [0, 0, 1, 1], [], []>} : vector<16x32xbf16>, vector<32x128xbf16>, vector<16x128xf32> -> vector<16x128xf32>
    %136 = arith.addf %133, %135 : vector<16x128xf32>
    %137 = vector.broadcast %5 : vector<1x128xf32> to vector<16x128xf32>
    %138 = arith.addf %136, %137 : vector<16x128xf32>
    %cst_54 = arith.constant 5.000000e-01 : f32
    %139 = vector.broadcast %cst_54 : f32 to vector<16x128xf32>
    %140 = arith.mulf %139, %138 : vector<16x128xf32>
    %141 = arith.select %8, %140, %138 : vector<16x128xi1>, vector<16x128xf32>
    %142 = math.tanh %141 : vector<16x128xf32>
    %cst_55 = arith.constant 5.000000e-01 : f32
    %143 = vector.broadcast %cst_55 : f32 to vector<16x128xf32>
    %144 = arith.mulf %143, %142 : vector<16x128xf32>
    %cst_56 = arith.constant 5.000000e-01 : f32
    %145 = vector.broadcast %cst_56 : f32 to vector<16x128xf32>
    %146 = arith.addf %144, %145 : vector<16x128xf32>
    %147 = arith.select %8, %146, %142 : vector<16x128xi1>, vector<16x128xf32>
    %148 = vector.extract_strided_slice %147 {offsets = [0, 0], sizes = [16, 32], strides = [1, 1]} : vector<16x128xf32> to vector<16x32xf32>
    %149 = vector.extract_strided_slice %147 {offsets = [0, 32], sizes = [16, 32], strides = [1, 1]} : vector<16x128xf32> to vector<16x32xf32>
    %150 = vector.extract_strided_slice %147 {offsets = [0, 64], sizes = [16, 32], strides = [1, 1]} : vector<16x128xf32> to vector<16x32xf32>
    %151 = vector.extract_strided_slice %147 {offsets = [0, 96], sizes = [16, 32], strides = [1, 1]} : vector<16x128xf32> to vector<16x32xf32>
    %152 = arith.mulf %149, %124 : vector<16x32xf32>
    %153 = arith.mulf %148, %151 : vector<16x32xf32>
    %154 = arith.addf %152, %153 : vector<16x32xf32>
    %155 = math.tanh %154 : vector<16x32xf32>
    %156 = arith.mulf %150, %155 : vector<16x32xf32>
    %157 = arith.truncf %156 : vector<16x32xf32> to vector<16x32xbf16>
    %c4_57 = arith.constant 4 : index
    %c0_58 = arith.constant 0 : index
    %c0_59 = arith.constant 0 : index
    %158 = vector.load %arg6[%c4_57, %c0_58, %c0_59] : memref<8x16x32xbf16, #tpu.memory_space<vmem>>, vector<1x16x32xbf16>
    %159 = vector.shape_cast %158 : vector<1x16x32xbf16> to vector<16x32xbf16>
    %160 = vector.shape_cast %157 : vector<16x32xbf16> to vector<1x16x32xbf16>
    tpu.vector_store %arg6[%c4_57, %c0_58, %c0_59], %160 {strides = array<i32>} : memref<8x16x32xbf16, #tpu.memory_space<vmem>>, vector<1x16x32xbf16>,
    %c5 = arith.constant 5 : index
    %c0_60 = arith.constant 0 : index
    %c0_61 = arith.constant 0 : index
    %161 = vector.load %arg2[%c5, %c0_60, %c0_61] : memref<8x16x8xbf16, #tpu.memory_space<vmem>>, vector<1x16x8xbf16>
    %162 = vector.shape_cast %161 : vector<1x16x8xbf16> to vector<16x8xbf16>
    %cst_62 = arith.constant dense<0.000000e+00> : vector<16x128xf32>
    %163 = tpu.matmul %162, %3, %cst_62 {dimension_numbers = #tpu.dot_dimension_numbers<[1], [0], [0], [1], [0, 0, 1, 1], [], []>} : vector<16x8xbf16>, vector<8x128xbf16>, vector<16x128xf32> -> vector<16x128xf32>
    %164 = arith.truncf %156 : vector<16x32xf32> to vector<16x32xbf16>
    %cst_63 = arith.constant dense<0.000000e+00> : vector<16x128xf32>
    %165 = tpu.matmul %164, %4, %cst_63 {dimension_numbers = #tpu.dot_dimension_numbers<[1], [0], [0], [1], [0, 0, 1, 1], [], []>} : vector<16x32xbf16>, vector<32x128xbf16>, vector<16x128xf32> -> vector<16x128xf32>
    %166 = arith.addf %163, %165 : vector<16x128xf32>
    %167 = vector.broadcast %5 : vector<1x128xf32> to vector<16x128xf32>
    %168 = arith.addf %166, %167 : vector<16x128xf32>
    %cst_64 = arith.constant 5.000000e-01 : f32
    %169 = vector.broadcast %cst_64 : f32 to vector<16x128xf32>
    %170 = arith.mulf %169, %168 : vector<16x128xf32>
    %171 = arith.select %8, %170, %168 : vector<16x128xi1>, vector<16x128xf32>
    %172 = math.tanh %171 : vector<16x128xf32>
    %cst_65 = arith.constant 5.000000e-01 : f32
    %173 = vector.broadcast %cst_65 : f32 to vector<16x128xf32>
    %174 = arith.mulf %173, %172 : vector<16x128xf32>
    %cst_66 = arith.constant 5.000000e-01 : f32
    %175 = vector.broadcast %cst_66 : f32 to vector<16x128xf32>
    %176 = arith.addf %174, %175 : vector<16x128xf32>
    %177 = arith.select %8, %176, %172 : vector<16x128xi1>, vector<16x128xf32>
    %178 = vector.extract_strided_slice %177 {offsets = [0, 0], sizes = [16, 32], strides = [1, 1]} : vector<16x128xf32> to vector<16x32xf32>
    %179 = vector.extract_strided_slice %177 {offsets = [0, 32], sizes = [16, 32], strides = [1, 1]} : vector<16x128xf32> to vector<16x32xf32>
    %180 = vector.extract_strided_slice %177 {offsets = [0, 64], sizes = [16, 32], strides = [1, 1]} : vector<16x128xf32> to vector<16x32xf32>
    %181 = vector.extract_strided_slice %177 {offsets = [0, 96], sizes = [16, 32], strides = [1, 1]} : vector<16x128xf32> to vector<16x32xf32>
    %182 = arith.mulf %179, %154 : vector<16x32xf32>
    %183 = arith.mulf %178, %181 : vector<16x32xf32>
    %184 = arith.addf %182, %183 : vector<16x32xf32>
    %185 = math.tanh %184 : vector<16x32xf32>
    %186 = arith.mulf %180, %185 : vector<16x32xf32>
    %187 = arith.truncf %186 : vector<16x32xf32> to vector<16x32xbf16>
    %c5_67 = arith.constant 5 : index
    %c0_68 = arith.constant 0 : index
    %c0_69 = arith.constant 0 : index
    %188 = vector.load %arg6[%c5_67, %c0_68, %c0_69] : memref<8x16x32xbf16, #tpu.memory_space<vmem>>, vector<1x16x32xbf16>
    %189 = vector.shape_cast %188 : vector<1x16x32xbf16> to vector<16x32xbf16>
    %190 = vector.shape_cast %187 : vector<16x32xbf16> to vector<1x16x32xbf16>
    tpu.vector_store %arg6[%c5_67, %c0_68, %c0_69], %190 {strides = array<i32>} : memref<8x16x32xbf16, #tpu.memory_space<vmem>>, vector<1x16x32xbf16>,
    %c6 = arith.constant 6 : index
    %c0_70 = arith.constant 0 : index
    %c0_71 = arith.constant 0 : index
    %191 = vector.load %arg2[%c6, %c0_70, %c0_71] : memref<8x16x8xbf16, #tpu.memory_space<vmem>>, vector<1x16x8xbf16>
    %192 = vector.shape_cast %191 : vector<1x16x8xbf16> to vector<16x8xbf16>
    %cst_72 = arith.constant dense<0.000000e+00> : vector<16x128xf32>
    %193 = tpu.matmul %192, %3, %cst_72 {dimension_numbers = #tpu.dot_dimension_numbers<[1], [0], [0], [1], [0, 0, 1, 1], [], []>} : vector<16x8xbf16>, vector<8x128xbf16>, vector<16x128xf32> -> vector<16x128xf32>
    %194 = arith.truncf %186 : vector<16x32xf32> to vector<16x32xbf16>
    %cst_73 = arith.constant dense<0.000000e+00> : vector<16x128xf32>
    %195 = tpu.matmul %194, %4, %cst_73 {dimension_numbers = #tpu.dot_dimension_numbers<[1], [0], [0], [1], [0, 0, 1, 1], [], []>} : vector<16x32xbf16>, vector<32x128xbf16>, vector<16x128xf32> -> vector<16x128xf32>
    %196 = arith.addf %193, %195 : vector<16x128xf32>
    %197 = vector.broadcast %5 : vector<1x128xf32> to vector<16x128xf32>
    %198 = arith.addf %196, %197 : vector<16x128xf32>
    %cst_74 = arith.constant 5.000000e-01 : f32
    %199 = vector.broadcast %cst_74 : f32 to vector<16x128xf32>
    %200 = arith.mulf %199, %198 : vector<16x128xf32>
    %201 = arith.select %8, %200, %198 : vector<16x128xi1>, vector<16x128xf32>
    %202 = math.tanh %201 : vector<16x128xf32>
    %cst_75 = arith.constant 5.000000e-01 : f32
    %203 = vector.broadcast %cst_75 : f32 to vector<16x128xf32>
    %204 = arith.mulf %203, %202 : vector<16x128xf32>
    %cst_76 = arith.constant 5.000000e-01 : f32
    %205 = vector.broadcast %cst_76 : f32 to vector<16x128xf32>
    %206 = arith.addf %204, %205 : vector<16x128xf32>
    %207 = arith.select %8, %206, %202 : vector<16x128xi1>, vector<16x128xf32>
    %208 = vector.extract_strided_slice %207 {offsets = [0, 0], sizes = [16, 32], strides = [1, 1]} : vector<16x128xf32> to vector<16x32xf32>
    %209 = vector.extract_strided_slice %207 {offsets = [0, 32], sizes = [16, 32], strides = [1, 1]} : vector<16x128xf32> to vector<16x32xf32>
    %210 = vector.extract_strided_slice %207 {offsets = [0, 64], sizes = [16, 32], strides = [1, 1]} : vector<16x128xf32> to vector<16x32xf32>
    %211 = vector.extract_strided_slice %207 {offsets = [0, 96], sizes = [16, 32], strides = [1, 1]} : vector<16x128xf32> to vector<16x32xf32>
    %212 = arith.mulf %209, %184 : vector<16x32xf32>
    %213 = arith.mulf %208, %211 : vector<16x32xf32>
    %214 = arith.addf %212, %213 : vector<16x32xf32>
    %215 = math.tanh %214 : vector<16x32xf32>
    %216 = arith.mulf %210, %215 : vector<16x32xf32>
    %217 = arith.truncf %216 : vector<16x32xf32> to vector<16x32xbf16>
    %c6_77 = arith.constant 6 : index
    %c0_78 = arith.constant 0 : index
    %c0_79 = arith.constant 0 : index
    %218 = vector.load %arg6[%c6_77, %c0_78, %c0_79] : memref<8x16x32xbf16, #tpu.memory_space<vmem>>, vector<1x16x32xbf16>
    %219 = vector.shape_cast %218 : vector<1x16x32xbf16> to vector<16x32xbf16>
    %220 = vector.shape_cast %217 : vector<16x32xbf16> to vector<1x16x32xbf16>
    tpu.vector_store %arg6[%c6_77, %c0_78, %c0_79], %220 {strides = array<i32>} : memref<8x16x32xbf16, #tpu.memory_space<vmem>>, vector<1x16x32xbf16>,
    %c7 = arith.constant 7 : index
    %c0_80 = arith.constant 0 : index
    %c0_81 = arith.constant 0 : index
    %221 = vector.load %arg2[%c7, %c0_80, %c0_81] : memref<8x16x8xbf16, #tpu.memory_space<vmem>>, vector<1x16x8xbf16>
    %222 = vector.shape_cast %221 : vector<1x16x8xbf16> to vector<16x8xbf16>
    %cst_82 = arith.constant dense<0.000000e+00> : vector<16x128xf32>
    %223 = tpu.matmul %222, %3, %cst_82 {dimension_numbers = #tpu.dot_dimension_numbers<[1], [0], [0], [1], [0, 0, 1, 1], [], []>} : vector<16x8xbf16>, vector<8x128xbf16>, vector<16x128xf32> -> vector<16x128xf32>
    %224 = arith.truncf %216 : vector<16x32xf32> to vector<16x32xbf16>
    %cst_83 = arith.constant dense<0.000000e+00> : vector<16x128xf32>
    %225 = tpu.matmul %224, %4, %cst_83 {dimension_numbers = #tpu.dot_dimension_numbers<[1], [0], [0], [1], [0, 0, 1, 1], [], []>} : vector<16x32xbf16>, vector<32x128xbf16>, vector<16x128xf32> -> vector<16x128xf32>
    %226 = arith.addf %223, %225 : vector<16x128xf32>
    %227 = vector.broadcast %5 : vector<1x128xf32> to vector<16x128xf32>
    %228 = arith.addf %226, %227 : vector<16x128xf32>
    %cst_84 = arith.constant 5.000000e-01 : f32
    %229 = vector.broadcast %cst_84 : f32 to vector<16x128xf32>
    %230 = arith.mulf %229, %228 : vector<16x128xf32>
    %231 = arith.select %8, %230, %228 : vector<16x128xi1>, vector<16x128xf32>
    %232 = math.tanh %231 : vector<16x128xf32>
    %cst_85 = arith.constant 5.000000e-01 : f32
    %233 = vector.broadcast %cst_85 : f32 to vector<16x128xf32>
    %234 = arith.mulf %233, %232 : vector<16x128xf32>
    %cst_86 = arith.constant 5.000000e-01 : f32
    %235 = vector.broadcast %cst_86 : f32 to vector<16x128xf32>
    %236 = arith.addf %234, %235 : vector<16x128xf32>
    %237 = arith.select %8, %236, %232 : vector<16x128xi1>, vector<16x128xf32>
    %238 = vector.extract_strided_slice %237 {offsets = [0, 0], sizes = [16, 32], strides = [1, 1]} : vector<16x128xf32> to vector<16x32xf32>
    %239 = vector.extract_strided_slice %237 {offsets = [0, 32], sizes = [16, 32], strides = [1, 1]} : vector<16x128xf32> to vector<16x32xf32>
    %240 = vector.extract_strided_slice %237 {offsets = [0, 64], sizes = [16, 32], strides = [1, 1]} : vector<16x128xf32> to vector<16x32xf32>
    %241 = vector.extract_strided_slice %237 {offsets = [0, 96], sizes = [16, 32], strides = [1, 1]} : vector<16x128xf32> to vector<16x32xf32>
    %242 = arith.mulf %239, %214 : vector<16x32xf32>
    %243 = arith.mulf %238, %241 : vector<16x32xf32>
    %244 = arith.addf %242, %243 : vector<16x32xf32>
    %245 = math.tanh %244 : vector<16x32xf32>
    %246 = arith.mulf %240, %245 : vector<16x32xf32>
    %247 = arith.truncf %246 : vector<16x32xf32> to vector<16x32xbf16>
    %c7_87 = arith.constant 7 : index
    %c0_88 = arith.constant 0 : index
    %c0_89 = arith.constant 0 : index
    %248 = vector.load %arg6[%c7_87, %c0_88, %c0_89] : memref<8x16x32xbf16, #tpu.memory_space<vmem>>, vector<1x16x32xbf16>
    %249 = vector.shape_cast %248 : vector<1x16x32xbf16> to vector<16x32xbf16>
    %250 = vector.shape_cast %247 : vector<16x32xbf16> to vector<1x16x32xbf16>
    tpu.vector_store %arg6[%c7_87, %c0_88, %c0_89], %250 {strides = array<i32>} : memref<8x16x32xbf16, #tpu.memory_space<vmem>>, vector<1x16x32xbf16>,
    %c0_90 = arith.constant 0 : index
    %c0_91 = arith.constant 0 : index
    %251 = vector.load %arg7[%c0_90, %c0_91] : memref<16x32xf32, #tpu.memory_space<vmem>>, vector<16x32xf32>
    tpu.vector_store %arg7[%c0_90, %c0_91], %246 {strides = array<i32>} : memref<16x32xf32, #tpu.memory_space<vmem>>, vector<16x32xf32>,
    %c0_92 = arith.constant 0 : index
    %c0_93 = arith.constant 0 : index
    %252 = vector.load %arg8[%c0_92, %c0_93] : memref<16x32xf32, #tpu.memory_space<vmem>>, vector<16x32xf32>
    tpu.vector_store %arg8[%c0_92, %c0_93], %244 {strides = array<i32>} : memref<16x32xf32, #tpu.memory_space<vmem>>, vector<16x32xf32>,
    return
  }
  func.func @transform_0(%arg0: i32, %arg1: i32) -> (i32, i32, i32) {
    %c0_i32 = arith.constant 0 : i32
    %c0_i32_0 = arith.constant 0 : i32
    return %arg1, %arg0, %c0_i32 : i32, i32, i32
  }
  func.func @transform_1(%arg0: i32, %arg1: i32) -> (i32, i32) {
    %c0_i32 = arith.constant 0 : i32
    %c0_i32_0 = arith.constant 0 : i32
    %c0_i32_1 = arith.constant 0 : i32
    return %c0_i32, %c0_i32_0 : i32, i32
  }
  func.func @transform_2(%arg0: i32, %arg1: i32) -> (i32, i32) {
    %c0_i32 = arith.constant 0 : i32
    %c0_i32_0 = arith.constant 0 : i32
    %c0_i32_1 = arith.constant 0 : i32
    return %c0_i32, %c0_i32_0 : i32, i32
  }
  func.func @transform_3(%arg0: i32, %arg1: i32) -> (i32, i32) {
    %c0_i32 = arith.constant 0 : i32
    %c0_i32_0 = arith.constant 0 : i32
    %c0_i32_1 = arith.constant 0 : i32
    return %c0_i32, %c0_i32_0 : i32, i32
  }
  func.func @transform_4(%arg0: i32, %arg1: i32) -> (i32, i32, i32) {
    %c0_i32 = arith.constant 0 : i32
    %c0_i32_0 = arith.constant 0 : i32
    return %arg1, %arg0, %c0_i32 : i32, i32, i32
  }
}

module attributes {stable_mosaic.version = 11 : i64} {
  func.func @_lstm_layer_kernel(%arg0: i32, %arg1: i32, %arg2: memref<8x16x32xbf16, #tpu.memory_space<vmem>>, %arg3: memref<32x128xbf16, #tpu.memory_space<vmem>>, %arg4: memref<32x128xbf16, #tpu.memory_space<vmem>>, %arg5: memref<1x128xf32, #tpu.memory_space<vmem>>, %arg6: memref<1x16x32xf32, #tpu.memory_space<vmem>>, %arg7: memref<16x32xf32, #tpu.memory_space<vmem>>, %arg8: memref<16x32xf32, #tpu.memory_space<vmem>>) attributes {dimension_semantics = [#tpu.dimension_semantics<parallel>, #tpu.dimension_semantics<arbitrary>], iteration_bounds = array<i64: 1, 1>, scalar_prefetch = 0 : i64, scratch_operands = 2 : i64, tpu.core_type = #tpu.core_type<tc>, window_params = [{transform_indices = @transform_0, window_bounds = array<i64: 8, 16, 32>}, {pipeline_mode = #tpu.pipeline_mode<synchronous>, transform_indices = @transform_1, window_bounds = array<i64: 32, 128>}, {pipeline_mode = #tpu.pipeline_mode<synchronous>, transform_indices = @transform_2, window_bounds = array<i64: 32, 128>}, {pipeline_mode = #tpu.pipeline_mode<synchronous>, transform_indices = @transform_3, window_bounds = array<i64: 1, 128>}, {transform_indices = @transform_4, window_bounds = array<i64: 1, 16, 32>}]} {
    %c0_i32 = arith.constant 0 : i32
    %0 = arith.cmpi eq, %arg1, %c0_i32 : i32
    %1 = arith.extui %0 : i1 to i32
    %c0_i32_0 = arith.constant 0 : i32
    %2 = arith.cmpi ne, %1, %c0_i32_0 : i32
    scf.if %2 {
      %cst_73 = arith.constant 0.000000e+00 : f32
      %224 = vector.broadcast %cst_73 : f32 to vector<16x32xf32>
      %c0_74 = arith.constant 0 : index
      %c0_75 = arith.constant 0 : index
      %225 = vector.load %arg7[%c0_74, %c0_75] : memref<16x32xf32, #tpu.memory_space<vmem>>, vector<16x32xf32>
      tpu.vector_store %arg7[%c0_74, %c0_75], %224 {strides = array<i32>} : memref<16x32xf32, #tpu.memory_space<vmem>>, vector<16x32xf32>,
      %cst_76 = arith.constant 0.000000e+00 : f32
      %226 = vector.broadcast %cst_76 : f32 to vector<16x32xf32>
      %c0_77 = arith.constant 0 : index
      %c0_78 = arith.constant 0 : index
      %227 = vector.load %arg8[%c0_77, %c0_78] : memref<16x32xf32, #tpu.memory_space<vmem>>, vector<16x32xf32>
      tpu.vector_store %arg8[%c0_77, %c0_78], %226 {strides = array<i32>} : memref<16x32xf32, #tpu.memory_space<vmem>>, vector<16x32xf32>,
    } else {
    }
    %c0 = arith.constant 0 : index
    %c0_1 = arith.constant 0 : index
    %3 = vector.load %arg3[%c0, %c0_1] : memref<32x128xbf16, #tpu.memory_space<vmem>>, vector<32x128xbf16>
    %c0_2 = arith.constant 0 : index
    %c0_3 = arith.constant 0 : index
    %4 = vector.load %arg4[%c0_2, %c0_3] : memref<32x128xbf16, #tpu.memory_space<vmem>>, vector<32x128xbf16>
    %c0_4 = arith.constant 0 : index
    %c0_5 = arith.constant 0 : index
    %5 = vector.load %arg5[%c0_4, %c0_5] : memref<1x128xf32, #tpu.memory_space<vmem>>, vector<1x128xf32>
    %6 = tpu.iota {dimensions = array<i32: 1>} : vector<16x128xi32>
    %c96_i32 = arith.constant 96 : i32
    %7 = vector.broadcast %c96_i32 : i32 to vector<16x128xi32>
    %8 = arith.cmpi slt, %6, %7 : vector<16x128xi32>
    %c0_6 = arith.constant 0 : index
    %c0_7 = arith.constant 0 : index
    %9 = vector.load %arg7[%c0_6, %c0_7] : memref<16x32xf32, #tpu.memory_space<vmem>>, vector<16x32xf32>
    %c0_8 = arith.constant 0 : index
    %c0_9 = arith.constant 0 : index
    %10 = vector.load %arg8[%c0_8, %c0_9] : memref<16x32xf32, #tpu.memory_space<vmem>>, vector<16x32xf32>
    %c0_10 = arith.constant 0 : index
    %c0_11 = arith.constant 0 : index
    %c0_12 = arith.constant 0 : index
    %11 = vector.load %arg2[%c0_10, %c0_11, %c0_12] : memref<8x16x32xbf16, #tpu.memory_space<vmem>>, vector<1x16x32xbf16>
    %12 = vector.shape_cast %11 : vector<1x16x32xbf16> to vector<16x32xbf16>
    %cst = arith.constant dense<0.000000e+00> : vector<16x128xf32>
    %13 = tpu.matmul %12, %3, %cst {dimension_numbers = #tpu.dot_dimension_numbers<[1], [0], [0], [1], [0, 0, 1, 1], [], []>} : vector<16x32xbf16>, vector<32x128xbf16>, vector<16x128xf32> -> vector<16x128xf32>
    %14 = arith.truncf %9 : vector<16x32xf32> to vector<16x32xbf16>
    %cst_13 = arith.constant dense<0.000000e+00> : vector<16x128xf32>
    %15 = tpu.matmul %14, %4, %cst_13 {dimension_numbers = #tpu.dot_dimension_numbers<[1], [0], [0], [1], [0, 0, 1, 1], [], []>} : vector<16x32xbf16>, vector<32x128xbf16>, vector<16x128xf32> -> vector<16x128xf32>
    %16 = arith.addf %13, %15 : vector<16x128xf32>
    %17 = vector.broadcast %5 : vector<1x128xf32> to vector<16x128xf32>
    %18 = arith.addf %16, %17 : vector<16x128xf32>
    %cst_14 = arith.constant 5.000000e-01 : f32
    %19 = vector.broadcast %cst_14 : f32 to vector<16x128xf32>
    %20 = arith.mulf %19, %18 : vector<16x128xf32>
    %21 = arith.select %8, %20, %18 : vector<16x128xi1>, vector<16x128xf32>
    %22 = math.tanh %21 : vector<16x128xf32>
    %cst_15 = arith.constant 5.000000e-01 : f32
    %23 = vector.broadcast %cst_15 : f32 to vector<16x128xf32>
    %24 = arith.mulf %23, %22 : vector<16x128xf32>
    %cst_16 = arith.constant 5.000000e-01 : f32
    %25 = vector.broadcast %cst_16 : f32 to vector<16x128xf32>
    %26 = arith.addf %24, %25 : vector<16x128xf32>
    %27 = arith.select %8, %26, %22 : vector<16x128xi1>, vector<16x128xf32>
    %28 = vector.extract_strided_slice %27 {offsets = [0, 0], sizes = [16, 32], strides = [1, 1]} : vector<16x128xf32> to vector<16x32xf32>
    %29 = vector.extract_strided_slice %27 {offsets = [0, 32], sizes = [16, 32], strides = [1, 1]} : vector<16x128xf32> to vector<16x32xf32>
    %30 = vector.extract_strided_slice %27 {offsets = [0, 64], sizes = [16, 32], strides = [1, 1]} : vector<16x128xf32> to vector<16x32xf32>
    %31 = vector.extract_strided_slice %27 {offsets = [0, 96], sizes = [16, 32], strides = [1, 1]} : vector<16x128xf32> to vector<16x32xf32>
    %32 = arith.mulf %29, %10 : vector<16x32xf32>
    %33 = arith.mulf %28, %31 : vector<16x32xf32>
    %34 = arith.addf %32, %33 : vector<16x32xf32>
    %35 = math.tanh %34 : vector<16x32xf32>
    %36 = arith.mulf %30, %35 : vector<16x32xf32>
    %c1 = arith.constant 1 : index
    %c0_17 = arith.constant 0 : index
    %c0_18 = arith.constant 0 : index
    %37 = vector.load %arg2[%c1, %c0_17, %c0_18] : memref<8x16x32xbf16, #tpu.memory_space<vmem>>, vector<1x16x32xbf16>
    %38 = vector.shape_cast %37 : vector<1x16x32xbf16> to vector<16x32xbf16>
    %cst_19 = arith.constant dense<0.000000e+00> : vector<16x128xf32>
    %39 = tpu.matmul %38, %3, %cst_19 {dimension_numbers = #tpu.dot_dimension_numbers<[1], [0], [0], [1], [0, 0, 1, 1], [], []>} : vector<16x32xbf16>, vector<32x128xbf16>, vector<16x128xf32> -> vector<16x128xf32>
    %40 = arith.truncf %36 : vector<16x32xf32> to vector<16x32xbf16>
    %cst_20 = arith.constant dense<0.000000e+00> : vector<16x128xf32>
    %41 = tpu.matmul %40, %4, %cst_20 {dimension_numbers = #tpu.dot_dimension_numbers<[1], [0], [0], [1], [0, 0, 1, 1], [], []>} : vector<16x32xbf16>, vector<32x128xbf16>, vector<16x128xf32> -> vector<16x128xf32>
    %42 = arith.addf %39, %41 : vector<16x128xf32>
    %43 = vector.broadcast %5 : vector<1x128xf32> to vector<16x128xf32>
    %44 = arith.addf %42, %43 : vector<16x128xf32>
    %cst_21 = arith.constant 5.000000e-01 : f32
    %45 = vector.broadcast %cst_21 : f32 to vector<16x128xf32>
    %46 = arith.mulf %45, %44 : vector<16x128xf32>
    %47 = arith.select %8, %46, %44 : vector<16x128xi1>, vector<16x128xf32>
    %48 = math.tanh %47 : vector<16x128xf32>
    %cst_22 = arith.constant 5.000000e-01 : f32
    %49 = vector.broadcast %cst_22 : f32 to vector<16x128xf32>
    %50 = arith.mulf %49, %48 : vector<16x128xf32>
    %cst_23 = arith.constant 5.000000e-01 : f32
    %51 = vector.broadcast %cst_23 : f32 to vector<16x128xf32>
    %52 = arith.addf %50, %51 : vector<16x128xf32>
    %53 = arith.select %8, %52, %48 : vector<16x128xi1>, vector<16x128xf32>
    %54 = vector.extract_strided_slice %53 {offsets = [0, 0], sizes = [16, 32], strides = [1, 1]} : vector<16x128xf32> to vector<16x32xf32>
    %55 = vector.extract_strided_slice %53 {offsets = [0, 32], sizes = [16, 32], strides = [1, 1]} : vector<16x128xf32> to vector<16x32xf32>
    %56 = vector.extract_strided_slice %53 {offsets = [0, 64], sizes = [16, 32], strides = [1, 1]} : vector<16x128xf32> to vector<16x32xf32>
    %57 = vector.extract_strided_slice %53 {offsets = [0, 96], sizes = [16, 32], strides = [1, 1]} : vector<16x128xf32> to vector<16x32xf32>
    %58 = arith.mulf %55, %34 : vector<16x32xf32>
    %59 = arith.mulf %54, %57 : vector<16x32xf32>
    %60 = arith.addf %58, %59 : vector<16x32xf32>
    %61 = math.tanh %60 : vector<16x32xf32>
    %62 = arith.mulf %56, %61 : vector<16x32xf32>
    %c2 = arith.constant 2 : index
    %c0_24 = arith.constant 0 : index
    %c0_25 = arith.constant 0 : index
    %63 = vector.load %arg2[%c2, %c0_24, %c0_25] : memref<8x16x32xbf16, #tpu.memory_space<vmem>>, vector<1x16x32xbf16>
    %64 = vector.shape_cast %63 : vector<1x16x32xbf16> to vector<16x32xbf16>
    %cst_26 = arith.constant dense<0.000000e+00> : vector<16x128xf32>
    %65 = tpu.matmul %64, %3, %cst_26 {dimension_numbers = #tpu.dot_dimension_numbers<[1], [0], [0], [1], [0, 0, 1, 1], [], []>} : vector<16x32xbf16>, vector<32x128xbf16>, vector<16x128xf32> -> vector<16x128xf32>
    %66 = arith.truncf %62 : vector<16x32xf32> to vector<16x32xbf16>
    %cst_27 = arith.constant dense<0.000000e+00> : vector<16x128xf32>
    %67 = tpu.matmul %66, %4, %cst_27 {dimension_numbers = #tpu.dot_dimension_numbers<[1], [0], [0], [1], [0, 0, 1, 1], [], []>} : vector<16x32xbf16>, vector<32x128xbf16>, vector<16x128xf32> -> vector<16x128xf32>
    %68 = arith.addf %65, %67 : vector<16x128xf32>
    %69 = vector.broadcast %5 : vector<1x128xf32> to vector<16x128xf32>
    %70 = arith.addf %68, %69 : vector<16x128xf32>
    %cst_28 = arith.constant 5.000000e-01 : f32
    %71 = vector.broadcast %cst_28 : f32 to vector<16x128xf32>
    %72 = arith.mulf %71, %70 : vector<16x128xf32>
    %73 = arith.select %8, %72, %70 : vector<16x128xi1>, vector<16x128xf32>
    %74 = math.tanh %73 : vector<16x128xf32>
    %cst_29 = arith.constant 5.000000e-01 : f32
    %75 = vector.broadcast %cst_29 : f32 to vector<16x128xf32>
    %76 = arith.mulf %75, %74 : vector<16x128xf32>
    %cst_30 = arith.constant 5.000000e-01 : f32
    %77 = vector.broadcast %cst_30 : f32 to vector<16x128xf32>
    %78 = arith.addf %76, %77 : vector<16x128xf32>
    %79 = arith.select %8, %78, %74 : vector<16x128xi1>, vector<16x128xf32>
    %80 = vector.extract_strided_slice %79 {offsets = [0, 0], sizes = [16, 32], strides = [1, 1]} : vector<16x128xf32> to vector<16x32xf32>
    %81 = vector.extract_strided_slice %79 {offsets = [0, 32], sizes = [16, 32], strides = [1, 1]} : vector<16x128xf32> to vector<16x32xf32>
    %82 = vector.extract_strided_slice %79 {offsets = [0, 64], sizes = [16, 32], strides = [1, 1]} : vector<16x128xf32> to vector<16x32xf32>
    %83 = vector.extract_strided_slice %79 {offsets = [0, 96], sizes = [16, 32], strides = [1, 1]} : vector<16x128xf32> to vector<16x32xf32>
    %84 = arith.mulf %81, %60 : vector<16x32xf32>
    %85 = arith.mulf %80, %83 : vector<16x32xf32>
    %86 = arith.addf %84, %85 : vector<16x32xf32>
    %87 = math.tanh %86 : vector<16x32xf32>
    %88 = arith.mulf %82, %87 : vector<16x32xf32>
    %c3 = arith.constant 3 : index
    %c0_31 = arith.constant 0 : index
    %c0_32 = arith.constant 0 : index
    %89 = vector.load %arg2[%c3, %c0_31, %c0_32] : memref<8x16x32xbf16, #tpu.memory_space<vmem>>, vector<1x16x32xbf16>
    %90 = vector.shape_cast %89 : vector<1x16x32xbf16> to vector<16x32xbf16>
    %cst_33 = arith.constant dense<0.000000e+00> : vector<16x128xf32>
    %91 = tpu.matmul %90, %3, %cst_33 {dimension_numbers = #tpu.dot_dimension_numbers<[1], [0], [0], [1], [0, 0, 1, 1], [], []>} : vector<16x32xbf16>, vector<32x128xbf16>, vector<16x128xf32> -> vector<16x128xf32>
    %92 = arith.truncf %88 : vector<16x32xf32> to vector<16x32xbf16>
    %cst_34 = arith.constant dense<0.000000e+00> : vector<16x128xf32>
    %93 = tpu.matmul %92, %4, %cst_34 {dimension_numbers = #tpu.dot_dimension_numbers<[1], [0], [0], [1], [0, 0, 1, 1], [], []>} : vector<16x32xbf16>, vector<32x128xbf16>, vector<16x128xf32> -> vector<16x128xf32>
    %94 = arith.addf %91, %93 : vector<16x128xf32>
    %95 = vector.broadcast %5 : vector<1x128xf32> to vector<16x128xf32>
    %96 = arith.addf %94, %95 : vector<16x128xf32>
    %cst_35 = arith.constant 5.000000e-01 : f32
    %97 = vector.broadcast %cst_35 : f32 to vector<16x128xf32>
    %98 = arith.mulf %97, %96 : vector<16x128xf32>
    %99 = arith.select %8, %98, %96 : vector<16x128xi1>, vector<16x128xf32>
    %100 = math.tanh %99 : vector<16x128xf32>
    %cst_36 = arith.constant 5.000000e-01 : f32
    %101 = vector.broadcast %cst_36 : f32 to vector<16x128xf32>
    %102 = arith.mulf %101, %100 : vector<16x128xf32>
    %cst_37 = arith.constant 5.000000e-01 : f32
    %103 = vector.broadcast %cst_37 : f32 to vector<16x128xf32>
    %104 = arith.addf %102, %103 : vector<16x128xf32>
    %105 = arith.select %8, %104, %100 : vector<16x128xi1>, vector<16x128xf32>
    %106 = vector.extract_strided_slice %105 {offsets = [0, 0], sizes = [16, 32], strides = [1, 1]} : vector<16x128xf32> to vector<16x32xf32>
    %107 = vector.extract_strided_slice %105 {offsets = [0, 32], sizes = [16, 32], strides = [1, 1]} : vector<16x128xf32> to vector<16x32xf32>
    %108 = vector.extract_strided_slice %105 {offsets = [0, 64], sizes = [16, 32], strides = [1, 1]} : vector<16x128xf32> to vector<16x32xf32>
    %109 = vector.extract_strided_slice %105 {offsets = [0, 96], sizes = [16, 32], strides = [1, 1]} : vector<16x128xf32> to vector<16x32xf32>
    %110 = arith.mulf %107, %86 : vector<16x32xf32>
    %111 = arith.mulf %106, %109 : vector<16x32xf32>
    %112 = arith.addf %110, %111 : vector<16x32xf32>
    %113 = math.tanh %112 : vector<16x32xf32>
    %114 = arith.mulf %108, %113 : vector<16x32xf32>
    %c4 = arith.constant 4 : index
    %c0_38 = arith.constant 0 : index
    %c0_39 = arith.constant 0 : index
    %115 = vector.load %arg2[%c4, %c0_38, %c0_39] : memref<8x16x32xbf16, #tpu.memory_space<vmem>>, vector<1x16x32xbf16>
    %116 = vector.shape_cast %115 : vector<1x16x32xbf16> to vector<16x32xbf16>
    %cst_40 = arith.constant dense<0.000000e+00> : vector<16x128xf32>
    %117 = tpu.matmul %116, %3, %cst_40 {dimension_numbers = #tpu.dot_dimension_numbers<[1], [0], [0], [1], [0, 0, 1, 1], [], []>} : vector<16x32xbf16>, vector<32x128xbf16>, vector<16x128xf32> -> vector<16x128xf32>
    %118 = arith.truncf %114 : vector<16x32xf32> to vector<16x32xbf16>
    %cst_41 = arith.constant dense<0.000000e+00> : vector<16x128xf32>
    %119 = tpu.matmul %118, %4, %cst_41 {dimension_numbers = #tpu.dot_dimension_numbers<[1], [0], [0], [1], [0, 0, 1, 1], [], []>} : vector<16x32xbf16>, vector<32x128xbf16>, vector<16x128xf32> -> vector<16x128xf32>
    %120 = arith.addf %117, %119 : vector<16x128xf32>
    %121 = vector.broadcast %5 : vector<1x128xf32> to vector<16x128xf32>
    %122 = arith.addf %120, %121 : vector<16x128xf32>
    %cst_42 = arith.constant 5.000000e-01 : f32
    %123 = vector.broadcast %cst_42 : f32 to vector<16x128xf32>
    %124 = arith.mulf %123, %122 : vector<16x128xf32>
    %125 = arith.select %8, %124, %122 : vector<16x128xi1>, vector<16x128xf32>
    %126 = math.tanh %125 : vector<16x128xf32>
    %cst_43 = arith.constant 5.000000e-01 : f32
    %127 = vector.broadcast %cst_43 : f32 to vector<16x128xf32>
    %128 = arith.mulf %127, %126 : vector<16x128xf32>
    %cst_44 = arith.constant 5.000000e-01 : f32
    %129 = vector.broadcast %cst_44 : f32 to vector<16x128xf32>
    %130 = arith.addf %128, %129 : vector<16x128xf32>
    %131 = arith.select %8, %130, %126 : vector<16x128xi1>, vector<16x128xf32>
    %132 = vector.extract_strided_slice %131 {offsets = [0, 0], sizes = [16, 32], strides = [1, 1]} : vector<16x128xf32> to vector<16x32xf32>
    %133 = vector.extract_strided_slice %131 {offsets = [0, 32], sizes = [16, 32], strides = [1, 1]} : vector<16x128xf32> to vector<16x32xf32>
    %134 = vector.extract_strided_slice %131 {offsets = [0, 64], sizes = [16, 32], strides = [1, 1]} : vector<16x128xf32> to vector<16x32xf32>
    %135 = vector.extract_strided_slice %131 {offsets = [0, 96], sizes = [16, 32], strides = [1, 1]} : vector<16x128xf32> to vector<16x32xf32>
    %136 = arith.mulf %133, %112 : vector<16x32xf32>
    %137 = arith.mulf %132, %135 : vector<16x32xf32>
    %138 = arith.addf %136, %137 : vector<16x32xf32>
    %139 = math.tanh %138 : vector<16x32xf32>
    %140 = arith.mulf %134, %139 : vector<16x32xf32>
    %c5 = arith.constant 5 : index
    %c0_45 = arith.constant 0 : index
    %c0_46 = arith.constant 0 : index
    %141 = vector.load %arg2[%c5, %c0_45, %c0_46] : memref<8x16x32xbf16, #tpu.memory_space<vmem>>, vector<1x16x32xbf16>
    %142 = vector.shape_cast %141 : vector<1x16x32xbf16> to vector<16x32xbf16>
    %cst_47 = arith.constant dense<0.000000e+00> : vector<16x128xf32>
    %143 = tpu.matmul %142, %3, %cst_47 {dimension_numbers = #tpu.dot_dimension_numbers<[1], [0], [0], [1], [0, 0, 1, 1], [], []>} : vector<16x32xbf16>, vector<32x128xbf16>, vector<16x128xf32> -> vector<16x128xf32>
    %144 = arith.truncf %140 : vector<16x32xf32> to vector<16x32xbf16>
    %cst_48 = arith.constant dense<0.000000e+00> : vector<16x128xf32>
    %145 = tpu.matmul %144, %4, %cst_48 {dimension_numbers = #tpu.dot_dimension_numbers<[1], [0], [0], [1], [0, 0, 1, 1], [], []>} : vector<16x32xbf16>, vector<32x128xbf16>, vector<16x128xf32> -> vector<16x128xf32>
    %146 = arith.addf %143, %145 : vector<16x128xf32>
    %147 = vector.broadcast %5 : vector<1x128xf32> to vector<16x128xf32>
    %148 = arith.addf %146, %147 : vector<16x128xf32>
    %cst_49 = arith.constant 5.000000e-01 : f32
    %149 = vector.broadcast %cst_49 : f32 to vector<16x128xf32>
    %150 = arith.mulf %149, %148 : vector<16x128xf32>
    %151 = arith.select %8, %150, %148 : vector<16x128xi1>, vector<16x128xf32>
    %152 = math.tanh %151 : vector<16x128xf32>
    %cst_50 = arith.constant 5.000000e-01 : f32
    %153 = vector.broadcast %cst_50 : f32 to vector<16x128xf32>
    %154 = arith.mulf %153, %152 : vector<16x128xf32>
    %cst_51 = arith.constant 5.000000e-01 : f32
    %155 = vector.broadcast %cst_51 : f32 to vector<16x128xf32>
    %156 = arith.addf %154, %155 : vector<16x128xf32>
    %157 = arith.select %8, %156, %152 : vector<16x128xi1>, vector<16x128xf32>
    %158 = vector.extract_strided_slice %157 {offsets = [0, 0], sizes = [16, 32], strides = [1, 1]} : vector<16x128xf32> to vector<16x32xf32>
    %159 = vector.extract_strided_slice %157 {offsets = [0, 32], sizes = [16, 32], strides = [1, 1]} : vector<16x128xf32> to vector<16x32xf32>
    %160 = vector.extract_strided_slice %157 {offsets = [0, 64], sizes = [16, 32], strides = [1, 1]} : vector<16x128xf32> to vector<16x32xf32>
    %161 = vector.extract_strided_slice %157 {offsets = [0, 96], sizes = [16, 32], strides = [1, 1]} : vector<16x128xf32> to vector<16x32xf32>
    %162 = arith.mulf %159, %138 : vector<16x32xf32>
    %163 = arith.mulf %158, %161 : vector<16x32xf32>
    %164 = arith.addf %162, %163 : vector<16x32xf32>
    %165 = math.tanh %164 : vector<16x32xf32>
    %166 = arith.mulf %160, %165 : vector<16x32xf32>
    %c6 = arith.constant 6 : index
    %c0_52 = arith.constant 0 : index
    %c0_53 = arith.constant 0 : index
    %167 = vector.load %arg2[%c6, %c0_52, %c0_53] : memref<8x16x32xbf16, #tpu.memory_space<vmem>>, vector<1x16x32xbf16>
    %168 = vector.shape_cast %167 : vector<1x16x32xbf16> to vector<16x32xbf16>
    %cst_54 = arith.constant dense<0.000000e+00> : vector<16x128xf32>
    %169 = tpu.matmul %168, %3, %cst_54 {dimension_numbers = #tpu.dot_dimension_numbers<[1], [0], [0], [1], [0, 0, 1, 1], [], []>} : vector<16x32xbf16>, vector<32x128xbf16>, vector<16x128xf32> -> vector<16x128xf32>
    %170 = arith.truncf %166 : vector<16x32xf32> to vector<16x32xbf16>
    %cst_55 = arith.constant dense<0.000000e+00> : vector<16x128xf32>
    %171 = tpu.matmul %170, %4, %cst_55 {dimension_numbers = #tpu.dot_dimension_numbers<[1], [0], [0], [1], [0, 0, 1, 1], [], []>} : vector<16x32xbf16>, vector<32x128xbf16>, vector<16x128xf32> -> vector<16x128xf32>
    %172 = arith.addf %169, %171 : vector<16x128xf32>
    %173 = vector.broadcast %5 : vector<1x128xf32> to vector<16x128xf32>
    %174 = arith.addf %172, %173 : vector<16x128xf32>
    %cst_56 = arith.constant 5.000000e-01 : f32
    %175 = vector.broadcast %cst_56 : f32 to vector<16x128xf32>
    %176 = arith.mulf %175, %174 : vector<16x128xf32>
    %177 = arith.select %8, %176, %174 : vector<16x128xi1>, vector<16x128xf32>
    %178 = math.tanh %177 : vector<16x128xf32>
    %cst_57 = arith.constant 5.000000e-01 : f32
    %179 = vector.broadcast %cst_57 : f32 to vector<16x128xf32>
    %180 = arith.mulf %179, %178 : vector<16x128xf32>
    %cst_58 = arith.constant 5.000000e-01 : f32
    %181 = vector.broadcast %cst_58 : f32 to vector<16x128xf32>
    %182 = arith.addf %180, %181 : vector<16x128xf32>
    %183 = arith.select %8, %182, %178 : vector<16x128xi1>, vector<16x128xf32>
    %184 = vector.extract_strided_slice %183 {offsets = [0, 0], sizes = [16, 32], strides = [1, 1]} : vector<16x128xf32> to vector<16x32xf32>
    %185 = vector.extract_strided_slice %183 {offsets = [0, 32], sizes = [16, 32], strides = [1, 1]} : vector<16x128xf32> to vector<16x32xf32>
    %186 = vector.extract_strided_slice %183 {offsets = [0, 64], sizes = [16, 32], strides = [1, 1]} : vector<16x128xf32> to vector<16x32xf32>
    %187 = vector.extract_strided_slice %183 {offsets = [0, 96], sizes = [16, 32], strides = [1, 1]} : vector<16x128xf32> to vector<16x32xf32>
    %188 = arith.mulf %185, %164 : vector<16x32xf32>
    %189 = arith.mulf %184, %187 : vector<16x32xf32>
    %190 = arith.addf %188, %189 : vector<16x32xf32>
    %191 = math.tanh %190 : vector<16x32xf32>
    %192 = arith.mulf %186, %191 : vector<16x32xf32>
    %c7 = arith.constant 7 : index
    %c0_59 = arith.constant 0 : index
    %c0_60 = arith.constant 0 : index
    %193 = vector.load %arg2[%c7, %c0_59, %c0_60] : memref<8x16x32xbf16, #tpu.memory_space<vmem>>, vector<1x16x32xbf16>
    %194 = vector.shape_cast %193 : vector<1x16x32xbf16> to vector<16x32xbf16>
    %cst_61 = arith.constant dense<0.000000e+00> : vector<16x128xf32>
    %195 = tpu.matmul %194, %3, %cst_61 {dimension_numbers = #tpu.dot_dimension_numbers<[1], [0], [0], [1], [0, 0, 1, 1], [], []>} : vector<16x32xbf16>, vector<32x128xbf16>, vector<16x128xf32> -> vector<16x128xf32>
    %196 = arith.truncf %192 : vector<16x32xf32> to vector<16x32xbf16>
    %cst_62 = arith.constant dense<0.000000e+00> : vector<16x128xf32>
    %197 = tpu.matmul %196, %4, %cst_62 {dimension_numbers = #tpu.dot_dimension_numbers<[1], [0], [0], [1], [0, 0, 1, 1], [], []>} : vector<16x32xbf16>, vector<32x128xbf16>, vector<16x128xf32> -> vector<16x128xf32>
    %198 = arith.addf %195, %197 : vector<16x128xf32>
    %199 = vector.broadcast %5 : vector<1x128xf32> to vector<16x128xf32>
    %200 = arith.addf %198, %199 : vector<16x128xf32>
    %cst_63 = arith.constant 5.000000e-01 : f32
    %201 = vector.broadcast %cst_63 : f32 to vector<16x128xf32>
    %202 = arith.mulf %201, %200 : vector<16x128xf32>
    %203 = arith.select %8, %202, %200 : vector<16x128xi1>, vector<16x128xf32>
    %204 = math.tanh %203 : vector<16x128xf32>
    %cst_64 = arith.constant 5.000000e-01 : f32
    %205 = vector.broadcast %cst_64 : f32 to vector<16x128xf32>
    %206 = arith.mulf %205, %204 : vector<16x128xf32>
    %cst_65 = arith.constant 5.000000e-01 : f32
    %207 = vector.broadcast %cst_65 : f32 to vector<16x128xf32>
    %208 = arith.addf %206, %207 : vector<16x128xf32>
    %209 = arith.select %8, %208, %204 : vector<16x128xi1>, vector<16x128xf32>
    %210 = vector.extract_strided_slice %209 {offsets = [0, 0], sizes = [16, 32], strides = [1, 1]} : vector<16x128xf32> to vector<16x32xf32>
    %211 = vector.extract_strided_slice %209 {offsets = [0, 32], sizes = [16, 32], strides = [1, 1]} : vector<16x128xf32> to vector<16x32xf32>
    %212 = vector.extract_strided_slice %209 {offsets = [0, 64], sizes = [16, 32], strides = [1, 1]} : vector<16x128xf32> to vector<16x32xf32>
    %213 = vector.extract_strided_slice %209 {offsets = [0, 96], sizes = [16, 32], strides = [1, 1]} : vector<16x128xf32> to vector<16x32xf32>
    %214 = arith.mulf %211, %190 : vector<16x32xf32>
    %215 = arith.mulf %210, %213 : vector<16x32xf32>
    %216 = arith.addf %214, %215 : vector<16x32xf32>
    %217 = math.tanh %216 : vector<16x32xf32>
    %218 = arith.mulf %212, %217 : vector<16x32xf32>
    %c0_66 = arith.constant 0 : index
    %c0_67 = arith.constant 0 : index
    %219 = vector.load %arg7[%c0_66, %c0_67] : memref<16x32xf32, #tpu.memory_space<vmem>>, vector<16x32xf32>
    tpu.vector_store %arg7[%c0_66, %c0_67], %218 {strides = array<i32>} : memref<16x32xf32, #tpu.memory_space<vmem>>, vector<16x32xf32>,
    %c0_68 = arith.constant 0 : index
    %c0_69 = arith.constant 0 : index
    %220 = vector.load %arg8[%c0_68, %c0_69] : memref<16x32xf32, #tpu.memory_space<vmem>>, vector<16x32xf32>
    tpu.vector_store %arg8[%c0_68, %c0_69], %216 {strides = array<i32>} : memref<16x32xf32, #tpu.memory_space<vmem>>, vector<16x32xf32>,
    %c0_70 = arith.constant 0 : index
    %c0_71 = arith.constant 0 : index
    %c0_72 = arith.constant 0 : index
    %221 = vector.load %arg6[%c0_70, %c0_71, %c0_72] : memref<1x16x32xf32, #tpu.memory_space<vmem>>, vector<1x16x32xf32>
    %222 = vector.shape_cast %221 : vector<1x16x32xf32> to vector<16x32xf32>
    %223 = vector.shape_cast %218 : vector<16x32xf32> to vector<1x16x32xf32>
    tpu.vector_store %arg6[%c0_70, %c0_71, %c0_72], %223 {strides = array<i32>} : memref<1x16x32xf32, #tpu.memory_space<vmem>>, vector<1x16x32xf32>,
    return
  }
  func.func @transform_0(%arg0: i32, %arg1: i32) -> (i32, i32, i32) {
    %c0_i32 = arith.constant 0 : i32
    %c0_i32_0 = arith.constant 0 : i32
    return %arg1, %arg0, %c0_i32 : i32, i32, i32
  }
  func.func @transform_1(%arg0: i32, %arg1: i32) -> (i32, i32) {
    %c0_i32 = arith.constant 0 : i32
    %c0_i32_0 = arith.constant 0 : i32
    %c0_i32_1 = arith.constant 0 : i32
    return %c0_i32, %c0_i32_0 : i32, i32
  }
  func.func @transform_2(%arg0: i32, %arg1: i32) -> (i32, i32) {
    %c0_i32 = arith.constant 0 : i32
    %c0_i32_0 = arith.constant 0 : i32
    %c0_i32_1 = arith.constant 0 : i32
    return %c0_i32, %c0_i32_0 : i32, i32
  }
  func.func @transform_3(%arg0: i32, %arg1: i32) -> (i32, i32) {
    %c0_i32 = arith.constant 0 : i32
    %c0_i32_0 = arith.constant 0 : i32
    %c0_i32_1 = arith.constant 0 : i32
    return %c0_i32, %c0_i32_0 : i32, i32
  }
  func.func @transform_4(%arg0: i32, %arg1: i32) -> (i32, i32, i32) {
    %c0_i32 = arith.constant 0 : i32
    %c0_i32_0 = arith.constant 0 : i32
    %c0_i32_1 = arith.constant 0 : i32
    return %c0_i32, %arg0, %c0_i32_0 : i32, i32, i32
  }
}

</mosaic_0001>

<bundles_post_ra>
// kernel: build_lstm_forward.2
= control target key start
LH: loop header
LB: loop body
LE: loop exit
PB: predicated region body
PF: predicated region fallthrough
CT: control target
= control target key end

     0   :  { %vm109_vm0 = vcmask 1043456   ;;  %vm105_vm1 = vcmask 64512   ;;  %v1700_v0 = vmov 0.0   ;;  %vm22_vm2 = vcmask 261120   ;;  %s1703_s25 = smov 64   ;;  %s2179_s2 = inlined_call_operand.vmem [shape: bf16[32,128], index: 2, kind: input, shape index: {}]   ;;  %s2180_s1 = inlined_call_operand.vmem [shape: bf16[8,128], index: 1, kind: input, shape index: {}]   ;;  %s2181_s0 = inlined_call_operand.vmem [shape: bf16[8,16,8], index: 0, kind: input, shape index: {}]   ;;  %s2182_s3 = inlined_call_operand.vmem [shape: f32[1,128], index: 3, kind: input, shape index: {}]   ;;  %s2183_s4 = inlined_call_operand.vmem [shape: bf16[8,16,32], index: 4, kind: output, shape index: {}]  }
   0x1   :  { %1509 = vmatprep.subr.bf16.mxu0 %v1700_v0  ;;  %v1734_v1 = vld [vmem:[%s2179_s2] sm:$0xff]   ;;  %1517 = vmatprep.subr.bf16.mxu1 %v1700_v0  ;;  %vm1701_vm3 = vmmov 0   ;;  %23 = vst.msk [vmem:[#allocation2] sm:$0xff] %vm22_vm2, %v1700_v0  ;;  %24 = vst.msk [vmem:[#allocation2 + $0x8] sm:$0xff] %vm22_vm2, %v1700_v0  ;;  %v1759_v4 = vld [vmem:[%s2179_s2 + $0x8] sm:$0xff]   ;;  %s1702_s2 = smov 32   ;;  %v33_v13 = vlaneseq }
   0x2   :  { %v27_v2 = vld [vmem:[%s2180_s1] sm:$0xf]  ;;  %1519 = vmatprep.mubr.msk.bf16.mxu1 %vm1701_vm3, %v1700_v0  ;;  %1513 = vmatprep.mubr.msk.bf16.mxu0 %vm1701_vm3, %v1700_v0  ;;  %25 = vst.msk [vmem:[#allocation3] sm:$0xff] %vm22_vm2, %v1700_v0  ;;  %26 = vst.msk [vmem:[#allocation3 + $0x8] sm:$0xff] %vm22_vm2, %v1700_v0  ;;  %v1629_v50 = vld [vmem:[%s2181_s0 + $0x8] sm:$0xff]   ;;  %vm228_vm5 = vcmask 257024  }
   0x3   :  { %1510 = vmatpush3.bf16.msra.mxu0 %v1734_v1  ;;  %v1754_v3 = vsel %vm109_vm0, %v27_v2, 0  ;;  %v1628_v5 = vld [vmem:[%s2181_s0] sm:$0xff]   ;;  %v1788_v17 = vand.u32 127, %v33_v13  ;;  %s1704_s1 = smov 96  }
   0x4   :  { %1518 = vmatpush3.bf16.msra.mxu1 %v1754_v3  ;;  %1511 = vmatprep.subr.bf16.mxu0 %v1700_v0  ;;  %v1786_v16 = vld [vmem:[%s2182_s3] ss:$0 sm:$0xff] }
   0x5   :  { %1523 = vmatprep.subr.bf16.mxu1 %v1700_v0  ;;  %vm35_vm4 = vcmp.lt.s32.totalorder %v1788_v17, 96 }
   0x7   :  { %1512 = vmatpush3.bf16.msra.mxu0 %v1759_v4  ;;  %1520 = vmatmul.mubr.msk.bf16.vlgmr.msra.gmra.mrb[0].mxu1 %vm105_vm1, %v1628_v5 }
   0x8   :  { %1531 = vmatprep.subr.bf16.mxu0 %v1700_v0  ;;  %1524 = vmatpush3.bf16.msra.mxu1 %v1734_v1  ;;  %v36_v6 = vld [vmem:[#allocation2] sm:$0xff]  ;;  %v37_v7 = vld [vmem:[#allocation2 + $0x8] sm:$0xff] }
   0x9   :  { %v38_v8 = vld [vmem:[#allocation3] sm:$0xff]  ;;  %1525 = vmatprep.subr.bf16.mxu1 %v1700_v0  ;;  %1527 = vmatprep.mubr.msk.bf16.mxu1 %vm1701_vm3, %v1700_v0  ;;  %v42_v9 = vpack.c.bf16 %v37_v7, %v36_v6  ;;  %v39_v10 = vld [vmem:[#allocation3 + $0x8] sm:$0xff] }
   0xa   :  { %176 = vrot.lane.b32.xlu1 %v38_v8, %s1702_s2 }
   0xb   :  { %1514 = vmatmul.mubr.msk.bf16.vlgmr.msra.gmra.mrb[0].mxu0 %vm22_vm2, %v42_v9 }
   0xc   :  { %1526 = vmatpush3.bf16.msra.mxu1 %v1759_v4  ;;  %1532 = vmatpush3.bf16.msra.mxu0 %v1754_v3 }
   0xd   :  { %1533 = vmatprep.mubr.msk.bf16.mxu0 %vm1701_vm3, %v1700_v0  ;;  %1537 = vmatprep.subr.bf16.mxu1 %v1700_v0 }
   0xe   :  { %178 = vrot.lane.b32.xlu1 %v39_v10, %s1702_s2  ;;  %1545 = vmatprep.subr.bf16.mxu0 %v1700_v0 }
  0x13   :  { %1534 = vmatmul.mubr.msk.bf16.vlgmr.msra.gmra.mrb[4].mxu0 %vm105_vm1, %v1629_v50 }
  0x14   :  { %1546 = vmatpush3.bf16.msra.mxu0 %v1754_v3  ;;  %1547 = vmatprep.mubr.msk.bf16.mxu0 %vm1701_vm3, %v1700_v0 }
  0x15   :  { %1559 = vmatprep.subr.bf16.mxu0 %v1700_v0 }
  0x7c   :  { %v177_v42 = vpop.permute.xlu1 %176 }
  0x80   :  { %v179_v44 = vpop.permute.xlu1 %178 }
  0xda   :  { %v147_v11 = vpop.f32.mrb[0].mxu1 }
  0xdb   :  { %v1521_v12 = vpop.f32.mrb[1].mxu1 }
  0xdc   :  { %v150_v14 = vpop.f32.mrb[2].mxu1 }
  0xdd   :  { %v1522_v15 = vpop.f32.mrb[3].mxu1 }
  0xde   :  { %v93_v18 = vpop.f32.mrb[0].mxu0 }
  0xdf   :  { %v148_v19 = vadd.f32 %v147_v11, %v93_v18  ;;  %v1515_v20 = vpop.f32.mrb[1].mxu0 }
  0xe0   :  { %v96_v21 = vpop.f32.mrb[2].mxu0 }
  0xe1   :  { %v160_v22 = vadd.f32 %v1786_v16, %v148_v19  ;;  %v151_v23 = vadd.f32 %v150_v14, %v96_v21  ;;  %v1516_v24 = vpop.f32.mrb[3].mxu0 }
  0xe3   :  { %v162_v25 = vmul.f32 0.5, %v160_v22  ;;  %v161_v26 = vadd.f32 %v1786_v16, %v151_v23 }
  0xe5   :  { %v164_v27 = vsel %vm35_vm4, %v162_v25, %v160_v22  ;;  %v163_v28 = vmul.f32 0.5, %v161_v26 }
  0xe6   :  { %1636 = vtanh.f32 %v164_v27  ;;  %v322_v58 = vpop.f32.mrb[4].mxu0 }
  0xe7   :  { %v165_v29 = vsel %vm35_vm4, %v163_v28, %v161_v26  ;;  %v1535_v59 = vpop.f32.mrb[5].mxu0 }
  0xe8   :  { %1638 = vtanh.f32 %v165_v29  ;;  %v325_v60 = vpop.f32.mrb[6].mxu0 }
  0xe9   :  { %v1536_v61 = vpop.f32.mrb[7].mxu0 }
  0xf0   :  { %v1637_v30 = vpop.eup %1636 }
  0xf1   :  { %v168_v31 = vmul.f32 0.5, %v1637_v30 }
  0xf2   :  { %v1639_v32 = vpop.eup %1638 }
  0xf3   :  { %v170_v33 = vadd.f32 0.5, %v168_v31  ;;  %v169_v34 = vmul.f32 0.5, %v1639_v32 }
  0xf5   :  { %v172_v35 = vsel %vm35_vm4, %v170_v33, %v1637_v30  ;;  %v171_v36 = vadd.f32 0.5, %v169_v34 }
  0xf6   :  { %186 = vrot.lane.b32.xlu0 %v172_v35, %s1702_s2  ;;  %v182_v43 = vmul.f32 %v177_v42, %v172_v35 }
  0xf7   :  { %v173_v37 = vsel %vm35_vm4, %v171_v36, %v1639_v32 }
  0xf8   :  { %v183_v47 = vmul.f32 %v179_v44, %v173_v37 }
  0xfa   :  { %188 = vrot.lane.b32.xlu0 %v173_v37, %s1702_s2 }
 0x168   :  { %v187_v38 = vpop.permute.xlu0 %186 }
 0x169   :  { %v192_v39 = vmul.f32 %v187_v38, %v172_v35 }
 0x16b   :  { %196 = vrot.lane.b32.xlu0 %v192_v39, %s1702_s2 }
 0x16c   :  { %v189_v40 = vpop.permute.xlu0 %188 }
 0x16d   :  { %v193_v41 = vmul.f32 %v189_v40, %v173_v37 }
 0x16f   :  { %198 = vrot.lane.b32.xlu1 %v193_v41, %s1702_s2 }
 0x1dd   :  { %v197_v45 = vpop.permute.xlu0 %196 }
 0x1de   :  { %v1805_v46 = vadd.f32 %v197_v45, %v182_v43 }
 0x1e0   :  { %1640 = vtanh.f32 %v1805_v46 }
 0x1e1   :  { %v199_v48 = vpop.permute.xlu1 %198 }
 0x1e2   :  { %v203_v49 = vadd.f32 %v199_v48, %v183_v47 }
 0x1e4   :  { %1642 = vtanh.f32 %v203_v49 }
 0x1ea   :  { %v1641_v51 = vpop.eup %1640 }
 0x1eb   :  { %208 = vrot.lane.b32.xlu0 %v1641_v51, %s1702_s2 }
 0x1ee   :  { %v1643_v52 = vpop.eup %1642 }
 0x1ef   :  { %210 = vrot.lane.b32.xlu1 %v1643_v52, %s1702_s2 }
 0x25d   :  { %v209_v53 = vpop.permute.xlu0 %208 }
 0x25e   :  { %v1818_v55 = vmul.f32 %v209_v53, %v172_v35  ;;  %v1630_v35 = vld [vmem:[%s2181_s0 + $0x10] sm:$0xff]  }
 0x25f   :  { %1548 = vmatmul.mubr.msk.bf16.vlgmr.msra.gmra.mrb[8].mxu0 %vm105_vm1, %v1630_v35 }
 0x260   :  { %1560 = vmatpush3.bf16.msra.mxu0 %v1754_v3  ;;  %1561 = vmatprep.mubr.msk.bf16.mxu0 %vm1701_vm3, %v1700_v0 }
 0x261   :  { %v211_v54 = vpop.permute.xlu1 %210  ;;  %1573 = vmatprep.subr.bf16.mxu0 %v1700_v0 }
 0x262   :  { %v1820_v56 = vmul.f32 %v211_v54, %v173_v37 }
 0x264   :  { %v216_v57 = vpack.c.bf16 %v1820_v56, %v1818_v55 }
 0x266   :  { %234 = vrot.lane.b32.xlu0 %v216_v57, %s1703_s25 }
 0x2d8   :  { %v235_v62 = vpop.permute.xlu0 %234 }
 0x2d9   :  { %1528 = vmatmul.mubr.msk.bf16.vlgmr.msra.gmra.mrb[4].mxu1 %vm22_vm2, %v235_v62 }
 0x2da   :  { %1538 = vmatpush3.bf16.msra.mxu1 %v1734_v1  ;;  %1541 = vmatprep.mubr.msk.bf16.mxu1 %vm1701_vm3, %v1700_v0 }
 0x2db   :  { %1539 = vmatprep.subr.bf16.mxu1 %v1700_v0 }
 0x2de   :  { %1540 = vmatpush3.bf16.msra.mxu1 %v1759_v4 }
 0x2df   :  { %1551 = vmatprep.subr.bf16.mxu1 %v1700_v0 }
 0x332   :  { %v483_v43 = vpop.f32.mrb[8].mxu0 }
 0x333   :  { %v1549_v44 = vpop.f32.mrb[9].mxu0 }
 0x334   :  { %v486_v45 = vpop.f32.mrb[10].mxu0 }
 0x3ac   :  { %v273_v63 = vpop.f32.mrb[4].mxu1 }
 0x3ad   :  { %v323_v2 = vadd.f32 %v322_v58, %v273_v63  ;;  %v1529_v5 = vpop.f32.mrb[5].mxu1 }
 0x3ae   :  { %v276_v6 = vpop.f32.mrb[6].mxu1 }
 0x3af   :  { %v329_v7 = vadd.f32 %v1786_v16, %v323_v2  ;;  %v326_v8 = vadd.f32 %v325_v60, %v276_v6  ;;  %v1530_v9 = vpop.f32.mrb[7].mxu1 }
 0x3b1   :  { %v331_v10 = vmul.f32 0.5, %v329_v7  ;;  %v330_v11 = vadd.f32 %v1786_v16, %v326_v8 }
 0x3b3   :  { %v333_v12 = vsel %vm35_vm4, %v331_v10, %v329_v7  ;;  %v332_v13 = vmul.f32 0.5, %v330_v11 }
 0x3b4   :  { %1644 = vtanh.f32 %v333_v12 }
 0x3b5   :  { %v334_v14 = vsel %vm35_vm4, %v332_v13, %v330_v11 }
 0x3b6   :  { %1646 = vtanh.f32 %v334_v14 }
 0x3be   :  { %v1645_v15 = vpop.eup %1644 }
 0x3bf   :  { %v337_v18 = vmul.f32 0.5, %v1645_v15 }
 0x3c0   :  { %v1647_v19 = vpop.eup %1646 }
 0x3c1   :  { %v339_v20 = vadd.f32 0.5, %v337_v18  ;;  %v338_v21 = vmul.f32 0.5, %v1647_v19 }
 0x3c3   :  { %v341_v22 = vsel %vm35_vm4, %v339_v20, %v1645_v15  ;;  %v340_v23 = vadd.f32 0.5, %v338_v21 }
 0x3c4   :  { %347 = vrot.lane.b32.xlu1 %v341_v22, %s1702_s2  ;;  %v343_v29 = vmul.f32 %v341_v22, %v1805_v46  ;;  %v1550_v46 = vpop.f32.mrb[11].mxu0 }
 0x3c5   :  { %v342_v24 = vsel %vm35_vm4, %v340_v23, %v1647_v19 }
 0x3c6   :  { %349 = vrot.lane.b32.xlu0 %v342_v24, %s1702_s2  ;;  %v344_v32 = vmul.f32 %v342_v24, %v203_v49 }
 0x436   :  { %v348_v25 = vpop.permute.xlu1 %347 }
 0x437   :  { %v353_v26 = vmul.f32 %v348_v25, %v341_v22 }
 0x438   :  { %v350_v27 = vpop.permute.xlu0 %349 }
 0x439   :  { %v354_v28 = vmul.f32 %v350_v27, %v342_v24  ;;  %357 = vrot.lane.b32.xlu1 %v353_v26, %s1702_s2 }
 0x43b   :  { %359 = vrot.lane.b32.xlu0 %v354_v28, %s1702_s2 }
 0x4ab   :  { %v358_v30 = vpop.permute.xlu1 %357 }
 0x4ac   :  { %v363_v31 = vadd.f32 %v358_v30, %v343_v29 }
 0x4ad   :  { %v360_v33 = vpop.permute.xlu0 %359 }
 0x4ae   :  { %1648 = vtanh.f32 %v363_v31  ;;  %v364_v34 = vadd.f32 %v360_v33, %v344_v32 }
 0x4b0   :  { %1650 = vtanh.f32 %v364_v34 }
 0x4b8   :  { %v1649_v36 = vpop.eup %1648 }
 0x4b9   :  { %369 = vrot.lane.b32.xlu1 %v1649_v36, %s1702_s2 }
 0x4ba   :  { %v1651_v37 = vpop.eup %1650 }
 0x4bb   :  { %371 = vrot.lane.b32.xlu0 %v1651_v37, %s1702_s2 }
 0x52b   :  { %v370_v38 = vpop.permute.xlu1 %369 }
 0x52c   :  { %v1857_v40 = vmul.f32 %v370_v38, %v341_v22  ;;  %v1631_v22 = vld [vmem:[%s2181_s0 + $0x18] sm:$0xff]  }
 0x52d   :  { %v372_v39 = vpop.permute.xlu0 %371  ;;  %1562 = vmatmul.mubr.msk.bf16.vlgmr.msra.gmra.mrb[12].mxu0 %vm105_vm1, %v1631_v22 }
 0x52e   :  { %v1859_v41 = vmul.f32 %v372_v39, %v342_v24  ;;  %1574 = vmatpush3.bf16.msra.mxu0 %v1754_v3  ;;  %1575 = vmatprep.mubr.msk.bf16.mxu0 %vm1701_vm3, %v1700_v0 }
 0x52f   :  { %1587 = vmatprep.subr.bf16.mxu0 %v1700_v0 }
 0x530   :  { %v377_v42 = vpack.c.bf16 %v1859_v41, %v1857_v40 }
 0x532   :  { %395 = vrot.lane.b32.xlu1 %v377_v42, %s1703_s25 }
 0x5a4   :  { %v396_v47 = vpop.permute.xlu1 %395 }
 0x5a5   :  { %1542 = vmatmul.mubr.msk.bf16.vlgmr.msra.gmra.mrb[8].mxu1 %vm22_vm2, %v396_v47 }
 0x5a6   :  { %1552 = vmatpush3.bf16.msra.mxu1 %v1734_v1  ;;  %1555 = vmatprep.mubr.msk.bf16.mxu1 %vm1701_vm3, %v1700_v0 }
 0x5a7   :  { %1553 = vmatprep.subr.bf16.mxu1 %v1700_v0 }
 0x5aa   :  { %1554 = vmatpush3.bf16.msra.mxu1 %v1759_v4 }
 0x5ab   :  { %1565 = vmatprep.subr.bf16.mxu1 %v1700_v0 }
 0x600   :  { %v644_v30 = vpop.f32.mrb[12].mxu0 }
 0x678   :  { %v434_v48 = vpop.f32.mrb[8].mxu1 }
 0x679   :  { %v484_v49 = vadd.f32 %v483_v43, %v434_v48  ;;  %v1543_v50 = vpop.f32.mrb[9].mxu1 }
 0x67a   :  { %v437_v51 = vpop.f32.mrb[10].mxu1 }
 0x67b   :  { %v490_v52 = vadd.f32 %v1786_v16, %v484_v49  ;;  %v487_v53 = vadd.f32 %v486_v45, %v437_v51  ;;  %v1544_v54 = vpop.f32.mrb[11].mxu1 }
 0x67d   :  { %v492_v57 = vmul.f32 0.5, %v490_v52  ;;  %v491_v58 = vadd.f32 %v1786_v16, %v487_v53 }
 0x67f   :  { %v494_v59 = vsel %vm35_vm4, %v492_v57, %v490_v52  ;;  %v493_v60 = vmul.f32 0.5, %v491_v58 }
 0x680   :  { %1652 = vtanh.f32 %v494_v59 }
 0x681   :  { %v495_v61 = vsel %vm35_vm4, %v493_v60, %v491_v58 }
 0x682   :  { %1654 = vtanh.f32 %v495_v61 }
 0x68a   :  { %v1653_v62 = vpop.eup %1652 }
 0x68b   :  { %v498_v63 = vmul.f32 0.5, %v1653_v62 }
 0x68c   :  { %v1655_v2 = vpop.eup %1654 }
 0x68d   :  { %v500_v5 = vadd.f32 0.5, %v498_v63  ;;  %v499_v6 = vmul.f32 0.5, %v1655_v2 }
 0x68f   :  { %v502_v7 = vsel %vm35_vm4, %v500_v5, %v1653_v62  ;;  %v501_v8 = vadd.f32 0.5, %v499_v6 }
 0x690   :  { %508 = vrot.lane.b32.xlu0 %v502_v7, %s1702_s2  ;;  %v504_v14 = vmul.f32 %v502_v7, %v363_v31  ;;  %v1563_v31 = vpop.f32.mrb[13].mxu0 }
 0x691   :  { %v503_v9 = vsel %vm35_vm4, %v501_v8, %v1655_v2  ;;  %v647_v32 = vpop.f32.mrb[14].mxu0 }
 0x692   :  { %510 = vrot.lane.b32.xlu1 %v503_v9, %s1702_s2  ;;  %v505_v19 = vmul.f32 %v503_v9, %v364_v34  ;;  %v1564_v33 = vpop.f32.mrb[15].mxu0 }
 0x702   :  { %v509_v10 = vpop.permute.xlu0 %508 }
 0x703   :  { %v514_v11 = vmul.f32 %v509_v10, %v502_v7 }
 0x704   :  { %v511_v12 = vpop.permute.xlu1 %510 }
 0x705   :  { %v515_v13 = vmul.f32 %v511_v12, %v503_v9  ;;  %518 = vrot.lane.b32.xlu0 %v514_v11, %s1702_s2 }
 0x707   :  { %520 = vrot.lane.b32.xlu1 %v515_v13, %s1702_s2 }
 0x777   :  { %v519_v15 = vpop.permute.xlu0 %518 }
 0x778   :  { %v524_v18 = vadd.f32 %v519_v15, %v504_v14 }
 0x779   :  { %v521_v20 = vpop.permute.xlu1 %520 }
 0x77a   :  { %1656 = vtanh.f32 %v524_v18  ;;  %v525_v21 = vadd.f32 %v521_v20, %v505_v19 }
 0x77c   :  { %1658 = vtanh.f32 %v525_v21 }
 0x784   :  { %v1657_v23 = vpop.eup %1656 }
 0x785   :  { %530 = vrot.lane.b32.xlu0 %v1657_v23, %s1702_s2 }
 0x786   :  { %v1659_v24 = vpop.eup %1658 }
 0x787   :  { %532 = vrot.lane.b32.xlu1 %v1659_v24, %s1702_s2 }
 0x7f7   :  { %v531_v25 = vpop.permute.xlu0 %530 }
 0x7f8   :  { %v1895_v27 = vmul.f32 %v531_v25, %v502_v7 }
 0x7f9   :  { %v533_v26 = vpop.permute.xlu1 %532 }
 0x7fa   :  { %v1897_v28 = vmul.f32 %v533_v26, %v503_v9  ;;  %v1632_v9 = vld [vmem:[%s2181_s0 + $0x20] sm:$0xff]  }
 0x7fb   :  { %1576 = vmatmul.mubr.msk.bf16.vlgmr.msra.gmra.mrb[16].mxu0 %vm105_vm1, %v1632_v9 }
 0x7fc   :  { %v538_v29 = vpack.c.bf16 %v1897_v28, %v1895_v27  ;;  %1588 = vmatpush3.bf16.msra.mxu0 %v1754_v3  ;;  %1589 = vmatprep.mubr.msk.bf16.mxu0 %vm1701_vm3, %v1700_v0 }
 0x7fd   :  { %1601 = vmatprep.subr.bf16.mxu0 %v1700_v0 }
 0x7fe   :  { %556 = vrot.lane.b32.xlu0 %v538_v29, %s1703_s25 }
 0x870   :  { %v557_v34 = vpop.permute.xlu0 %556 }
 0x871   :  { %1556 = vmatmul.mubr.msk.bf16.vlgmr.msra.gmra.mrb[12].mxu1 %vm22_vm2, %v557_v34 }
 0x872   :  { %1566 = vmatpush3.bf16.msra.mxu1 %v1734_v1  ;;  %1569 = vmatprep.mubr.msk.bf16.mxu1 %vm1701_vm3, %v1700_v0 }
 0x873   :  { %1567 = vmatprep.subr.bf16.mxu1 %v1700_v0 }
 0x876   :  { %1568 = vmatpush3.bf16.msra.mxu1 %v1759_v4 }
 0x877   :  { %1579 = vmatprep.subr.bf16.mxu1 %v1700_v0 }
 0x8ce   :  { %v805_v19 = vpop.f32.mrb[16].mxu0 }
 0x8cf   :  { %v1577_v20 = vpop.f32.mrb[17].mxu0 }
 0x944   :  { %v595_v35 = vpop.f32.mrb[12].mxu1 }
 0x945   :  { %v645_v36 = vadd.f32 %v644_v30, %v595_v35  ;;  %v1557_v37 = vpop.f32.mrb[13].mxu1 }
 0x946   :  { %v598_v38 = vpop.f32.mrb[14].mxu1 }
 0x947   :  { %v651_v39 = vadd.f32 %v1786_v16, %v645_v36  ;;  %v648_v42 = vadd.f32 %v647_v32, %v598_v38  ;;  %v1558_v43 = vpop.f32.mrb[15].mxu1 }
 0x949   :  { %v653_v44 = vmul.f32 0.5, %v651_v39  ;;  %v652_v45 = vadd.f32 %v1786_v16, %v648_v42 }
 0x94b   :  { %v655_v46 = vsel %vm35_vm4, %v653_v44, %v651_v39  ;;  %v654_v47 = vmul.f32 0.5, %v652_v45 }
 0x94c   :  { %1660 = vtanh.f32 %v655_v46 }
 0x94d   :  { %v656_v48 = vsel %vm35_vm4, %v654_v47, %v652_v45 }
 0x94e   :  { %1662 = vtanh.f32 %v656_v48 }
 0x956   :  { %v1661_v49 = vpop.eup %1660 }
 0x957   :  { %v659_v50 = vmul.f32 0.5, %v1661_v49 }
 0x958   :  { %v1663_v51 = vpop.eup %1662 }
 0x959   :  { %v661_v52 = vadd.f32 0.5, %v659_v50  ;;  %v660_v53 = vmul.f32 0.5, %v1663_v51 }
 0x95b   :  { %v663_v54 = vsel %vm35_vm4, %v661_v52, %v1661_v49  ;;  %v662_v57 = vadd.f32 0.5, %v660_v53 }
 0x95c   :  { %669 = vrot.lane.b32.xlu1 %v663_v54, %s1702_s2  ;;  %v665_v63 = vmul.f32 %v663_v54, %v524_v18 }
 0x95d   :  { %v664_v58 = vsel %vm35_vm4, %v662_v57, %v1663_v51 }
 0x95e   :  { %671 = vrot.lane.b32.xlu0 %v664_v58, %s1702_s2  ;;  %v666_v6 = vmul.f32 %v664_v58, %v525_v21  ;;  %v808_v21 = vpop.f32.mrb[18].mxu0 }
 0x95f   :  { %v1578_v22 = vpop.f32.mrb[19].mxu0 }
 0x9ce   :  { %v670_v59 = vpop.permute.xlu1 %669 }
 0x9cf   :  { %v675_v60 = vmul.f32 %v670_v59, %v663_v54 }
 0x9d0   :  { %v672_v61 = vpop.permute.xlu0 %671 }
 0x9d1   :  { %v676_v62 = vmul.f32 %v672_v61, %v664_v58  ;;  %679 = vrot.lane.b32.xlu1 %v675_v60, %s1702_s2  ;;  %v1633_v60 = vld [vmem:[%s2181_s0 + $0x28] sm:$0xff]  }
 0x9d2   :  { %1590 = vmatmul.mubr.msk.bf16.vlgmr.msra.gmra.mrb[20].mxu0 %vm105_vm1, %v1633_v60 }
 0x9d3   :  { %681 = vrot.lane.b32.xlu0 %v676_v62, %s1702_s2  ;;  %1602 = vmatpush3.bf16.msra.mxu0 %v1754_v3 }
 0x9d4   :  { %1603 = vmatprep.mubr.msk.bf16.mxu0 %vm1701_vm3, %v1700_v0  ;;  %1615 = vmatprep.subr.bf16.mxu0 %v1700_v0 }
 0xa43   :  { %v680_v2 = vpop.permute.xlu1 %679 }
 0xa44   :  { %v685_v5 = vadd.f32 %v680_v2, %v665_v63 }
 0xa45   :  { %v682_v7 = vpop.permute.xlu0 %681 }
 0xa46   :  { %1664 = vtanh.f32 %v685_v5  ;;  %v686_v8 = vadd.f32 %v682_v7, %v666_v6 }
 0xa48   :  { %1666 = vtanh.f32 %v686_v8 }
 0xa50   :  { %v1665_v10 = vpop.eup %1664 }
 0xa51   :  { %691 = vrot.lane.b32.xlu1 %v1665_v10, %s1702_s2 }
 0xa52   :  { %v1667_v11 = vpop.eup %1666 }
 0xa53   :  { %693 = vrot.lane.b32.xlu0 %v1667_v11, %s1702_s2 }
 0xac3   :  { %v692_v12 = vpop.permute.xlu1 %691 }
 0xac4   :  { %v1933_v14 = vmul.f32 %v692_v12, %v663_v54 }
 0xac5   :  { %v694_v13 = vpop.permute.xlu0 %693 }
 0xac6   :  { %v1935_v15 = vmul.f32 %v694_v13, %v664_v58 }
 0xac8   :  { %v699_v18 = vpack.c.bf16 %v1935_v15, %v1933_v14 }
 0xaca   :  { %717 = vrot.lane.b32.xlu1 %v699_v18, %s1703_s25 }
 0xb3c   :  { %v718_v23 = vpop.permute.xlu1 %717 }
 0xb3d   :  { %1570 = vmatmul.mubr.msk.bf16.vlgmr.msra.gmra.mrb[16].mxu1 %vm22_vm2, %v718_v23 }
 0xb3e   :  { %1580 = vmatpush3.bf16.msra.mxu1 %v1734_v1  ;;  %1583 = vmatprep.mubr.msk.bf16.mxu1 %vm1701_vm3, %v1700_v0 }
 0xb3f   :  { %1581 = vmatprep.subr.bf16.mxu1 %v1700_v0 }
 0xb42   :  { %1582 = vmatpush3.bf16.msra.mxu1 %v1759_v4 }
 0xb43   :  { %1593 = vmatprep.subr.bf16.mxu1 %v1700_v0 }
 0xc10   :  { %v756_v24 = vpop.f32.mrb[16].mxu1 }
 0xc11   :  { %v806_v25 = vadd.f32 %v805_v19, %v756_v24  ;;  %v1571_v26 = vpop.f32.mrb[17].mxu1 }
 0xc12   :  { %v759_v29 = vpop.f32.mrb[18].mxu1 }
 0xc13   :  { %v812_v30 = vadd.f32 %v1786_v16, %v806_v25  ;;  %v809_v31 = vadd.f32 %v808_v21, %v759_v29  ;;  %v1572_v32 = vpop.f32.mrb[19].mxu1 }
 0xc15   :  { %v814_v33 = vmul.f32 0.5, %v812_v30  ;;  %v813_v34 = vadd.f32 %v1786_v16, %v809_v31 }
 0xc17   :  { %v816_v35 = vsel %vm35_vm4, %v814_v33, %v812_v30  ;;  %v815_v36 = vmul.f32 0.5, %v813_v34 }
 0xc18   :  { %1668 = vtanh.f32 %v816_v35 }
 0xc19   :  { %v817_v37 = vsel %vm35_vm4, %v815_v36, %v813_v34 }
 0xc1a   :  { %1670 = vtanh.f32 %v817_v37 }
 0xc22   :  { %v1669_v38 = vpop.eup %1668 }
 0xc23   :  { %v820_v39 = vmul.f32 0.5, %v1669_v38 }
 0xc24   :  { %v1671_v42 = vpop.eup %1670 }
 0xc25   :  { %v822_v43 = vadd.f32 0.5, %v820_v39  ;;  %v821_v44 = vmul.f32 0.5, %v1671_v42 }
 0xc27   :  { %v824_v45 = vsel %vm35_vm4, %v822_v43, %v1669_v38  ;;  %v823_v46 = vadd.f32 0.5, %v821_v44 }
 0xc28   :  { %830 = vrot.lane.b32.xlu0 %v824_v45, %s1702_s2  ;;  %v826_v52 = vmul.f32 %v824_v45, %v685_v5 }
 0xc29   :  { %v825_v47 = vsel %vm35_vm4, %v823_v46, %v1671_v42 }
 0xc2a   :  { %832 = vrot.lane.b32.xlu1 %v825_v47, %s1702_s2  ;;  %v827_v57 = vmul.f32 %v825_v47, %v686_v8  ;;  %v966_v8 = vpop.f32.mrb[20].mxu0 }
 0xc2b   :  { %v1591_v9 = vpop.f32.mrb[21].mxu0 }
 0xc2c   :  { %v969_v10 = vpop.f32.mrb[22].mxu0 }
 0xc2d   :  { %v1592_v11 = vpop.f32.mrb[23].mxu0 }
 0xc9a   :  { %v831_v48 = vpop.permute.xlu0 %830 }
 0xc9b   :  { %v836_v49 = vmul.f32 %v831_v48, %v824_v45 }
 0xc9c   :  { %v833_v50 = vpop.permute.xlu1 %832 }
 0xc9d   :  { %v837_v51 = vmul.f32 %v833_v50, %v825_v47  ;;  %840 = vrot.lane.b32.xlu0 %v836_v49, %s1702_s2 }
 0xc9f   :  { %842 = vrot.lane.b32.xlu1 %v837_v51, %s1702_s2  ;;  %v1634_v51 = vld [vmem:[%s2181_s0 + $0x30] sm:$0xff]  }
 0xca0   :  { %1604 = vmatmul.mubr.msk.bf16.vlgmr.msra.gmra.mrb[24].mxu0 %vm105_vm1, %v1634_v51 }
 0xca1   :  { %1616 = vmatpush3.bf16.msra.mxu0 %v1754_v3  ;;  %1617 = vmatprep.mubr.msk.bf16.mxu0 %vm1701_vm3, %v1700_v0 }
 0xd0f   :  { %v841_v53 = vpop.permute.xlu0 %840 }
 0xd10   :  { %v846_v54 = vadd.f32 %v841_v53, %v826_v52 }
 0xd11   :  { %v843_v58 = vpop.permute.xlu1 %842 }
 0xd12   :  { %1672 = vtanh.f32 %v846_v54  ;;  %v847_v59 = vadd.f32 %v843_v58, %v827_v57 }
 0xd14   :  { %1674 = vtanh.f32 %v847_v59 }
 0xd1c   :  { %v1673_v61 = vpop.eup %1672 }
 0xd1d   :  { %852 = vrot.lane.b32.xlu0 %v1673_v61, %s1702_s2 }
 0xd1e   :  { %v1675_v62 = vpop.eup %1674 }
 0xd1f   :  { %854 = vrot.lane.b32.xlu1 %v1675_v62, %s1702_s2 }
 0xd73   :  { %v1127_v3 = vpop.f32.mrb[24].mxu0 }
 0xd74   :  { %v1605_v61 = vpop.f32.mrb[25].mxu0 }
 0xd75   :  { %v1130_v62 = vpop.f32.mrb[26].mxu0 }
 0xd8f   :  { %v853_v63 = vpop.permute.xlu0 %852 }
 0xd90   :  { %v1971_v5 = vmul.f32 %v853_v63, %v824_v45  ;;  %v1606_v63 = vpop.f32.mrb[27].mxu0 }
 0xd91   :  { %v855_v2 = vpop.permute.xlu1 %854 }
 0xd92   :  { %v1973_v6 = vmul.f32 %v855_v2, %v825_v47 }
 0xd94   :  { %v860_v7 = vpack.c.bf16 %v1973_v6, %v1971_v5 }
 0xd96   :  { %878 = vrot.lane.b32.xlu0 %v860_v7, %s1703_s25 }
 0xe08   :  { %v879_v12 = vpop.permute.xlu0 %878 }
 0xe09   :  { %1584 = vmatmul.mubr.msk.bf16.vlgmr.msra.gmra.mrb[20].mxu1 %vm22_vm2, %v879_v12 }
 0xe0a   :  { %1594 = vmatpush3.bf16.msra.mxu1 %v1734_v1  ;;  %1597 = vmatprep.mubr.msk.bf16.mxu1 %vm1701_vm3, %v1700_v0 }
 0xe0b   :  { %1595 = vmatprep.subr.bf16.mxu1 %v1700_v0 }
 0xe0e   :  { %1596 = vmatpush3.bf16.msra.mxu1 %v1759_v4 }
 0xe0f   :  { %1607 = vmatprep.subr.bf16.mxu1 %v1700_v0 }
 0xedc   :  { %v917_v13 = vpop.f32.mrb[20].mxu1 }
 0xedd   :  { %v967_v18 = vadd.f32 %v966_v8, %v917_v13  ;;  %v1585_v19 = vpop.f32.mrb[21].mxu1 }
 0xede   :  { %v920_v20 = vpop.f32.mrb[22].mxu1 }
 0xedf   :  { %v973_v21 = vadd.f32 %v1786_v16, %v967_v18  ;;  %v970_v22 = vadd.f32 %v969_v10, %v920_v20  ;;  %v1586_v23 = vpop.f32.mrb[23].mxu1 }
 0xee1   :  { %v975_v24 = vmul.f32 0.5, %v973_v21  ;;  %v974_v25 = vadd.f32 %v1786_v16, %v970_v22 }
 0xee3   :  { %v977_v26 = vsel %vm35_vm4, %v975_v24, %v973_v21  ;;  %v976_v29 = vmul.f32 0.5, %v974_v25 }
 0xee4   :  { %1676 = vtanh.f32 %v977_v26 }
 0xee5   :  { %v978_v30 = vsel %vm35_vm4, %v976_v29, %v974_v25 }
 0xee6   :  { %1678 = vtanh.f32 %v978_v30 }
 0xeee   :  { %v1677_v31 = vpop.eup %1676 }
 0xeef   :  { %v981_v32 = vmul.f32 0.5, %v1677_v31 }
 0xef0   :  { %v1679_v33 = vpop.eup %1678 }
 0xef1   :  { %v983_v34 = vadd.f32 0.5, %v981_v32  ;;  %v982_v35 = vmul.f32 0.5, %v1679_v33 }
 0xef3   :  { %v985_v36 = vsel %vm35_vm4, %v983_v34, %v1677_v31  ;;  %v984_v37 = vadd.f32 0.5, %v982_v35 }
 0xef4   :  { %991 = vrot.lane.b32.xlu1 %v985_v36, %s1702_s2  ;;  %v987_v45 = vmul.f32 %v985_v36, %v846_v54 }
 0xef5   :  { %v986_v38 = vsel %vm35_vm4, %v984_v37, %v1679_v33 }
 0xef6   :  { %993 = vrot.lane.b32.xlu0 %v986_v38, %s1702_s2  ;;  %v988_v48 = vmul.f32 %v986_v38, %v847_v59 }
 0xf66   :  { %v992_v39 = vpop.permute.xlu1 %991 }
 0xf67   :  { %v997_v42 = vmul.f32 %v992_v39, %v985_v36 }
 0xf68   :  { %v994_v43 = vpop.permute.xlu0 %993 }
 0xf69   :  { %v998_v44 = vmul.f32 %v994_v43, %v986_v38  ;;  %1001 = vrot.lane.b32.xlu1 %v997_v42, %s1702_s2  ;;  %v1635_v42 = vld [vmem:[%s2181_s0 + $0x38] sm:$0xff]  }
 0xf6a   :  { %1618 = vmatmul.mubr.msk.bf16.vlgmr.msra.gmra.mrb[28].mxu0 %vm105_vm1, %v1635_v42 }
 0xf6b   :  { %1003 = vrot.lane.b32.xlu0 %v998_v44, %s1702_s2 }
 0xfdb   :  { %v1002_v46 = vpop.permute.xlu1 %1001 }
 0xfdc   :  { %v1007_v47 = vadd.f32 %v1002_v46, %v987_v45 }
 0xfdd   :  { %v1004_v49 = vpop.permute.xlu0 %1003 }
 0xfde   :  { %1680 = vtanh.f32 %v1007_v47  ;;  %v1008_v50 = vadd.f32 %v1004_v49, %v988_v48 }
 0xfe0   :  { %1682 = vtanh.f32 %v1008_v50 }
 0xfe8   :  { %v1681_v52 = vpop.eup %1680 }
 0xfe9   :  { %1013 = vrot.lane.b32.xlu1 %v1681_v52, %s1702_s2 }
 0xfea   :  { %v1683_v53 = vpop.eup %1682 }
 0xfeb   :  { %1015 = vrot.lane.b32.xlu0 %v1683_v53, %s1702_s2 }
0x105b   :  { %v1014_v54 = vpop.permute.xlu1 %1013 }
0x105c   :  { %v2008_v58 = vmul.f32 %v1014_v54, %v985_v36 }
0x105d   :  { %v1016_v57 = vpop.permute.xlu0 %1015 }
0x105e   :  { %v2010_v59 = vmul.f32 %v1016_v57, %v986_v38 }
0x1060   :  { %v1021_v60 = vpack.c.bf16 %v2010_v59, %v2008_v58 }
0x1062   :  { %1039 = vrot.lane.b32.xlu1 %v1021_v60, %s1703_s25 }
0x10d4   :  { %v1040_v2 = vpop.permute.xlu1 %1039 }
0x10d5   :  { %1598 = vmatmul.mubr.msk.bf16.vlgmr.msra.gmra.mrb[24].mxu1 %vm22_vm2, %v1040_v2 }
0x10d6   :  { %1608 = vmatpush3.bf16.msra.mxu1 %v1734_v1  ;;  %1611 = vmatprep.mubr.msk.bf16.mxu1 %vm1701_vm3, %v1700_v0 }
0x10d7   :  { %1609 = vmatprep.subr.bf16.mxu1 %v1700_v0 }
0x10da   :  { %1610 = vmatpush3.bf16.msra.mxu1 %v1759_v4 }
0x11a8   :  { %v1078_v7 = vpop.f32.mrb[24].mxu1 }
0x11a9   :  { %v1128_v8 = vadd.f32 %v1127_v3, %v1078_v7  ;;  %v1599_v9 = vpop.f32.mrb[25].mxu1 }
0x11aa   :  { %v1081_v10 = vpop.f32.mrb[26].mxu1 }
0x11ab   :  { %v1134_v11 = vadd.f32 %v1786_v16, %v1128_v8  ;;  %v1131_v12 = vadd.f32 %v1130_v62, %v1081_v10  ;;  %v1600_v13 = vpop.f32.mrb[27].mxu1 }
0x11ad   :  { %v1136_v18 = vmul.f32 0.5, %v1134_v11  ;;  %v1135_v19 = vadd.f32 %v1786_v16, %v1131_v12 }
0x11af   :  { %v1138_v1 = vsel %vm35_vm4, %v1136_v18, %v1134_v11  ;;  %v1137_v20 = vmul.f32 0.5, %v1135_v19 }
0x11b0   :  { %1684 = vtanh.f32 %v1138_v1 }
0x11b1   :  { %v1139_v0 = vsel %vm35_vm4, %v1137_v20, %v1135_v19 }
0x11b2   :  { %1686 = vtanh.f32 %v1139_v0 }
0x11ba   :  { %v1685_v4 = vpop.eup %1684 }
0x11bb   :  { %v1142_v21 = vmul.f32 0.5, %v1685_v4 }
0x11bc   :  { %v1687_v22 = vpop.eup %1686 }
0x11bd   :  { %v1144_v23 = vadd.f32 0.5, %v1142_v21  ;;  %v1143_v24 = vmul.f32 0.5, %v1687_v22 }
0x11bf   :  { %v1146_v25 = vsel %vm35_vm4, %v1144_v23, %v1685_v4  ;;  %v1145_v26 = vadd.f32 0.5, %v1143_v24 }
0x11c0   :  { %1152 = vrot.lane.b32.xlu0 %v1146_v25, %s1702_s2  ;;  %v1148_v34 = vmul.f32 %v1146_v25, %v1007_v47 }
0x11c1   :  { %v1147_v29 = vsel %vm35_vm4, %v1145_v26, %v1687_v22 }
0x11c2   :  { %1154 = vrot.lane.b32.xlu1 %v1147_v29, %s1702_s2  ;;  %v1149_v37 = vmul.f32 %v1147_v29, %v1008_v50  ;;  %v1288_v50 = vpop.f32.mrb[28].mxu0 }
0x11c3   :  { %v1619_v51 = vpop.f32.mrb[29].mxu0 }
0x11c4   :  { %v1291_v52 = vpop.f32.mrb[30].mxu0 }
0x11c5   :  { %v1620_v53 = vpop.f32.mrb[31].mxu0 }
0x1232   :  { %v1153_v30 = vpop.permute.xlu0 %1152 }
0x1233   :  { %v1158_v31 = vmul.f32 %v1153_v30, %v1146_v25 }
0x1234   :  { %v1155_v32 = vpop.permute.xlu1 %1154 }
0x1235   :  { %v1159_v33 = vmul.f32 %v1155_v32, %v1147_v29  ;;  %1162 = vrot.lane.b32.xlu0 %v1158_v31, %s1702_s2 }
0x1237   :  { %1164 = vrot.lane.b32.xlu1 %v1159_v33, %s1702_s2  ;;  %v1453_v33 = vpack.c.bf16 %v1818_v55, %v1818_v55  ;;  %v1457_v55 = vpack.c.bf16 %v1895_v27, %v1895_v27  ;;  %v1461_v27 = vpack.c.bf16 %v1971_v5, %v1971_v5 }
0x12a7   :  { %v1163_v35 = vpop.permute.xlu0 %1162 }
0x12a8   :  { %v1168_v36 = vadd.f32 %v1163_v35, %v1148_v34  ;;  %v1454_v34 = vpack.c.bf16 %v1820_v56, %v1820_v56  ;;  %v1455_v35 = vpack.c.bf16 %v1857_v40, %v1857_v40  ;;  %v1458_v56 = vpack.c.bf16 %v1897_v28, %v1897_v28 }
0x12a9   :  { %v1165_v38 = vpop.permute.xlu1 %1164  ;;  %v1459_v40 = vpack.c.bf16 %v1933_v14, %v1933_v14  ;;  %v1462_v28 = vpack.c.bf16 %v1973_v6, %v1973_v6  ;;  %v1463_v14 = vpack.c.bf16 %v2008_v58, %v2008_v58 }
0x12aa   :  { %1688 = vtanh.f32 %v1168_v36  ;;  %v1169_v39 = vadd.f32 %v1165_v38, %v1149_v37 }
0x12ac   :  { %1690 = vtanh.f32 %v1169_v39 }
0x12b4   :  { %v1689_v43 = vpop.eup %1688 }
0x12b5   :  { %1174 = vrot.lane.b32.xlu0 %v1689_v43, %s1702_s2 }
0x12b6   :  { %v1691_v44 = vpop.eup %1690 }
0x12b7   :  { %1176 = vrot.lane.b32.xlu1 %v1691_v44, %s1702_s2 }
0x1327   :  { %v1175_v45 = vpop.permute.xlu0 %1174 }
0x1328   :  { %v2041_v47 = vmul.f32 %v1175_v45, %v1146_v25 }
0x1329   :  { %v1177_v46 = vpop.permute.xlu1 %1176 }
0x132a   :  { %v2043_v48 = vmul.f32 %v1177_v46, %v1147_v29  ;;  %v1465_v5 = vpack.c.bf16 %v2041_v47, %v2041_v47 }
0x132c   :  { %v1182_v49 = vpack.c.bf16 %v2043_v48, %v2041_v47  ;;  %v1466_v6 = vpack.c.bf16 %v2043_v48, %v2043_v48 }
0x132e   :  { %1200 = vrot.lane.b32.xlu0 %v1182_v49, %s1703_s25 }
0x13a0   :  { %v1201_v54 = vpop.permute.xlu0 %1200 }
0x13a1   :  { %1612 = vmatmul.mubr.msk.bf16.vlgmr.msra.gmra.mrb[28].mxu1 %vm22_vm2, %v1201_v54 }
0x1474   :  { %v1239_v57 = vpop.f32.mrb[28].mxu1 }
0x1475   :  { %v1289_v60 = vadd.f32 %v1288_v50, %v1239_v57  ;;  %v1613_v3 = vpop.f32.mrb[29].mxu1 }
0x1476   :  { %v1242_v61 = vpop.f32.mrb[30].mxu1 }
0x1477   :  { %v1295_v62 = vadd.f32 %v1786_v16, %v1289_v60  ;;  %v1292_v63 = vadd.f32 %v1291_v52, %v1242_v61  ;;  %v1614_v2 = vpop.f32.mrb[31].mxu1 }
0x1479   :  { %v1297_v7 = vmul.f32 0.5, %v1295_v62  ;;  %v1296_v8 = vadd.f32 %v1786_v16, %v1292_v63 }
0x147b   :  { %v1299_v9 = vsel %vm35_vm4, %v1297_v7, %v1295_v62  ;;  %v1298_v10 = vmul.f32 0.5, %v1296_v8 }
0x147c   :  { %1692 = vtanh.f32 %v1299_v9 }
0x147d   :  { %v1300_v11 = vsel %vm35_vm4, %v1298_v10, %v1296_v8 }
0x147e   :  { %1694 = vtanh.f32 %v1300_v11 }
0x1486   :  { %v1693_v12 = vpop.eup %1692 }
0x1487   :  { %v1303_v13 = vmul.f32 0.5, %v1693_v12 }
0x1488   :  { %v1695_v18 = vpop.eup %1694 }
0x1489   :  { %v1305_v19 = vadd.f32 0.5, %v1303_v13  ;;  %v1304_v1 = vmul.f32 0.5, %v1695_v18 }
0x148b   :  { %v1307_v20 = vsel %vm35_vm4, %v1305_v19, %v1693_v12  ;;  %v1306_v0 = vadd.f32 0.5, %v1304_v1 }
0x148c   :  { %1313 = vrot.lane.b32.xlu1 %v1307_v20, %s1702_s2  ;;  %v1309_v24 = vmul.f32 %v1307_v20, %v1168_v36  ;;  %v1456_v36 = vpack.c.bf16 %v1859_v41, %v1859_v41  ;;  %v1460_v41 = vpack.c.bf16 %v1935_v15, %v1935_v15  ;;  %v1464_v15 = vpack.c.bf16 %v2010_v59, %v2010_v59 }
0x148d   :  { %v1308_v16 = vsel %vm35_vm4, %v1306_v0, %v1695_v18 }
0x148e   :  { %1315 = vrot.lane.b32.xlu0 %v1308_v16, %s1702_s2  ;;  %v1310_v29 = vmul.f32 %v1308_v16, %v1169_v39 }
0x14fe   :  { %v1314_v4 = vpop.permute.xlu1 %1313 }
0x14ff   :  { %v1319_v21 = vmul.f32 %v1314_v4, %v1307_v20 }
0x1500   :  { %v1316_v22 = vpop.permute.xlu0 %1315 }
0x1501   :  { %v1320_v23 = vmul.f32 %v1316_v22, %v1308_v16  ;;  %1323 = vrot.lane.b32.xlu1 %v1319_v21, %s1702_s2 }
0x1503   :  { %1325 = vrot.lane.b32.xlu0 %v1320_v23, %s1702_s2 }
0x1573   :  { %v1324_v25 = vpop.permute.xlu1 %1323 }
0x1574   :  { %v1329_v26 = vadd.f32 %v1324_v25, %v1309_v24 }
0x1575   :  { %v1326_v30 = vpop.permute.xlu0 %1325 }
0x1576   :  { %1696 = vtanh.f32 %v1329_v26  ;;  %v1330_v31 = vadd.f32 %v1326_v30, %v1310_v29 }
0x1578   :  { %1698 = vtanh.f32 %v1330_v31 }
0x1580   :  { %v1697_v17 = vpop.eup %1696 }
0x1581   :  { %1335 = vrot.lane.b32.xlu1 %v1697_v17, %s1702_s2 }
0x1582   :  { %v1699_v32 = vpop.eup %1698 }
0x1583   :  { %1337 = vrot.lane.b32.xlu0 %v1699_v32, %s1702_s2 }
0x1585   :  { %222 = vrot.lane.b32.xlu1 %v1453_v33, %s1703_s25 }
0x1587   :  { %224 = vrot.lane.b32.xlu0 %v1454_v34, %s1703_s25 }
0x1589   :  { %383 = vrot.lane.b32.xlu1 %v1455_v35, %s1703_s25 }
0x158b   :  { %385 = vrot.lane.b32.xlu0 %v1456_v36, %s1703_s25 }
0x158d   :  { %544 = vrot.lane.b32.xlu1 %v1457_v55, %s1703_s25 }
0x158f   :  { %546 = vrot.lane.b32.xlu0 %v1458_v56, %s1703_s25 }
0x1591   :  { %705 = vrot.lane.b32.xlu1 %v1459_v40, %s1703_s25 }
0x1593   :  { %707 = vrot.lane.b32.xlu0 %v1460_v41, %s1703_s25 }
0x1595   :  { %866 = vrot.lane.b32.xlu1 %v1461_v27, %s1703_s25 }
0x1597   :  { %868 = vrot.lane.b32.xlu0 %v1462_v28, %s1703_s25 }
0x1599   :  { %1027 = vrot.lane.b32.xlu1 %v1463_v14, %s1703_s25 }
0x159b   :  { %1029 = vrot.lane.b32.xlu0 %v1464_v15, %s1703_s25 }
0x159d   :  { %1188 = vrot.lane.b32.xlu1 %v1465_v5, %s1703_s25 }
0x159f   :  { %1190 = vrot.lane.b32.xlu0 %v1466_v6, %s1703_s25 }
0x15f3   :  { %v1336_v58 = vpop.permute.xlu1 %1335 }
0x15f4   :  { %v1341_v37 = vmul.f32 %v1336_v58, %v1307_v20 }
0x15f5   :  { %v1338_v38 = vpop.permute.xlu0 %1337 }
0x15f6   :  { %v1342_v39 = vmul.f32 %v1338_v38, %v1308_v16  ;;  %1360 = vrot.lane.b32.xlu1 %v1341_v37, %s1703_s25  ;;  %v1467_v42 = vpack.c.bf16 %v1341_v37, %v1341_v37 }
0x15f7   :  { %v223_v59 = vpop.permute.xlu1 %222 }
0x15f8   :  { %229 = vst.msk [vmem:[%s2183_s4] sm:$0xf] %vm228_vm5, %v223_v59  ;;  %1362 = vrot.lane.b32.xlu0 %v1342_v39, %s1703_s25  ;;  %v1468_v44 = vpack.c.bf16 %v1342_v39, %v1342_v39 }
0x15f9   :  { %v225_v43 = vpop.permute.xlu0 %224 }
0x15fa   :  { %230 = vst.msk [vmem:[%s2183_s4 + $0x4] sm:$0xf] %vm228_vm5, %v225_v43  ;;  %1349 = vrot.lane.b32.xlu1 %v1467_v42, %s1703_s25 }
0x15fb   :  { %v384_v45 = vpop.permute.xlu1 %383 }
0x15fc   :  { %1397 = vst.msk [vmem:[%s2183_s4 + $0x8] sm:$0xf] %vm228_vm5, %v384_v45  ;;  %1351 = vrot.lane.b32.xlu0 %v1468_v44, %s1703_s25 }
0x15fd   :  { %v386_v46 = vpop.permute.xlu0 %385 }
0x15fe   :  { %1398 = vst.msk [vmem:[%s2183_s4 + $0xc] sm:$0xf] %vm228_vm5, %v386_v46  ;;  %1370 = vrot.lane.b32.xlu1 %v1329_v26, %s1704_s1 }
0x15ff   :  { %v545_v47 = vpop.permute.xlu1 %544 }
0x1600   :  { %1406 = vst.msk [vmem:[%s2183_s4 + $0x10] sm:$0xf] %vm228_vm5, %v545_v47  ;;  %1372 = vrot.lane.b32.xlu0 %v1330_v31, %s1704_s1 }
0x1601   :  { %v547_v48 = vpop.permute.xlu0 %546 }
0x1602   :  { %1407 = vst.msk [vmem:[%s2183_s4 + $0x14] sm:$0xf] %vm228_vm5, %v547_v48 }
0x1603   :  { %v706_v49 = vpop.permute.xlu1 %705 }
0x1604   :  { %1415 = vst.msk [vmem:[%s2183_s4 + $0x18] sm:$0xf] %vm228_vm5, %v706_v49 }
0x1605   :  { %v708_v50 = vpop.permute.xlu0 %707 }
0x1606   :  { %1416 = vst.msk [vmem:[%s2183_s4 + $0x1c] sm:$0xf] %vm228_vm5, %v708_v50 }
0x1607   :  { %v867_v51 = vpop.permute.xlu1 %866 }
0x1608   :  { %1424 = vst.msk [vmem:[%s2183_s4 + $0x20] sm:$0xf] %vm228_vm5, %v867_v51 }
0x1609   :  { %v869_v52 = vpop.permute.xlu0 %868 }
0x160a   :  { %1425 = vst.msk [vmem:[%s2183_s4 + $0x24] sm:$0xf] %vm228_vm5, %v869_v52 }
0x160b   :  { %v1028_v53 = vpop.permute.xlu1 %1027 }
0x160c   :  { %1433 = vst.msk [vmem:[%s2183_s4 + $0x28] sm:$0xf] %vm228_vm5, %v1028_v53 }
0x160d   :  { %v1030_v54 = vpop.permute.xlu0 %1029 }
0x160e   :  { %1434 = vst.msk [vmem:[%s2183_s4 + $0x2c] sm:$0xf] %vm228_vm5, %v1030_v54 }
0x160f   :  { %v1189_v57 = vpop.permute.xlu1 %1188 }
0x1610   :  { %1442 = vst.msk [vmem:[%s2183_s4 + $0x30] sm:$0xf] %vm228_vm5, %v1189_v57 }
0x1611   :  { %v1191_v60 = vpop.permute.xlu0 %1190 }
0x1612   :  { %1443 = vst.msk [vmem:[%s2183_s4 + $0x34] sm:$0xf] %vm228_vm5, %v1191_v60 }
0x1668   :  { %v1361_v3 = vpop.permute.xlu1 %1360 }
0x1669   :  { %1366 = vst.msk [vmem:[#allocation2] sm:$0xff] %vm22_vm2, %v1361_v3 }
0x166a   :  { %v1363_v61 = vpop.permute.xlu0 %1362 }
0x166b   :  { %1367 = vst.msk [vmem:[#allocation2 + $0x8] sm:$0xff] %vm22_vm2, %v1363_v61 }
0x166c   :  { %v1350_v62 = vpop.permute.xlu1 %1349 }
0x166d   :  { %1451 = vst.msk [vmem:[%s2183_s4 + $0x38] sm:$0xf] %vm228_vm5, %v1350_v62 }
0x166e   :  { %v1352_v63 = vpop.permute.xlu0 %1351 }
0x166f   :  { %1452 = vst.msk [vmem:[%s2183_s4 + $0x3c] sm:$0xf] %vm228_vm5, %v1352_v63 }
0x1670   :  { %v1371_v2 = vpop.permute.xlu1 %1370 }
0x1671   :  { %1376 = vst.msk [vmem:[#allocation3] sm:$0xff] %vm22_vm2, %v1371_v2 }
0x1672   :  { %v1373_v7 = vpop.permute.xlu0 %1372 }
0x1673   :  { %1377 = vst.msk [vmem:[#allocation3 + $0x8] sm:$0xff] %vm22_vm2, %v1373_v7 }

// kernel: build_lstm_forward.3
= control target key start
LH: loop header
LB: loop body
LE: loop exit
PB: predicated region body
PF: predicated region fallthrough
CT: control target
= control target key end

     0   :  { %vm22_vm0 = vcmask 261120   ;;  %v1588_v0 = vmov 0.0   ;;  %vm1589_vm1 = vmmov 0   ;;  %v36_v11 = vlaneseq  ;;  %s1591_s27 = smov 64   ;;  %s1981_s2 = inlined_call_operand.vmem [shape: bf16[32,128], index: 2, kind: input, shape index: {}]   ;;  %s1982_s1 = inlined_call_operand.vmem [shape: bf16[32,128], index: 1, kind: input, shape index: {}]   ;;  %s1983_s0 = inlined_call_operand.vmem [shape: bf16[8,16,32], index: 0, kind: input, shape index: {}]   ;;  %s1984_s3 = inlined_call_operand.vmem [shape: f32[1,128], index: 3, kind: input, shape index: {}]   ;;  %s1985_s4 = inlined_call_operand.vmem [shape: f32[1,16,32], index: 4, kind: output, shape index: {}]  }
   0x1   :  { %1379 = vmatprep.subr.bf16.mxu0 %v1588_v0  ;;  %1387 = vmatprep.subr.bf16.mxu1 %v1588_v0  ;;  %v1623_v1 = vld [vmem:[%s1981_s2] sm:$0xff]   ;;  %23 = vst.msk [vmem:[#allocation2] sm:$0xff] %vm22_vm0, %v1588_v0  ;;  %24 = vst.msk [vmem:[#allocation2 + $0x8] sm:$0xff] %vm22_vm0, %v1588_v0  ;;  %v1646_v3 = vld [vmem:[%s1981_s2 + $0x8] sm:$0xff]   ;;  %s1590_s2 = smov 32  }
   0x2   :  { %25 = vst.msk [vmem:[#allocation3] sm:$0xff] %vm22_vm0, %v1588_v0  ;;  %26 = vst.msk [vmem:[#allocation3 + $0x8] sm:$0xff] %vm22_vm0, %v1588_v0  ;;  %v1636_v2 = vld [vmem:[%s1982_s1] sm:$0xff]   ;;  %1383 = vmatprep.mubr.msk.bf16.mxu0 %vm1589_vm1, %v1588_v0  ;;  %1391 = vmatprep.mubr.msk.bf16.mxu1 %vm1589_vm1, %v1588_v0  ;;  %v1653_v4 = vld [vmem:[%s1982_s1 + $0x8] sm:$0xff]   ;;  %v1684_v14 = vand.u32 127, %v36_v11 }
   0x3   :  { %1380 = vmatpush3.bf16.msra.mxu0 %v1623_v1  ;;  %1388 = vmatpush3.bf16.msra.mxu1 %v1636_v2  ;;  %v1516_v5 = vld [vmem:[%s1983_s0] sm:$0xff]   ;;  %v1517_v50 = vld [vmem:[%s1983_s0 + $0x8] sm:$0xff]  }
   0x4   :  { %1381 = vmatprep.subr.bf16.mxu0 %v1588_v0  ;;  %1389 = vmatprep.subr.bf16.mxu1 %v1588_v0  ;;  %v1682_v13 = vld [vmem:[%s1984_s3] ss:$0 sm:$0xff]  ;;  %vm38_vm2 = vcmp.lt.s32.totalorder %v1684_v14, 96 }
   0x7   :  { %1382 = vmatpush3.bf16.msra.mxu0 %v1646_v3  ;;  %1390 = vmatpush3.bf16.msra.mxu1 %v1653_v4 }
   0x8   :  { %v39_v6 = vld [vmem:[#allocation2] sm:$0xff]  ;;  %v40_v7 = vld [vmem:[#allocation2 + $0x8] sm:$0xff]  ;;  %1395 = vmatprep.subr.bf16.mxu0 %v1588_v0  ;;  %1403 = vmatprep.subr.bf16.mxu1 %v1588_v0 }
   0x9   :  { %v41_v8 = vld [vmem:[#allocation3] sm:$0xff]  ;;  %v45_v9 = vpack.c.bf16 %v40_v7, %v39_v6  ;;  %v42_v10 = vld [vmem:[#allocation3 + $0x8] sm:$0xff] }
   0xa   :  { %186 = vrot.lane.b32.xlu1 %v41_v8, %s1590_s2  ;;  %1392 = vmatmul.mubr.msk.bf16.vlgmr.msra.gmra.mrb[0].mxu1 %vm22_vm0, %v1516_v5 }
   0xb   :  { %1384 = vmatmul.mubr.msk.bf16.vlgmr.msra.gmra.mrb[0].mxu0 %vm22_vm0, %v45_v9  ;;  %1404 = vmatpush3.bf16.msra.mxu1 %v1636_v2 }
   0xc   :  { %1396 = vmatpush3.bf16.msra.mxu0 %v1623_v1  ;;  %1405 = vmatprep.subr.bf16.mxu1 %v1588_v0 }
   0xd   :  { %1397 = vmatprep.subr.bf16.mxu0 %v1588_v0  ;;  %1407 = vmatprep.mubr.msk.bf16.mxu1 %vm1589_vm1, %v1588_v0 }
   0xe   :  { %188 = vrot.lane.b32.xlu1 %v42_v10, %s1590_s2  ;;  %1399 = vmatprep.mubr.msk.bf16.mxu0 %vm1589_vm1, %v1588_v0 }
   0xf   :  { %1406 = vmatpush3.bf16.msra.mxu1 %v1653_v4 }
  0x10   :  { %1398 = vmatpush3.bf16.msra.mxu0 %v1646_v3  ;;  %1419 = vmatprep.subr.bf16.mxu1 %v1588_v0 }
  0x11   :  { %1411 = vmatprep.subr.bf16.mxu0 %v1588_v0 }
  0x12   :  { %1408 = vmatmul.mubr.msk.bf16.vlgmr.msra.gmra.mrb[4].mxu1 %vm22_vm0, %v1517_v50 }
  0x13   :  { %1420 = vmatpush3.bf16.msra.mxu1 %v1636_v2  ;;  %1423 = vmatprep.mubr.msk.bf16.mxu1 %vm1589_vm1, %v1588_v0 }
  0x14   :  { %1421 = vmatprep.subr.bf16.mxu1 %v1588_v0 }
  0x17   :  { %1422 = vmatpush3.bf16.msra.mxu1 %v1653_v4 }
  0x18   :  { %1435 = vmatprep.subr.bf16.mxu1 %v1588_v0 }
  0x7c   :  { %v187_v42 = vpop.permute.xlu1 %186 }
  0x80   :  { %v189_v44 = vpop.permute.xlu1 %188 }
  0xdd   :  { %v157_v15 = vpop.f32.mrb[0].mxu1 }
  0xde   :  { %v96_v12 = vpop.f32.mrb[0].mxu0  ;;  %v1393_v18 = vpop.f32.mrb[1].mxu1 }
  0xdf   :  { %v158_v16 = vadd.f32 %v157_v15, %v96_v12  ;;  %v1385_v17 = vpop.f32.mrb[1].mxu0  ;;  %v160_v20 = vpop.f32.mrb[2].mxu1 }
  0xe0   :  { %v99_v19 = vpop.f32.mrb[2].mxu0  ;;  %v1394_v24 = vpop.f32.mrb[3].mxu1 }
  0xe1   :  { %v170_v21 = vadd.f32 %v1682_v13, %v158_v16  ;;  %v161_v22 = vadd.f32 %v160_v20, %v99_v19  ;;  %v1386_v23 = vpop.f32.mrb[3].mxu0 }
  0xe3   :  { %v172_v25 = vmul.f32 0.5, %v170_v21  ;;  %v171_v26 = vadd.f32 %v1682_v13, %v161_v22 }
  0xe5   :  { %v174_v27 = vsel %vm38_vm2, %v172_v25, %v170_v21  ;;  %v173_v28 = vmul.f32 0.5, %v171_v26  ;;  %v319_v58 = vpop.f32.mrb[4].mxu1 }
  0xe6   :  { %1524 = vtanh.f32 %v174_v27  ;;  %v1409_v59 = vpop.f32.mrb[5].mxu1 }
  0xe7   :  { %v175_v29 = vsel %vm38_vm2, %v173_v28, %v171_v26  ;;  %v322_v60 = vpop.f32.mrb[6].mxu1 }
  0xe8   :  { %1526 = vtanh.f32 %v175_v29  ;;  %v1410_v61 = vpop.f32.mrb[7].mxu1 }
  0xf0   :  { %v1525_v30 = vpop.eup %1524 }
  0xf1   :  { %v178_v31 = vmul.f32 0.5, %v1525_v30 }
  0xf2   :  { %v1527_v32 = vpop.eup %1526 }
  0xf3   :  { %v180_v33 = vadd.f32 0.5, %v178_v31  ;;  %v179_v34 = vmul.f32 0.5, %v1527_v32 }
  0xf5   :  { %v182_v35 = vsel %vm38_vm2, %v180_v33, %v1525_v30  ;;  %v181_v36 = vadd.f32 0.5, %v179_v34 }
  0xf6   :  { %196 = vrot.lane.b32.xlu0 %v182_v35, %s1590_s2  ;;  %v192_v43 = vmul.f32 %v187_v42, %v182_v35 }
  0xf7   :  { %v183_v37 = vsel %vm38_vm2, %v181_v36, %v1527_v32  ;;  %v1518_v36 = vld [vmem:[%s1983_s0 + $0x10] sm:$0xff]  }
  0xf8   :  { %v193_v47 = vmul.f32 %v189_v44, %v183_v37  ;;  %1424 = vmatmul.mubr.msk.bf16.vlgmr.msra.gmra.mrb[8].mxu1 %vm22_vm0, %v1518_v36 }
  0xf9   :  { %1436 = vmatpush3.bf16.msra.mxu1 %v1636_v2  ;;  %1439 = vmatprep.mubr.msk.bf16.mxu1 %vm1589_vm1, %v1588_v0 }
  0xfa   :  { %198 = vrot.lane.b32.xlu0 %v183_v37, %s1590_s2  ;;  %1437 = vmatprep.subr.bf16.mxu1 %v1588_v0 }
  0xfd   :  { %1438 = vmatpush3.bf16.msra.mxu1 %v1653_v4 }
  0xfe   :  { %1451 = vmatprep.subr.bf16.mxu1 %v1588_v0 }
 0x168   :  { %v197_v38 = vpop.permute.xlu0 %196 }
 0x169   :  { %v202_v39 = vmul.f32 %v197_v38, %v182_v35 }
 0x16b   :  { %206 = vrot.lane.b32.xlu0 %v202_v39, %s1590_s2 }
 0x16c   :  { %v199_v40 = vpop.permute.xlu0 %198 }
 0x16d   :  { %v203_v41 = vmul.f32 %v199_v40, %v183_v37 }
 0x16f   :  { %208 = vrot.lane.b32.xlu1 %v203_v41, %s1590_s2 }
 0x1cb   :  { %v467_v44 = vpop.f32.mrb[8].mxu1 }
 0x1dd   :  { %v207_v45 = vpop.permute.xlu0 %206 }
 0x1de   :  { %v1701_v46 = vadd.f32 %v207_v45, %v192_v43  ;;  %v1425_v45 = vpop.f32.mrb[9].mxu1 }
 0x1e0   :  { %1528 = vtanh.f32 %v1701_v46 }
 0x1e1   :  { %v209_v48 = vpop.permute.xlu1 %208 }
 0x1e2   :  { %v1704_v49 = vadd.f32 %v209_v48, %v193_v47 }
 0x1e4   :  { %1530 = vtanh.f32 %v1704_v49 }
 0x1ea   :  { %v1529_v51 = vpop.eup %1528 }
 0x1eb   :  { %218 = vrot.lane.b32.xlu0 %v1529_v51, %s1590_s2 }
 0x1ee   :  { %v1531_v52 = vpop.eup %1530 }
 0x1ef   :  { %220 = vrot.lane.b32.xlu1 %v1531_v52, %s1590_s2 }
 0x25d   :  { %v219_v53 = vpop.permute.xlu0 %218 }
 0x25e   :  { %v224_v55 = vmul.f32 %v219_v53, %v182_v35 }
 0x261   :  { %v221_v54 = vpop.permute.xlu1 %220 }
 0x262   :  { %v225_v56 = vmul.f32 %v221_v54, %v183_v37 }
 0x264   :  { %v229_v57 = vpack.c.bf16 %v225_v56, %v224_v55 }
 0x266   :  { %231 = vrot.lane.b32.xlu0 %v229_v57, %s1591_s27 }
 0x2d8   :  { %v232_v62 = vpop.permute.xlu0 %231 }
 0x2d9   :  { %1400 = vmatmul.mubr.msk.bf16.vlgmr.msra.gmra.mrb[4].mxu0 %vm22_vm0, %v232_v62 }
 0x2da   :  { %1412 = vmatpush3.bf16.msra.mxu0 %v1623_v1  ;;  %1415 = vmatprep.mubr.msk.bf16.mxu0 %vm1589_vm1, %v1588_v0 }
 0x2db   :  { %1413 = vmatprep.subr.bf16.mxu0 %v1588_v0 }
 0x2de   :  { %1414 = vmatpush3.bf16.msra.mxu0 %v1646_v3 }
 0x2df   :  { %1427 = vmatprep.subr.bf16.mxu0 %v1588_v0 }
 0x3ac   :  { %v270_v63 = vpop.f32.mrb[4].mxu0 }
 0x3ad   :  { %v320_v5 = vadd.f32 %v319_v58, %v270_v63  ;;  %v1401_v6 = vpop.f32.mrb[5].mxu0 }
 0x3ae   :  { %v273_v7 = vpop.f32.mrb[6].mxu0 }
 0x3af   :  { %v326_v8 = vadd.f32 %v1682_v13, %v320_v5  ;;  %v323_v9 = vadd.f32 %v322_v60, %v273_v7  ;;  %v1402_v10 = vpop.f32.mrb[7].mxu0 }
 0x3b1   :  { %v328_v11 = vmul.f32 0.5, %v326_v8  ;;  %v327_v12 = vadd.f32 %v1682_v13, %v323_v9 }
 0x3b3   :  { %v330_v15 = vsel %vm38_vm2, %v328_v11, %v326_v8  ;;  %v329_v16 = vmul.f32 0.5, %v327_v12 }
 0x3b4   :  { %1532 = vtanh.f32 %v330_v15 }
 0x3b5   :  { %v331_v17 = vsel %vm38_vm2, %v329_v16, %v327_v12 }
 0x3b6   :  { %1534 = vtanh.f32 %v331_v17 }
 0x3be   :  { %v1533_v18 = vpop.eup %1532 }
 0x3bf   :  { %v334_v19 = vmul.f32 0.5, %v1533_v18 }
 0x3c0   :  { %v1535_v20 = vpop.eup %1534 }
 0x3c1   :  { %v336_v21 = vadd.f32 0.5, %v334_v19  ;;  %v335_v22 = vmul.f32 0.5, %v1535_v20 }
 0x3c3   :  { %v338_v23 = vsel %vm38_vm2, %v336_v21, %v1533_v18  ;;  %v337_v24 = vadd.f32 0.5, %v335_v22  ;;  %v1519_v22 = vld [vmem:[%s1983_s0 + $0x18] sm:$0xff]  }
 0x3c4   :  { %344 = vrot.lane.b32.xlu1 %v338_v23, %s1590_s2  ;;  %v340_v30 = vmul.f32 %v338_v23, %v1701_v46  ;;  %v470_v46 = vpop.f32.mrb[10].mxu1  ;;  %1440 = vmatmul.mubr.msk.bf16.vlgmr.msra.gmra.mrb[12].mxu1 %vm22_vm0, %v1519_v22 }
 0x3c5   :  { %v339_v25 = vsel %vm38_vm2, %v337_v24, %v1535_v20  ;;  %v1426_v47 = vpop.f32.mrb[11].mxu1  ;;  %1452 = vmatpush3.bf16.msra.mxu1 %v1636_v2  ;;  %1455 = vmatprep.mubr.msk.bf16.mxu1 %vm1589_vm1, %v1588_v0 }
 0x3c6   :  { %346 = vrot.lane.b32.xlu0 %v339_v25, %s1590_s2  ;;  %v341_v33 = vmul.f32 %v339_v25, %v1704_v49  ;;  %1453 = vmatprep.subr.bf16.mxu1 %v1588_v0 }
 0x3c9   :  { %1454 = vmatpush3.bf16.msra.mxu1 %v1653_v4 }
 0x3ca   :  { %1467 = vmatprep.subr.bf16.mxu1 %v1588_v0 }
 0x436   :  { %v345_v26 = vpop.permute.xlu1 %344 }
 0x437   :  { %v350_v27 = vmul.f32 %v345_v26, %v338_v23 }
 0x438   :  { %v347_v28 = vpop.permute.xlu0 %346 }
 0x439   :  { %v351_v29 = vmul.f32 %v347_v28, %v339_v25  ;;  %354 = vrot.lane.b32.xlu1 %v350_v27, %s1590_s2 }
 0x43b   :  { %356 = vrot.lane.b32.xlu0 %v351_v29, %s1590_s2 }
 0x4ab   :  { %v355_v31 = vpop.permute.xlu1 %354 }
 0x4ac   :  { %v1742_v32 = vadd.f32 %v355_v31, %v340_v30  ;;  %v615_v30 = vpop.f32.mrb[12].mxu1 }
 0x4ad   :  { %v357_v34 = vpop.permute.xlu0 %356  ;;  %v1441_v31 = vpop.f32.mrb[13].mxu1 }
 0x4ae   :  { %1536 = vtanh.f32 %v1742_v32  ;;  %v1746_v35 = vadd.f32 %v357_v34, %v341_v33 }
 0x4b0   :  { %1538 = vtanh.f32 %v1746_v35 }
 0x4b8   :  { %v1537_v37 = vpop.eup %1536 }
 0x4b9   :  { %366 = vrot.lane.b32.xlu1 %v1537_v37, %s1590_s2 }
 0x4ba   :  { %v1539_v38 = vpop.eup %1538 }
 0x4bb   :  { %368 = vrot.lane.b32.xlu0 %v1539_v38, %s1590_s2 }
 0x52b   :  { %v367_v39 = vpop.permute.xlu1 %366 }
 0x52c   :  { %v372_v41 = vmul.f32 %v367_v39, %v338_v23 }
 0x52d   :  { %v369_v40 = vpop.permute.xlu0 %368 }
 0x52e   :  { %v373_v42 = vmul.f32 %v369_v40, %v339_v25 }
 0x530   :  { %v377_v43 = vpack.c.bf16 %v373_v42, %v372_v41 }
 0x532   :  { %379 = vrot.lane.b32.xlu1 %v377_v43, %s1591_s27 }
 0x5a4   :  { %v380_v48 = vpop.permute.xlu1 %379 }
 0x5a5   :  { %1416 = vmatmul.mubr.msk.bf16.vlgmr.msra.gmra.mrb[8].mxu0 %vm22_vm0, %v380_v48 }
 0x5a6   :  { %1428 = vmatpush3.bf16.msra.mxu0 %v1623_v1  ;;  %1431 = vmatprep.mubr.msk.bf16.mxu0 %vm1589_vm1, %v1588_v0 }
 0x5a7   :  { %1429 = vmatprep.subr.bf16.mxu0 %v1588_v0 }
 0x5aa   :  { %1430 = vmatpush3.bf16.msra.mxu0 %v1646_v3 }
 0x5ab   :  { %1443 = vmatprep.subr.bf16.mxu0 %v1588_v0 }
 0x678   :  { %v418_v49 = vpop.f32.mrb[8].mxu0 }
 0x679   :  { %v468_v50 = vadd.f32 %v467_v44, %v418_v49  ;;  %v1417_v51 = vpop.f32.mrb[9].mxu0 }
 0x67a   :  { %v421_v52 = vpop.f32.mrb[10].mxu0 }
 0x67b   :  { %v474_v53 = vadd.f32 %v1682_v13, %v468_v50  ;;  %v471_v54 = vadd.f32 %v470_v46, %v421_v52  ;;  %v1418_v55 = vpop.f32.mrb[11].mxu0 }
 0x67d   :  { %v476_v56 = vmul.f32 0.5, %v474_v53  ;;  %v475_v57 = vadd.f32 %v1682_v13, %v471_v54 }
 0x67f   :  { %v478_v58 = vsel %vm38_vm2, %v476_v56, %v474_v53  ;;  %v477_v59 = vmul.f32 0.5, %v475_v57 }
 0x680   :  { %1540 = vtanh.f32 %v478_v58 }
 0x681   :  { %v479_v60 = vsel %vm38_vm2, %v477_v59, %v475_v57 }
 0x682   :  { %1542 = vtanh.f32 %v479_v60 }
 0x68a   :  { %v1541_v61 = vpop.eup %1540 }
 0x68b   :  { %v482_v62 = vmul.f32 0.5, %v1541_v61 }
 0x68c   :  { %v1543_v63 = vpop.eup %1542 }
 0x68d   :  { %v484_v5 = vadd.f32 0.5, %v482_v62  ;;  %v483_v6 = vmul.f32 0.5, %v1543_v63 }
 0x68f   :  { %v486_v7 = vsel %vm38_vm2, %v484_v5, %v1541_v61  ;;  %v485_v8 = vadd.f32 0.5, %v483_v6  ;;  %v1520_v6 = vld [vmem:[%s1983_s0 + $0x20] sm:$0xff]  }
 0x690   :  { %492 = vrot.lane.b32.xlu0 %v486_v7, %s1590_s2  ;;  %v488_v16 = vmul.f32 %v486_v7, %v1742_v32  ;;  %v618_v32 = vpop.f32.mrb[14].mxu1  ;;  %1456 = vmatmul.mubr.msk.bf16.vlgmr.msra.gmra.mrb[16].mxu1 %vm22_vm0, %v1520_v6 }
 0x691   :  { %v487_v9 = vsel %vm38_vm2, %v485_v8, %v1543_v63  ;;  %v1442_v33 = vpop.f32.mrb[15].mxu1  ;;  %1468 = vmatpush3.bf16.msra.mxu1 %v1636_v2  ;;  %1471 = vmatprep.mubr.msk.bf16.mxu1 %vm1589_vm1, %v1588_v0 }
 0x692   :  { %494 = vrot.lane.b32.xlu1 %v487_v9, %s1590_s2  ;;  %v489_v19 = vmul.f32 %v487_v9, %v1746_v35  ;;  %1469 = vmatprep.subr.bf16.mxu1 %v1588_v0 }
 0x695   :  { %1470 = vmatpush3.bf16.msra.mxu1 %v1653_v4 }
 0x696   :  { %1483 = vmatprep.subr.bf16.mxu1 %v1588_v0 }
 0x702   :  { %v493_v10 = vpop.permute.xlu0 %492 }
 0x703   :  { %v498_v11 = vmul.f32 %v493_v10, %v486_v7 }
 0x704   :  { %v495_v12 = vpop.permute.xlu1 %494 }
 0x705   :  { %v499_v15 = vmul.f32 %v495_v12, %v487_v9  ;;  %502 = vrot.lane.b32.xlu0 %v498_v11, %s1590_s2 }
 0x707   :  { %504 = vrot.lane.b32.xlu1 %v499_v15, %s1590_s2 }
 0x777   :  { %v503_v17 = vpop.permute.xlu0 %502 }
 0x778   :  { %v1784_v18 = vadd.f32 %v503_v17, %v488_v16  ;;  %v763_v16 = vpop.f32.mrb[16].mxu1 }
 0x779   :  { %v505_v20 = vpop.permute.xlu1 %504  ;;  %v1457_v17 = vpop.f32.mrb[17].mxu1 }
 0x77a   :  { %1544 = vtanh.f32 %v1784_v18  ;;  %v1788_v21 = vadd.f32 %v505_v20, %v489_v19 }
 0x77c   :  { %1546 = vtanh.f32 %v1788_v21 }
 0x784   :  { %v1545_v23 = vpop.eup %1544 }
 0x785   :  { %514 = vrot.lane.b32.xlu0 %v1545_v23, %s1590_s2 }
 0x786   :  { %v1547_v24 = vpop.eup %1546 }
 0x787   :  { %516 = vrot.lane.b32.xlu1 %v1547_v24, %s1590_s2 }
 0x7f7   :  { %v515_v25 = vpop.permute.xlu0 %514 }
 0x7f8   :  { %v520_v27 = vmul.f32 %v515_v25, %v486_v7 }
 0x7f9   :  { %v517_v26 = vpop.permute.xlu1 %516 }
 0x7fa   :  { %v521_v28 = vmul.f32 %v517_v26, %v487_v9 }
 0x7fc   :  { %v525_v29 = vpack.c.bf16 %v521_v28, %v520_v27 }
 0x7fe   :  { %527 = vrot.lane.b32.xlu0 %v525_v29, %s1591_s27 }
 0x870   :  { %v528_v34 = vpop.permute.xlu0 %527 }
 0x871   :  { %1432 = vmatmul.mubr.msk.bf16.vlgmr.msra.gmra.mrb[12].mxu0 %vm22_vm0, %v528_v34 }
 0x872   :  { %1444 = vmatpush3.bf16.msra.mxu0 %v1623_v1  ;;  %1447 = vmatprep.mubr.msk.bf16.mxu0 %vm1589_vm1, %v1588_v0 }
 0x873   :  { %1445 = vmatprep.subr.bf16.mxu0 %v1588_v0 }
 0x876   :  { %1446 = vmatpush3.bf16.msra.mxu0 %v1646_v3 }
 0x877   :  { %1459 = vmatprep.subr.bf16.mxu0 %v1588_v0 }
 0x944   :  { %v566_v35 = vpop.f32.mrb[12].mxu0 }
 0x945   :  { %v616_v36 = vadd.f32 %v615_v30, %v566_v35  ;;  %v1433_v37 = vpop.f32.mrb[13].mxu0 }
 0x946   :  { %v569_v38 = vpop.f32.mrb[14].mxu0 }
 0x947   :  { %v622_v39 = vadd.f32 %v1682_v13, %v616_v36  ;;  %v619_v40 = vadd.f32 %v618_v32, %v569_v38  ;;  %v1434_v41 = vpop.f32.mrb[15].mxu0 }
 0x949   :  { %v624_v42 = vmul.f32 0.5, %v622_v39  ;;  %v623_v43 = vadd.f32 %v1682_v13, %v619_v40 }
 0x94b   :  { %v626_v44 = vsel %vm38_vm2, %v624_v42, %v622_v39  ;;  %v625_v45 = vmul.f32 0.5, %v623_v43 }
 0x94c   :  { %1548 = vtanh.f32 %v626_v44 }
 0x94d   :  { %v627_v46 = vsel %vm38_vm2, %v625_v45, %v623_v43 }
 0x94e   :  { %1550 = vtanh.f32 %v627_v46 }
 0x956   :  { %v1549_v47 = vpop.eup %1548 }
 0x957   :  { %v630_v48 = vmul.f32 0.5, %v1549_v47 }
 0x958   :  { %v1551_v49 = vpop.eup %1550 }
 0x959   :  { %v632_v50 = vadd.f32 0.5, %v630_v48  ;;  %v631_v51 = vmul.f32 0.5, %v1551_v49 }
 0x95b   :  { %v634_v52 = vsel %vm38_vm2, %v632_v50, %v1549_v47  ;;  %v633_v53 = vadd.f32 0.5, %v631_v51  ;;  %v1521_v51 = vld [vmem:[%s1983_s0 + $0x28] sm:$0xff]  }
 0x95c   :  { %640 = vrot.lane.b32.xlu1 %v634_v52, %s1590_s2  ;;  %v636_v59 = vmul.f32 %v634_v52, %v1784_v18  ;;  %v766_v18 = vpop.f32.mrb[18].mxu1  ;;  %1472 = vmatmul.mubr.msk.bf16.vlgmr.msra.gmra.mrb[20].mxu1 %vm22_vm0, %v1521_v51 }
 0x95d   :  { %v635_v54 = vsel %vm38_vm2, %v633_v53, %v1551_v49  ;;  %v1458_v19 = vpop.f32.mrb[19].mxu1  ;;  %1484 = vmatpush3.bf16.msra.mxu1 %v1636_v2  ;;  %1487 = vmatprep.mubr.msk.bf16.mxu1 %vm1589_vm1, %v1588_v0 }
 0x95e   :  { %642 = vrot.lane.b32.xlu0 %v635_v54, %s1590_s2  ;;  %v637_v62 = vmul.f32 %v635_v54, %v1788_v21  ;;  %1485 = vmatprep.subr.bf16.mxu1 %v1588_v0 }
 0x961   :  { %1486 = vmatpush3.bf16.msra.mxu1 %v1653_v4 }
 0x962   :  { %1499 = vmatprep.subr.bf16.mxu1 %v1588_v0 }
 0x9ce   :  { %v641_v55 = vpop.permute.xlu1 %640 }
 0x9cf   :  { %v646_v56 = vmul.f32 %v641_v55, %v634_v52 }
 0x9d0   :  { %v643_v57 = vpop.permute.xlu0 %642 }
 0x9d1   :  { %v647_v58 = vmul.f32 %v643_v57, %v635_v54  ;;  %650 = vrot.lane.b32.xlu1 %v646_v56, %s1590_s2 }
 0x9d3   :  { %652 = vrot.lane.b32.xlu0 %v647_v58, %s1590_s2 }
 0xa43   :  { %v651_v60 = vpop.permute.xlu1 %650 }
 0xa44   :  { %v1826_v61 = vadd.f32 %v651_v60, %v636_v59  ;;  %v911_v59 = vpop.f32.mrb[20].mxu1 }
 0xa45   :  { %v653_v63 = vpop.permute.xlu0 %652  ;;  %v1473_v60 = vpop.f32.mrb[21].mxu1 }
 0xa46   :  { %1552 = vtanh.f32 %v1826_v61  ;;  %v1830_v5 = vadd.f32 %v653_v63, %v637_v62 }
 0xa48   :  { %1554 = vtanh.f32 %v1830_v5 }
 0xa50   :  { %v1553_v7 = vpop.eup %1552 }
 0xa51   :  { %662 = vrot.lane.b32.xlu1 %v1553_v7, %s1590_s2 }
 0xa52   :  { %v1555_v8 = vpop.eup %1554 }
 0xa53   :  { %664 = vrot.lane.b32.xlu0 %v1555_v8, %s1590_s2 }
 0xac3   :  { %v663_v9 = vpop.permute.xlu1 %662 }
 0xac4   :  { %v668_v11 = vmul.f32 %v663_v9, %v634_v52 }
 0xac5   :  { %v665_v10 = vpop.permute.xlu0 %664 }
 0xac6   :  { %v669_v12 = vmul.f32 %v665_v10, %v635_v54 }
 0xac8   :  { %v673_v15 = vpack.c.bf16 %v669_v12, %v668_v11 }
 0xaca   :  { %675 = vrot.lane.b32.xlu1 %v673_v15, %s1591_s27 }
 0xb3c   :  { %v676_v20 = vpop.permute.xlu1 %675 }
 0xb3d   :  { %1448 = vmatmul.mubr.msk.bf16.vlgmr.msra.gmra.mrb[16].mxu0 %vm22_vm0, %v676_v20 }
 0xb3e   :  { %1460 = vmatpush3.bf16.msra.mxu0 %v1623_v1  ;;  %1463 = vmatprep.mubr.msk.bf16.mxu0 %vm1589_vm1, %v1588_v0 }
 0xb3f   :  { %1461 = vmatprep.subr.bf16.mxu0 %v1588_v0 }
 0xb42   :  { %1462 = vmatpush3.bf16.msra.mxu0 %v1646_v3 }
 0xb43   :  { %1475 = vmatprep.subr.bf16.mxu0 %v1588_v0 }
 0xc10   :  { %v714_v21 = vpop.f32.mrb[16].mxu0 }
 0xc11   :  { %v764_v22 = vadd.f32 %v763_v16, %v714_v21  ;;  %v1449_v23 = vpop.f32.mrb[17].mxu0 }
 0xc12   :  { %v717_v24 = vpop.f32.mrb[18].mxu0 }
 0xc13   :  { %v770_v25 = vadd.f32 %v1682_v13, %v764_v22  ;;  %v767_v26 = vadd.f32 %v766_v18, %v717_v24  ;;  %v1450_v27 = vpop.f32.mrb[19].mxu0 }
 0xc15   :  { %v772_v28 = vmul.f32 0.5, %v770_v25  ;;  %v771_v29 = vadd.f32 %v1682_v13, %v767_v26 }
 0xc17   :  { %v774_v30 = vsel %vm38_vm2, %v772_v28, %v770_v25  ;;  %v773_v31 = vmul.f32 0.5, %v771_v29 }
 0xc18   :  { %1556 = vtanh.f32 %v774_v30 }
 0xc19   :  { %v775_v32 = vsel %vm38_vm2, %v773_v31, %v771_v29 }
 0xc1a   :  { %1558 = vtanh.f32 %v775_v32 }
 0xc22   :  { %v1557_v33 = vpop.eup %1556 }
 0xc23   :  { %v778_v34 = vmul.f32 0.5, %v1557_v33 }
 0xc24   :  { %v1559_v35 = vpop.eup %1558 }
 0xc25   :  { %v780_v36 = vadd.f32 0.5, %v778_v34  ;;  %v779_v37 = vmul.f32 0.5, %v1559_v35 }
 0xc27   :  { %v782_v38 = vsel %vm38_vm2, %v780_v36, %v1557_v33  ;;  %v781_v39 = vadd.f32 0.5, %v779_v37  ;;  %v1522_v37 = vld [vmem:[%s1983_s0 + $0x30] sm:$0xff]  }
 0xc28   :  { %788 = vrot.lane.b32.xlu0 %v782_v38, %s1590_s2  ;;  %v784_v45 = vmul.f32 %v782_v38, %v1826_v61  ;;  %v914_v61 = vpop.f32.mrb[22].mxu1  ;;  %1488 = vmatmul.mubr.msk.bf16.vlgmr.msra.gmra.mrb[24].mxu1 %vm22_vm0, %v1522_v37 }
 0xc29   :  { %v783_v40 = vsel %vm38_vm2, %v781_v39, %v1559_v35  ;;  %v1474_v62 = vpop.f32.mrb[23].mxu1  ;;  %1500 = vmatpush3.bf16.msra.mxu1 %v1636_v2  ;;  %1503 = vmatprep.mubr.msk.bf16.mxu1 %vm1589_vm1, %v1588_v0 }
 0xc2a   :  { %790 = vrot.lane.b32.xlu1 %v783_v40, %s1590_s2  ;;  %v785_v48 = vmul.f32 %v783_v40, %v1830_v5  ;;  %1501 = vmatprep.subr.bf16.mxu1 %v1588_v0 }
 0xc2d   :  { %1502 = vmatpush3.bf16.msra.mxu1 %v1653_v4 }
 0xc9a   :  { %v789_v41 = vpop.permute.xlu0 %788 }
 0xc9b   :  { %v794_v42 = vmul.f32 %v789_v41, %v782_v38 }
 0xc9c   :  { %v791_v43 = vpop.permute.xlu1 %790 }
 0xc9d   :  { %v795_v44 = vmul.f32 %v791_v43, %v783_v40  ;;  %798 = vrot.lane.b32.xlu0 %v794_v42, %s1590_s2 }
 0xc9f   :  { %800 = vrot.lane.b32.xlu1 %v795_v44, %s1590_s2 }
 0xcfb   :  { %v1059_v2 = vpop.f32.mrb[24].mxu1 }
 0xd0f   :  { %v799_v46 = vpop.permute.xlu0 %798 }
 0xd10   :  { %v1868_v47 = vadd.f32 %v799_v46, %v784_v45  ;;  %v1489_v45 = vpop.f32.mrb[25].mxu1 }
 0xd11   :  { %v801_v49 = vpop.permute.xlu1 %800  ;;  %v1062_v46 = vpop.f32.mrb[26].mxu1 }
 0xd12   :  { %1560 = vtanh.f32 %v1868_v47  ;;  %v1872_v50 = vadd.f32 %v801_v49, %v785_v48 }
 0xd14   :  { %1562 = vtanh.f32 %v1872_v50 }
 0xd1c   :  { %v1561_v52 = vpop.eup %1560 }
 0xd1d   :  { %810 = vrot.lane.b32.xlu0 %v1561_v52, %s1590_s2 }
 0xd1e   :  { %v1563_v53 = vpop.eup %1562 }
 0xd1f   :  { %812 = vrot.lane.b32.xlu1 %v1563_v53, %s1590_s2 }
 0xd8f   :  { %v811_v54 = vpop.permute.xlu0 %810 }
 0xd90   :  { %v816_v56 = vmul.f32 %v811_v54, %v782_v38 }
 0xd91   :  { %v813_v55 = vpop.permute.xlu1 %812 }
 0xd92   :  { %v817_v57 = vmul.f32 %v813_v55, %v783_v40 }
 0xd94   :  { %v821_v58 = vpack.c.bf16 %v817_v57, %v816_v56 }
 0xd96   :  { %823 = vrot.lane.b32.xlu0 %v821_v58, %s1591_s27 }
 0xe08   :  { %v824_v63 = vpop.permute.xlu0 %823 }
 0xe09   :  { %1464 = vmatmul.mubr.msk.bf16.vlgmr.msra.gmra.mrb[20].mxu0 %vm22_vm0, %v824_v63 }
 0xe0a   :  { %1476 = vmatpush3.bf16.msra.mxu0 %v1623_v1  ;;  %1479 = vmatprep.mubr.msk.bf16.mxu0 %vm1589_vm1, %v1588_v0 }
 0xe0b   :  { %1477 = vmatprep.subr.bf16.mxu0 %v1588_v0 }
 0xe0e   :  { %1478 = vmatpush3.bf16.msra.mxu0 %v1646_v3 }
 0xe0f   :  { %1491 = vmatprep.subr.bf16.mxu0 %v1588_v0 }
 0xedc   :  { %v862_v5 = vpop.f32.mrb[20].mxu0 }
 0xedd   :  { %v912_v6 = vadd.f32 %v911_v59, %v862_v5  ;;  %v1465_v7 = vpop.f32.mrb[21].mxu0 }
 0xede   :  { %v865_v8 = vpop.f32.mrb[22].mxu0 }
 0xedf   :  { %v918_v9 = vadd.f32 %v1682_v13, %v912_v6  ;;  %v915_v10 = vadd.f32 %v914_v61, %v865_v8  ;;  %v1466_v11 = vpop.f32.mrb[23].mxu0 }
 0xee1   :  { %v920_v12 = vmul.f32 0.5, %v918_v9  ;;  %v919_v15 = vadd.f32 %v1682_v13, %v915_v10 }
 0xee3   :  { %v922_v16 = vsel %vm38_vm2, %v920_v12, %v918_v9  ;;  %v921_v17 = vmul.f32 0.5, %v919_v15 }
 0xee4   :  { %1564 = vtanh.f32 %v922_v16 }
 0xee5   :  { %v923_v18 = vsel %vm38_vm2, %v921_v17, %v919_v15 }
 0xee6   :  { %1566 = vtanh.f32 %v923_v18  ;;  %v1523_v18 = vld [vmem:[%s1983_s0 + $0x38] sm:$0xff]   ;;  %s1592_s0 = smov 96  }
 0xee7   :  { %1504 = vmatmul.mubr.msk.bf16.vlgmr.msra.gmra.mrb[28].mxu1 %vm22_vm0, %v1523_v18 }
 0xeee   :  { %v1565_v19 = vpop.eup %1564 }
 0xeef   :  { %v926_v20 = vmul.f32 0.5, %v1565_v19 }
 0xef0   :  { %v1567_v21 = vpop.eup %1566 }
 0xef1   :  { %v928_v22 = vadd.f32 0.5, %v926_v20  ;;  %v927_v23 = vmul.f32 0.5, %v1567_v21 }
 0xef3   :  { %v930_v24 = vsel %vm38_vm2, %v928_v22, %v1565_v19  ;;  %v929_v25 = vadd.f32 0.5, %v927_v23 }
 0xef4   :  { %936 = vrot.lane.b32.xlu1 %v930_v24, %s1590_s2  ;;  %v932_v31 = vmul.f32 %v930_v24, %v1868_v47  ;;  %v1490_v47 = vpop.f32.mrb[27].mxu1 }
 0xef5   :  { %v931_v26 = vsel %vm38_vm2, %v929_v25, %v1567_v21 }
 0xef6   :  { %938 = vrot.lane.b32.xlu0 %v931_v26, %s1590_s2  ;;  %v933_v34 = vmul.f32 %v931_v26, %v1872_v50 }
 0xf66   :  { %v937_v27 = vpop.permute.xlu1 %936 }
 0xf67   :  { %v942_v28 = vmul.f32 %v937_v27, %v930_v24 }
 0xf68   :  { %v939_v29 = vpop.permute.xlu0 %938 }
 0xf69   :  { %v943_v30 = vmul.f32 %v939_v29, %v931_v26  ;;  %946 = vrot.lane.b32.xlu1 %v942_v28, %s1590_s2 }
 0xf6b   :  { %948 = vrot.lane.b32.xlu0 %v943_v30, %s1590_s2 }
 0xfdb   :  { %v947_v32 = vpop.permute.xlu1 %946 }
 0xfdc   :  { %v952_v33 = vadd.f32 %v947_v32, %v932_v31 }
 0xfdd   :  { %v949_v35 = vpop.permute.xlu0 %948 }
 0xfde   :  { %1568 = vtanh.f32 %v952_v33  ;;  %v953_v36 = vadd.f32 %v949_v35, %v933_v34 }
 0xfe0   :  { %1570 = vtanh.f32 %v953_v36 }
 0xfe8   :  { %v1569_v38 = vpop.eup %1568 }
 0xfe9   :  { %958 = vrot.lane.b32.xlu1 %v1569_v38, %s1590_s2 }
 0xfea   :  { %v1571_v39 = vpop.eup %1570 }
 0xfeb   :  { %960 = vrot.lane.b32.xlu0 %v1571_v39, %s1590_s2 }
0x105b   :  { %v959_v40 = vpop.permute.xlu1 %958 }
0x105c   :  { %v964_v42 = vmul.f32 %v959_v40, %v930_v24 }
0x105d   :  { %v961_v41 = vpop.permute.xlu0 %960 }
0x105e   :  { %v965_v43 = vmul.f32 %v961_v41, %v931_v26  ;;  %v1207_v26 = vpop.f32.mrb[28].mxu1 }
0x105f   :  { %v1505_v27 = vpop.f32.mrb[29].mxu1 }
0x1060   :  { %v969_v44 = vpack.c.bf16 %v965_v43, %v964_v42  ;;  %v1210_v28 = vpop.f32.mrb[30].mxu1 }
0x1061   :  { %v1506_v29 = vpop.f32.mrb[31].mxu1 }
0x1062   :  { %971 = vrot.lane.b32.xlu1 %v969_v44, %s1591_s27 }
0x10d4   :  { %v972_v48 = vpop.permute.xlu1 %971 }
0x10d5   :  { %1480 = vmatmul.mubr.msk.bf16.vlgmr.msra.gmra.mrb[24].mxu0 %vm22_vm0, %v972_v48 }
0x10d6   :  { %1492 = vmatpush3.bf16.msra.mxu0 %v1623_v1  ;;  %1495 = vmatprep.mubr.msk.bf16.mxu0 %vm1589_vm1, %v1588_v0 }
0x10d7   :  { %1493 = vmatprep.subr.bf16.mxu0 %v1588_v0 }
0x10da   :  { %1494 = vmatpush3.bf16.msra.mxu0 %v1646_v3 }
0x11a8   :  { %v1010_v4 = vpop.f32.mrb[24].mxu0 }
0x11a9   :  { %v1060_v49 = vadd.f32 %v1059_v2, %v1010_v4  ;;  %v1481_v50 = vpop.f32.mrb[25].mxu0 }
0x11aa   :  { %v1013_v51 = vpop.f32.mrb[26].mxu0 }
0x11ab   :  { %v1066_v52 = vadd.f32 %v1682_v13, %v1060_v49  ;;  %v1063_v53 = vadd.f32 %v1062_v46, %v1013_v51  ;;  %v1482_v54 = vpop.f32.mrb[27].mxu0 }
0x11ad   :  { %v1068_v55 = vmul.f32 0.5, %v1066_v52  ;;  %v1067_v56 = vadd.f32 %v1682_v13, %v1063_v53 }
0x11af   :  { %v1070_v1 = vsel %vm38_vm2, %v1068_v55, %v1066_v52  ;;  %v1069_v57 = vmul.f32 0.5, %v1067_v56 }
0x11b0   :  { %1572 = vtanh.f32 %v1070_v1 }
0x11b1   :  { %v1071_v0 = vsel %vm38_vm2, %v1069_v57, %v1067_v56 }
0x11b2   :  { %1574 = vtanh.f32 %v1071_v0 }
0x11ba   :  { %v1573_v3 = vpop.eup %1572 }
0x11bb   :  { %v1074_v58 = vmul.f32 0.5, %v1573_v3 }
0x11bc   :  { %v1575_v59 = vpop.eup %1574 }
0x11bd   :  { %v1076_v60 = vadd.f32 0.5, %v1074_v58  ;;  %v1075_v61 = vmul.f32 0.5, %v1575_v59 }
0x11bf   :  { %v1078_v62 = vsel %vm38_vm2, %v1076_v60, %v1573_v3  ;;  %v1077_v63 = vadd.f32 0.5, %v1075_v61 }
0x11c0   :  { %1084 = vrot.lane.b32.xlu0 %v1078_v62, %s1590_s2  ;;  %v1080_v10 = vmul.f32 %v1078_v62, %v952_v33 }
0x11c1   :  { %v1079_v5 = vsel %vm38_vm2, %v1077_v63, %v1575_v59 }
0x11c2   :  { %1086 = vrot.lane.b32.xlu1 %v1079_v5, %s1590_s2  ;;  %v1081_v15 = vmul.f32 %v1079_v5, %v953_v36 }
0x1232   :  { %v1085_v6 = vpop.permute.xlu0 %1084 }
0x1233   :  { %v1090_v7 = vmul.f32 %v1085_v6, %v1078_v62 }
0x1234   :  { %v1087_v8 = vpop.permute.xlu1 %1086 }
0x1235   :  { %v1091_v9 = vmul.f32 %v1087_v8, %v1079_v5  ;;  %1094 = vrot.lane.b32.xlu0 %v1090_v7, %s1590_s2 }
0x1237   :  { %1096 = vrot.lane.b32.xlu1 %v1091_v9, %s1590_s2 }
0x12a7   :  { %v1095_v11 = vpop.permute.xlu0 %1094 }
0x12a8   :  { %v1100_v12 = vadd.f32 %v1095_v11, %v1080_v10 }
0x12a9   :  { %v1097_v16 = vpop.permute.xlu1 %1096 }
0x12aa   :  { %1576 = vtanh.f32 %v1100_v12  ;;  %v1101_v17 = vadd.f32 %v1097_v16, %v1081_v15 }
0x12ac   :  { %1578 = vtanh.f32 %v1101_v17 }
0x12b4   :  { %v1577_v19 = vpop.eup %1576 }
0x12b5   :  { %1106 = vrot.lane.b32.xlu0 %v1577_v19, %s1590_s2 }
0x12b6   :  { %v1579_v20 = vpop.eup %1578 }
0x12b7   :  { %1108 = vrot.lane.b32.xlu1 %v1579_v20, %s1590_s2 }
0x1327   :  { %v1107_v21 = vpop.permute.xlu0 %1106 }
0x1328   :  { %v1112_v23 = vmul.f32 %v1107_v21, %v1078_v62 }
0x1329   :  { %v1109_v22 = vpop.permute.xlu1 %1108 }
0x132a   :  { %v1113_v24 = vmul.f32 %v1109_v22, %v1079_v5 }
0x132c   :  { %v1117_v25 = vpack.c.bf16 %v1113_v24, %v1112_v23 }
0x132e   :  { %1119 = vrot.lane.b32.xlu0 %v1117_v25, %s1591_s27 }
0x13a0   :  { %v1120_v30 = vpop.permute.xlu0 %1119 }
0x13a1   :  { %1496 = vmatmul.mubr.msk.bf16.vlgmr.msra.gmra.mrb[28].mxu0 %vm22_vm0, %v1120_v30 }
0x1474   :  { %v1158_v31 = vpop.f32.mrb[28].mxu0 }
0x1475   :  { %v1208_v32 = vadd.f32 %v1207_v26, %v1158_v31  ;;  %v1497_v33 = vpop.f32.mrb[29].mxu0 }
0x1476   :  { %v1161_v34 = vpop.f32.mrb[30].mxu0 }
0x1477   :  { %v1214_v35 = vadd.f32 %v1682_v13, %v1208_v32  ;;  %v1211_v36 = vadd.f32 %v1210_v28, %v1161_v34  ;;  %v1498_v37 = vpop.f32.mrb[31].mxu0 }
0x1479   :  { %v1216_v38 = vmul.f32 0.5, %v1214_v35  ;;  %v1215_v39 = vadd.f32 %v1682_v13, %v1211_v36 }
0x147b   :  { %v1218_v40 = vsel %vm38_vm2, %v1216_v38, %v1214_v35  ;;  %v1217_v41 = vmul.f32 0.5, %v1215_v39 }
0x147c   :  { %1580 = vtanh.f32 %v1218_v40 }
0x147d   :  { %v1219_v42 = vsel %vm38_vm2, %v1217_v41, %v1215_v39 }
0x147e   :  { %1582 = vtanh.f32 %v1219_v42 }
0x1486   :  { %v1581_v43 = vpop.eup %1580 }
0x1487   :  { %v1222_v44 = vmul.f32 0.5, %v1581_v43 }
0x1488   :  { %v1583_v2 = vpop.eup %1582 }
0x1489   :  { %v1224_v45 = vadd.f32 0.5, %v1222_v44  ;;  %v1223_v46 = vmul.f32 0.5, %v1583_v2 }
0x148b   :  { %v1226_v47 = vsel %vm38_vm2, %v1224_v45, %v1581_v43  ;;  %v1225_v48 = vadd.f32 0.5, %v1223_v46 }
0x148c   :  { %1232 = vrot.lane.b32.xlu1 %v1226_v47, %s1590_s2  ;;  %v1228_v52 = vmul.f32 %v1226_v47, %v1100_v12 }
0x148d   :  { %v1227_v13 = vsel %vm38_vm2, %v1225_v48, %v1583_v2 }
0x148e   :  { %1234 = vrot.lane.b32.xlu0 %v1227_v13, %s1590_s2  ;;  %v1229_v55 = vmul.f32 %v1227_v13, %v1101_v17 }
0x14fe   :  { %v1233_v4 = vpop.permute.xlu1 %1232 }
0x14ff   :  { %v1238_v49 = vmul.f32 %v1233_v4, %v1226_v47 }
0x1500   :  { %v1235_v50 = vpop.permute.xlu0 %1234 }
0x1501   :  { %v1239_v51 = vmul.f32 %v1235_v50, %v1227_v13  ;;  %1242 = vrot.lane.b32.xlu1 %v1238_v49, %s1590_s2 }
0x1503   :  { %1244 = vrot.lane.b32.xlu0 %v1239_v51, %s1590_s2 }
0x1573   :  { %v1243_v53 = vpop.permute.xlu1 %1242 }
0x1574   :  { %v1248_v54 = vadd.f32 %v1243_v53, %v1228_v52 }
0x1575   :  { %v1245_v56 = vpop.permute.xlu0 %1244 }
0x1576   :  { %1584 = vtanh.f32 %v1248_v54  ;;  %v1249_v1 = vadd.f32 %v1245_v56, %v1229_v55 }
0x1578   :  { %1586 = vtanh.f32 %v1249_v1 }
0x1580   :  { %v1585_v14 = vpop.eup %1584 }
0x1581   :  { %1254 = vrot.lane.b32.xlu1 %v1585_v14, %s1590_s2 }
0x1582   :  { %v1587_v57 = vpop.eup %1586 }
0x1583   :  { %1256 = vrot.lane.b32.xlu0 %v1587_v57, %s1590_s2 }
0x15f3   :  { %v1255_v0 = vpop.permute.xlu1 %1254 }
0x15f4   :  { %v1260_v3 = vmul.f32 %v1255_v0, %v1226_v47 }
0x15f5   :  { %v1257_v58 = vpop.permute.xlu0 %1256 }
0x15f6   :  { %v1261_v59 = vmul.f32 %v1257_v58, %v1227_v13  ;;  %1264 = vrot.lane.b32.xlu1 %v1260_v3, %s1591_s27 }
0x15f8   :  { %1266 = vrot.lane.b32.xlu0 %v1261_v59, %s1591_s27 }
0x15fa   :  { %1274 = vrot.lane.b32.xlu1 %v1248_v54, %s1592_s0 }
0x15fc   :  { %1276 = vrot.lane.b32.xlu0 %v1249_v1, %s1592_s0 }
0x1668   :  { %v1265_v60 = vpop.permute.xlu1 %1264 }
0x1669   :  { %1270 = vst.msk [vmem:[#allocation2] sm:$0xff] %vm22_vm0, %v1265_v60  ;;  %1282 = vst.msk [vmem:[%s1985_s4] sm:$0xff] %vm22_vm0, %v1265_v60 }
0x166a   :  { %v1267_v61 = vpop.permute.xlu0 %1266 }
0x166b   :  { %1271 = vst.msk [vmem:[#allocation2 + $0x8] sm:$0xff] %vm22_vm0, %v1267_v61  ;;  %1283 = vst.msk [vmem:[%s1985_s4 + $0x8] sm:$0xff] %vm22_vm0, %v1267_v61 }
0x166c   :  { %v1275_v62 = vpop.permute.xlu1 %1274 }
0x166d   :  { %1280 = vst.msk [vmem:[#allocation3] sm:$0xff] %vm22_vm0, %v1275_v62 }
0x166e   :  { %v1277_v63 = vpop.permute.xlu0 %1276 }
0x166f   :  { %1281 = vst.msk [vmem:[#allocation3 + $0x8] sm:$0xff] %vm22_vm0, %v1277_v63 }

</bundles_post_ra>
